<compile_context>
chip_gen: v7x
topology: tpu7x:2x2x1
jax: 0.10.0
libtpu: 0.0.40
codegen_flags: <defaults>
</compile_context>

<pallas_src>
import math

import jax
import jax.numpy as jnp
from jax.experimental import pallas as pl
from jax.experimental.pallas import tpu as pltpu


# ----------------------------------------------------------------------------
# Helpers
# ----------------------------------------------------------------------------

def _round_up(x, m):
    return ((x + m - 1) // m) * m


_ACTS = {
    "silu": lambda v: v * jax.nn.sigmoid(v),
    "sigmoid": jax.nn.sigmoid,
    "identity": lambda v: v,
}


# ----------------------------------------------------------------------------
# Fused (prescale) -> matmul -> BN affine -> act -> (+residual) Pallas kernel
# ----------------------------------------------------------------------------

def _make_matmul_kernel(act_name, has_prescale, has_residual):
    act = _ACTS[act_name]

    def kernel(*refs):
        x_ref, w_ref, scale_ref, shift_ref = refs[:4]
        idx = 4
        ps_ref = None
        res_ref = None
        if has_prescale:
            ps_ref = refs[idx]
            idx += 1
        if has_residual:
            res_ref = refs[idx]
            idx += 1
        o_ref, acc_ref = refs[idx], refs[idx + 1]

        @pl.when(pl.program_id(3) == 0)
        def _init():
            acc_ref[...] = jnp.zeros_like(acc_ref)

        xb = x_ref[0]                       # (tm, tk) bf16
        if has_prescale:
            xb = xb * ps_ref[0]             # SE channel scale fused as prologue
        acc_ref[...] += jnp.dot(xb.astype(jnp.bfloat16), w_ref[...],
                                preferred_element_type=jnp.float32)

        @pl.when(pl.program_id(3) == pl.num_programs(3) - 1)
        def _fin():
            y = acc_ref[...] * scale_ref[...] + shift_ref[...]
            y = act(y)
            if has_residual:
                y = y + res_ref[0].astype(jnp.float32)   # shortcut fused in epilogue
            o_ref[0] = y.astype(o_ref.dtype)

    return kernel


def fused_matmul(x, w, scale, shift, act="identity",
                 prescale=None, residual=None, out_dtype=jnp.bfloat16):
    """act((x [* prescale]) @ w * scale + shift) [+ residual]

    x:(B,M,K)  w:(K,N)  scale/shift:(N,)  prescale:(B,1,K)|None  residual:(B,M,N)|None
    Matmul runs in bf16 on the MXU with f32 accumulation; all pre/post ops are fused.
    """
    B, M, K = x.shape
    K2, N = w.shape
    assert K == K2

    tm = min(256, _round_up(M, 8))
    tn = min(256, _round_up(N, 128))
    tk = min(512, _round_up(K, 128))
    Mp, Np, Kp = _round_up(M, tm), _round_up(N, tn), _round_up(K, tk)

    xb = jnp.pad(x.astype(jnp.bfloat16), ((0, 0), (0, Mp - M), (0, Kp - K)))
    wb = jnp.pad(w.astype(jnp.bfloat16), ((0, Kp - K), (0, Np - N)))
    sc = jnp.pad(scale.astype(jnp.float32), (0, Np - N)).reshape(1, Np)
    sh = jnp.pad(shift.astype(jnp.float32), (0, Np - N)).reshape(1, Np)

    in_specs = [
        pl.BlockSpec((1, tm, tk), lambda b, i, j, k: (b, i, k)),
        pl.BlockSpec((tk, tn), lambda b, i, j, k: (k, j)),
        pl.BlockSpec((1, tn), lambda b, i, j, k: (0, j)),
        pl.BlockSpec((1, tn), lambda b, i, j, k: (0, j)),
    ]
    args = [xb, wb, sc, sh]

    if prescale is not None:
        ps = jnp.pad(prescale.astype(jnp.float32), ((0, 0), (0, 0), (0, Kp - K)))
        in_specs.append(pl.BlockSpec((1, 1, tk), lambda b, i, j, k: (b, 0, k)))
        args.append(ps)
    if residual is not None:
        rs = jnp.pad(residual.astype(jnp.bfloat16), ((0, 0), (0, Mp - M), (0, Np - N)))
        in_specs.append(pl.BlockSpec((1, tm, tn), lambda b, i, j, k: (b, i, j)))
        args.append(rs)

    grid = (B, Mp // tm, Np // tn, Kp // tk)

    out = pl.pallas_call(
        _make_matmul_kernel(act, prescale is not None, residual is not None),
        out_shape=jax.ShapeDtypeStruct((B, Mp, Np), out_dtype),
        grid=grid,
        in_specs=in_specs,
        out_specs=pl.BlockSpec((1, tm, tn), lambda b, i, j, k: (b, i, j)),
        scratch_shapes=[pltpu.VMEM((tm, tn), jnp.float32)],
        compiler_params=pltpu.CompilerParams(
            dimension_semantics=("parallel", "parallel", "parallel", "arbitrary"),
            vmem_limit_bytes=32 * 1024 * 1024),
    )(*args)
    return out[:, :M, :N]


# ----------------------------------------------------------------------------
# Depthwise conv (tap dim leading, lane-dense (tm, C) tiles) + BN + SiLU
# ----------------------------------------------------------------------------

def _make_dw_kernel(kk):
    def kernel(p_ref, w_ref, scale_ref, shift_ref, o_ref):
        acc = p_ref[0].astype(jnp.float32) * w_ref[0]
        for t in range(1, kk):                       # static tap loop: pure VPU adds
            acc = acc + p_ref[t].astype(jnp.float32) * w_ref[t]
        y = acc * scale_ref[...] + shift_ref[...]
        o_ref[...] = (y * jax.nn.sigmoid(y)).astype(o_ref.dtype)
    return kernel


def dw_conv_call(pm, wm, scale, shift, out_dtype=jnp.bfloat16):
    """pm:(KK,M,C) patches (tap-major), wm:(KK,C) depthwise taps -> (M,C)."""
    KK, M, C = pm.shape
    tm = min(256, _round_up(M, 8))
    Mp = _round_up(M, tm)
    pmb = jnp.pad(pm.astype(jnp.bfloat16), ((0, 0), (0, Mp - M), (0, 0)))
    wmf = wm.astype(jnp.float32).reshape(KK, 1, C)

    out = pl.pallas_call(
        _make_dw_kernel(KK),
        out_shape=jax.ShapeDtypeStruct((Mp, C), out_dtype),
        grid=(Mp // tm,),
        in_specs=[
            pl.BlockSpec((KK, tm, C), lambda i: (0, i, 0)),
            pl.BlockSpec((KK, 1, C), lambda i: (0, 0, 0)),
            pl.BlockSpec((1, C), lambda i: (0, 0)),
            pl.BlockSpec((1, C), lambda i: (0, 0)),
        ],
        out_specs=pl.BlockSpec((tm, C), lambda i: (i, 0)),
        compiler_params=pltpu.CompilerParams(
            dimension_semantics=("parallel",),
            vmem_limit_bytes=32 * 1024 * 1024),
    )(pmb, wmf,
      scale.reshape(1, C).astype(jnp.float32),
      shift.reshape(1, C).astype(jnp.float32))
    return out[:M]


# ----------------------------------------------------------------------------
# Global average pooling, tiled over HW with f32 accumulator
# ----------------------------------------------------------------------------

def _make_pool_kernel(inv_hw):
    def kernel(x_ref, o_ref, acc_ref):
        @pl.when(pl.program_id(0) == 0)
        def _init():
            acc_ref[...] = jnp.zeros_like(acc_ref)

        acc_ref[...] += jnp.sum(x_ref[...].astype(jnp.float32), axis=1)

        @pl.when(pl.program_id(0) == pl.num_programs(0) - 1)
        def _fin():
            o_ref[...] = (acc_ref[...] * inv_hw).astype(o_ref.dtype)
    return kernel


def global_avg_pool(x3):
    """x3:(N,HW,C) -> (N,C) float32 mean over HW."""
    N, HW, C = x3.shape
    thw = min(512, _round_up(HW, 8))
    HWp = _round_up(HW, thw)
    xb = jnp.pad(x3.astype(jnp.bfloat16), ((0, 0), (0, HWp - HW), (0, 0)))

    return pl.pallas_call(
        _make_pool_kernel(1.0 / HW),
        out_shape=jax.ShapeDtypeStruct((N, C), jnp.float32),
        grid=(HWp // thw,),
        in_specs=[pl.BlockSpec((N, thw, C), lambda h: (0, h, 0))],
        out_specs=pl.BlockSpec((N, C), lambda h: (0, 0)),
        scratch_shapes=[pltpu.VMEM((N, C), jnp.float32)],
        compiler_params=pltpu.CompilerParams(
            dimension_semantics=("arbitrary",),
            vmem_limit_bytes=32 * 1024 * 1024),
    )(xb)


# ----------------------------------------------------------------------------
# Glue: im2col, layer forwards
# ----------------------------------------------------------------------------

# TODO(synk): replace HBM-materialized im2col with an in-kernel shifted-slice tap
# reduction (avoids the k*k patch-tensor HBM amplification for 3x3 convs).
def im2col(x_nhwc, k, stride):
    """x:(N,H,W,C) -> patches:(k*k, N, Ho, Wo, C) with zero padding (k-1)//2."""
    N, H, W, C = x_nhwc.shape
    pad = (k - 1) // 2
    xp = jnp.pad(x_nhwc, ((0, 0), (pad, pad), (pad, pad), (0, 0)))
    Ho = (H + 2 * pad - k) // stride + 1
    Wo = (W + 2 * pad - k) // stride + 1
    cols = []
    for di in range(k):
        for dj in range(k):
            cols.append(xp[:, di:di + stride * Ho:stride, dj:dj + stride * Wo:stride, :])
    patches = jnp.stack(cols, axis=0)  # (KK, N, Ho, Wo, C)
    return patches, Ho, Wo


def conv_bn_act_fwd(x, p, act, residual=None):
    """Regular conv + folded BN + activation (+ fused residual), via im2col + matmul."""
    N, H, W, C = x.shape
    k, stride = p["k"], p["stride"]
    out_c = p["w"].shape[0]
    if k == 1:
        assert stride == 1
        xm = x.reshape(1, N * H * W, C)
        wm = p["w"].reshape(out_c, C).T
        Ho, Wo = H, W
    else:
        patches, Ho, Wo = im2col(x, k, stride)
        KK = k * k
        xm = jnp.transpose(patches, (1, 2, 3, 0, 4)).reshape(1, N * Ho * Wo, KK * C)
        wm = jnp.transpose(p["w"], (2, 3, 1, 0)).reshape(KK * C, out_c)
    res = residual.reshape(1, N * Ho * Wo, out_c) if residual is not None else None
    y = fused_matmul(xm, wm, p["scale"], p["shift"], act, residual=res)
    return y.reshape(N, Ho, Wo, out_c)


def conv1x1_prescale_fwd(x, p, prescale, residual=None):
    """1x1 conv with a per-(batch,channel) prescale (SE) fused as prologue."""
    N, H, W, C = x.shape
    out_c = p["w"].shape[0]
    xm = x.reshape(N, H * W, C)
    wm = p["w"].reshape(out_c, C).T
    res = residual.reshape(N, H * W, out_c) if residual is not None else None
    y = fused_matmul(xm, wm, p["scale"], p["shift"], "identity",
                     prescale=prescale, residual=res)
    return y.reshape(N, H, W, out_c)


def dw_conv_bn_silu_fwd(x, p):
    """Depthwise conv (groups == channels) + folded BN + SiLU."""
    N, H, W, C = x.shape
    k, stride = p["k"], p["stride"]
    patches, Ho, Wo = im2col(x, k, stride)            # (KK, N, Ho, Wo, C)
    pm = patches.reshape(k * k, N * Ho * Wo, C)
    wm = p["w"].reshape(C, k * k).T                   # (KK, C)
    y = dw_conv_call(pm, wm, p["scale"], p["shift"])
    return y.reshape(N, Ho, Wo, C)


def se_scales(x, se):
    """Squeeze-excite: returns per-(batch,channel) sigmoid scale (N,1,C)."""
    N, H, W, C = x.shape
    pooled = global_avg_pool(x.reshape(N, H * W, C))          # (N, C) f32
    sq = se["squeeze_c"]
    w1 = se["w_reduce"].reshape(sq, C).T                      # (C, sq)
    s1 = fused_matmul(pooled.reshape(1, N, C), w1,
                      jnp.ones((sq,), jnp.float32), se["b_reduce"], "silu",
                      out_dtype=jnp.float32)[0]               # (N, sq)
    w2 = se["w_expand"].reshape(C, sq).T                      # (sq, C)
    s2 = fused_matmul(s1.reshape(1, N, sq), w2,
                      jnp.ones((C,), jnp.float32), se["b_expand"], "sigmoid",
                      out_dtype=jnp.float32)[0]               # (N, C)
    return s2.reshape(N, 1, C)


def fused_mbconv_fwd(x, b):
    residual = x if b["has_shortcut"] else None   # DropPath is identity at inference
    if b["has_expansion"]:
        r = conv_bn_act_fwd(x, b["expand_conv"], "silu")
        return conv_bn_act_fwd(r, b["project_conv"], "identity", residual=residual)
    return conv_bn_act_fwd(x, b["project_conv"], "silu", residual=residual)


def mbconv_fwd(x, b):
    residual = x if b["has_shortcut"] else None
    r = conv_bn_act_fwd(x, b["expand_conv"], "silu")
    r = dw_conv_bn_silu_fwd(r, b["dwconv"])
    if b["se"] is not None:
        s = se_scales(r, b["se"])
        return conv1x1_prescale_fwd(r, b["project_conv"], s, residual=residual)
    return conv_bn_act_fwd(r, b["project_conv"], "identity", residual=residual)


def head_fwd(x, head):
    x = conv_bn_act_fwd(x, head["project_conv"], "silu")
    N, H, W, C = x.shape
    pooled = global_avg_pool(x.reshape(N, H * W, C))          # avgpool + flatten, f32
    # Dropout is identity at inference.
    num_classes = head["w_fc"].shape[0]
    logits = fused_matmul(pooled.reshape(1, N, C), head["w_fc"].T,
                          jnp.ones((num_classes,), jnp.float32), head["b_fc"],
                          "identity", out_dtype=jnp.float32)[0]
    return logits


def efficientnetv2_forward(x_nchw, params):
    x = jnp.transpose(x_nchw, (0, 2, 3, 1)).astype(jnp.bfloat16)  # NCHW -> NHWC, bf16
    x = conv_bn_act_fwd(x, params["stem"], "silu")
    for b in params["blocks"]:
        x = fused_mbconv_fwd(x, b) if b["type"] == "fused" else mbconv_fwd(x, b)
    return head_fwd(x, params["head"])


# ----------------------------------------------------------------------------
# Parameter construction (inference-folded BatchNorm)
# ----------------------------------------------------------------------------

class ParamGen:
    def __init__(self, seed=0):
        self.key = jax.random.PRNGKey(seed)

    def next(self):
        self.key, sub = jax.random.split(self.key)
        return sub


def kaiming_conv(key, out_c, in_c_per_group, k):
    fan_out = out_c * k * k
    std = math.sqrt(2.0 / fan_out)
    return (std * jax.random.normal(key, (out_c, in_c_per_group, k, k))).astype(jnp.float32)


def make_convbnact(pg, in_c, out_c, k, stride, groups=1, eps=1e-3):
    w = kaiming_conv(pg.next(), out_c, in_c // groups, k)
    gamma = jnp.ones((out_c,), jnp.float32)
    beta = jnp.zeros((out_c,), jnp.float32)
    running_mean = jnp.zeros((out_c,), jnp.float32)
    running_var = jnp.ones((out_c,), jnp.float32)
    scale = gamma / jnp.sqrt(running_var + eps)
    shift = beta - running_mean * scale
    return {"w": w, "scale": scale, "shift": shift, "k": k, "stride": stride, "groups": groups}


def build_efficientnetv2(model_cnf, num_classes=10, num_features=64, seed=0):
    pg = ParamGen(seed)
    eps = 1e-3
    params = {}
    stem_c = model_cnf[0][4]
    params["stem"] = make_convbnact(pg, 3, stem_c, 3, 2, eps=eps)

    blocks = []
    for cnf in model_cnf:
        assert len(cnf) == 8
        repeats = cnf[0]
        for i in range(repeats):
            k = cnf[1]
            input_c = cnf[4] if i == 0 else cnf[5]
            out_c = cnf[5]
            expand_ratio = cnf[3]
            stride = cnf[2] if i == 0 else 1
            se_ratio = cnf[7]
            expanded_c = input_c * expand_ratio
            if cnf[6] == 0:  # FusedMBConv
                assert se_ratio == 0
                b = {"type": "fused",
                     "has_shortcut": stride == 1 and input_c == out_c,
                     "has_expansion": expand_ratio != 1}
                if b["has_expansion"]:
                    b["expand_conv"] = make_convbnact(pg, input_c, expanded_c, k, stride, eps=eps)
                    b["project_conv"] = make_convbnact(pg, expanded_c, out_c, 1, 1, eps=eps)
                else:
                    b["project_conv"] = make_convbnact(pg, input_c, out_c, k, stride, eps=eps)
            else:  # MBConv
                assert expand_ratio != 1
                b = {"type": "mb",
                     "has_shortcut": stride == 1 and input_c == out_c}
                b["expand_conv"] = make_convbnact(pg, input_c, expanded_c, 1, 1, eps=eps)
                b["dwconv"] = make_convbnact(pg, expanded_c, expanded_c, k, stride,
                                             groups=expanded_c, eps=eps)
                if se_ratio > 0:
                    squeeze_c = int(input_c * se_ratio)
                    b["se"] = {
                        "squeeze_c": squeeze_c,
                        "w_reduce": kaiming_conv(pg.next(), squeeze_c, expanded_c, 1),
                        "b_reduce": jnp.zeros((squeeze_c,), jnp.float32),
                        "w_expand": kaiming_conv(pg.next(), expanded_c, squeeze_c, 1),
                        "b_expand": jnp.zeros((expanded_c,), jnp.float32),
                    }
                else:
                    b["se"] = None
                b["project_conv"] = make_convbnact(pg, expanded_c, out_c, 1, 1, eps=eps)
            blocks.append(b)
    params["blocks"] = blocks

    head_input_c = model_cnf[-1][-3]
    params["head"] = {
        "project_conv": make_convbnact(pg, head_input_c, num_features, 1, 1, eps=eps),
        "w_fc": (0.01 * jax.random.normal(pg.next(), (num_classes, num_features))).astype(jnp.float32),
        "b_fc": jnp.zeros((num_classes,), jnp.float32),
    }
    return params


# ----------------------------------------------------------------------------
# Demo
# ----------------------------------------------------------------------------

if __name__ == "__main__":
    # small synthetic config:
    # [repeats, kernel, stride, expand_ratio, input_c, out_c, op(0=Fused,1=MBConv), se_ratio]
    model_cnf = [
        [1, 3, 1, 1, 8, 8, 0, 0.0],     # FusedMBConv, no expansion, shortcut
        [1, 3, 2, 2, 8, 16, 0, 0.0],    # FusedMBConv with expansion, stride 2
        [1, 3, 1, 4, 16, 16, 1, 0.25],  # MBConv with SE, shortcut
    ]
    params = build_efficientnetv2(model_cnf, num_classes=10, num_features=64, seed=0)

    x = jax.random.normal(jax.random.PRNGKey(0), (2, 3, 16, 16), jnp.float32)  # NCHW
    fwd = jax.jit(lambda xin: efficientnetv2_forward(xin, params))
    out = jax.block_until_ready(fwd(x))
    assert out.shape == (2, 10)
    # TODO(synk): training-mode BatchNorm batch statistics / Dropout / DropPath randomness
    # are not reproduced (inference semantics implemented).
    print("KERNEL_OK")
</pallas_src>

<mosaic_0001>
module attributes {stable_mosaic.version = 11 : i64} {
  func.func @kernel(%arg0: i32, %arg1: i32, %arg2: i32, %arg3: i32, %arg4: memref<1x128x128xbf16, #tpu.memory_space<vmem>>, %arg5: memref<128x128xbf16, #tpu.memory_space<vmem>>, %arg6: memref<1x128xf32, #tpu.memory_space<vmem>>, %arg7: memref<1x128xf32, #tpu.memory_space<vmem>>, %arg8: memref<1x128x128xbf16, #tpu.memory_space<vmem>>, %arg9: memref<128x128xf32, #tpu.memory_space<vmem>>) attributes {dimension_semantics = [#tpu.dimension_semantics<parallel>, #tpu.dimension_semantics<parallel>, #tpu.dimension_semantics<parallel>, #tpu.dimension_semantics<arbitrary>], iteration_bounds = array<i64: 1, 1, 1, 1>, scalar_prefetch = 0 : i64, scratch_operands = 1 : i64, tpu.core_type = #tpu.core_type<tc>, window_params = [{transform_indices = @transform_0, window_bounds = array<i64: 1, 128, 128>}, {transform_indices = @transform_1, window_bounds = array<i64: 128, 128>}, {transform_indices = @transform_2, window_bounds = array<i64: 1, 128>}, {transform_indices = @transform_3, window_bounds = array<i64: 1, 128>}, {transform_indices = @transform_4, window_bounds = array<i64: 1, 128, 128>}]} {
    %c0_i32 = arith.constant 0 : i32
    %0 = arith.cmpi eq, %arg3, %c0_i32 : i32
    %1 = arith.extui %0 : i1 to i32
    %c0_i32_0 = arith.constant 0 : i32
    %2 = arith.cmpi ne, %1, %c0_i32_0 : i32
    scf.if %2 {
      %cst_11 = arith.constant 0.000000e+00 : f32
      %13 = vector.broadcast %cst_11 : f32 to vector<128x128xf32>
      %c0_12 = arith.constant 0 : index
      %c0_13 = arith.constant 0 : index
      %14 = vector.load %arg9[%c0_12, %c0_13] : memref<128x128xf32, #tpu.memory_space<vmem>>, vector<128x128xf32>
      tpu.vector_store %arg9[%c0_12, %c0_13], %13 {strides = array<i32>} : memref<128x128xf32, #tpu.memory_space<vmem>>, vector<128x128xf32>,
    } else {
    }
    %c0 = arith.constant 0 : index
    %c0_1 = arith.constant 0 : index
    %c0_2 = arith.constant 0 : index
    %3 = vector.load %arg4[%c0, %c0_1, %c0_2] : memref<1x128x128xbf16, #tpu.memory_space<vmem>>, vector<1x128x128xbf16>
    %4 = vector.shape_cast %3 : vector<1x128x128xbf16> to vector<128x128xbf16>
    %c0_3 = arith.constant 0 : index
    %c0_4 = arith.constant 0 : index
    %5 = vector.load %arg9[%c0_3, %c0_4] : memref<128x128xf32, #tpu.memory_space<vmem>>, vector<128x128xf32>
    %c0_5 = arith.constant 0 : index
    %c0_6 = arith.constant 0 : index
    %6 = vector.load %arg5[%c0_5, %c0_6] : memref<128x128xbf16, #tpu.memory_space<vmem>>, vector<128x128xbf16>
    %cst = arith.constant dense<0.000000e+00> : vector<128x128xf32>
    %7 = tpu.matmul %4, %6, %cst {dimension_numbers = #tpu.dot_dimension_numbers<[1], [0], [0], [1], [0, 0, 1, 1], [], []>} : vector<128x128xbf16>, vector<128x128xbf16>, vector<128x128xf32> -> vector<128x128xf32>
    %8 = arith.addf %5, %7 : vector<128x128xf32>
    %c0_7 = arith.constant 0 : index
    %c0_8 = arith.constant 0 : index
    %9 = vector.load %arg9[%c0_7, %c0_8] : memref<128x128xf32, #tpu.memory_space<vmem>>, vector<128x128xf32>
    tpu.vector_store %arg9[%c0_7, %c0_8], %8 {strides = array<i32>} : memref<128x128xf32, #tpu.memory_space<vmem>>, vector<128x128xf32>,
    %c0_i32_9 = arith.constant 0 : i32
    %10 = arith.cmpi eq, %arg3, %c0_i32_9 : i32
    %11 = arith.extui %10 : i1 to i32
    %c0_i32_10 = arith.constant 0 : i32
    %12 = arith.cmpi ne, %11, %c0_i32_10 : i32
    scf.if %12 {
      %c0_11 = arith.constant 0 : index
      %c0_12 = arith.constant 0 : index
      %13 = vector.load %arg9[%c0_11, %c0_12] : memref<128x128xf32, #tpu.memory_space<vmem>>, vector<128x128xf32>
      %c0_13 = arith.constant 0 : index
      %c0_14 = arith.constant 0 : index
      %14 = vector.load %arg6[%c0_13, %c0_14] : memref<1x128xf32, #tpu.memory_space<vmem>>, vector<1x128xf32>
      %15 = vector.broadcast %14 : vector<1x128xf32> to vector<128x128xf32>
      %16 = arith.mulf %13, %15 : vector<128x128xf32>
      %c0_15 = arith.constant 0 : index
      %c0_16 = arith.constant 0 : index
      %17 = vector.load %arg7[%c0_15, %c0_16] : memref<1x128xf32, #tpu.memory_space<vmem>>, vector<1x128xf32>
      %18 = vector.broadcast %17 : vector<1x128xf32> to vector<128x128xf32>
      %19 = arith.addf %16, %18 : vector<128x128xf32>
      %20 = arith.negf %19 : vector<128x128xf32>
      %21 = math.exp %20 : vector<128x128xf32>
      %cst_17 = arith.constant 1.000000e+00 : f32
      %22 = vector.broadcast %cst_17 : f32 to vector<128x128xf32>
      %23 = arith.addf %22, %21 : vector<128x128xf32>
      %24 = arith.divf %22, %23 : vector<128x128xf32>
      %25 = arith.mulf %19, %24 : vector<128x128xf32>
      %26 = arith.truncf %25 : vector<128x128xf32> to vector<128x128xbf16>
      %c0_18 = arith.constant 0 : index
      %c0_19 = arith.constant 0 : index
      %c0_20 = arith.constant 0 : index
      %27 = vector.load %arg8[%c0_18, %c0_19, %c0_20] : memref<1x128x128xbf16, #tpu.memory_space<vmem>>, vector<1x128x128xbf16>
      %28 = vector.shape_cast %27 : vector<1x128x128xbf16> to vector<128x128xbf16>
      %29 = vector.shape_cast %26 : vector<128x128xbf16> to vector<1x128x128xbf16>
      tpu.vector_store %arg8[%c0_18, %c0_19, %c0_20], %29 {strides = array<i32>} : memref<1x128x128xbf16, #tpu.memory_space<vmem>>, vector<1x128x128xbf16>,
    } else {
    }
    return
  }
  func.func @transform_0(%arg0: i32, %arg1: i32, %arg2: i32, %arg3: i32) -> (i32, i32, i32) {
    %c0_i32 = arith.constant 0 : i32
    return %arg0, %arg1, %arg3 : i32, i32, i32
  }
  func.func @transform_1(%arg0: i32, %arg1: i32, %arg2: i32, %arg3: i32) -> (i32, i32) {
    %c0_i32 = arith.constant 0 : i32
    return %arg3, %arg2 : i32, i32
  }
  func.func @transform_2(%arg0: i32, %arg1: i32, %arg2: i32, %arg3: i32) -> (i32, i32) {
    %c0_i32 = arith.constant 0 : i32
    %c0_i32_0 = arith.constant 0 : i32
    return %c0_i32, %arg2 : i32, i32
  }
  func.func @transform_3(%arg0: i32, %arg1: i32, %arg2: i32, %arg3: i32) -> (i32, i32) {
    %c0_i32 = arith.constant 0 : i32
    %c0_i32_0 = arith.constant 0 : i32
    return %c0_i32, %arg2 : i32, i32
  }
  func.func @transform_4(%arg0: i32, %arg1: i32, %arg2: i32, %arg3: i32) -> (i32, i32, i32) {
    %c0_i32 = arith.constant 0 : i32
    return %arg0, %arg1, %arg2 : i32, i32, i32
  }
}

module attributes {stable_mosaic.version = 11 : i64} {
  func.func @kernel(%arg0: i32, %arg1: i32, %arg2: i32, %arg3: i32, %arg4: memref<1x128x128xbf16, #tpu.memory_space<vmem>>, %arg5: memref<128x128xbf16, #tpu.memory_space<vmem>>, %arg6: memref<1x128xf32, #tpu.memory_space<vmem>>, %arg7: memref<1x128xf32, #tpu.memory_space<vmem>>, %arg8: memref<1x128x128xbf16, #tpu.memory_space<vmem>>, %arg9: memref<1x128x128xbf16, #tpu.memory_space<vmem>>, %arg10: memref<128x128xf32, #tpu.memory_space<vmem>>) attributes {dimension_semantics = [#tpu.dimension_semantics<parallel>, #tpu.dimension_semantics<parallel>, #tpu.dimension_semantics<parallel>, #tpu.dimension_semantics<arbitrary>], iteration_bounds = array<i64: 1, 1, 1, 1>, scalar_prefetch = 0 : i64, scratch_operands = 1 : i64, tpu.core_type = #tpu.core_type<tc>, window_params = [{transform_indices = @transform_0, window_bounds = array<i64: 1, 128, 128>}, {transform_indices = @transform_1, window_bounds = array<i64: 128, 128>}, {transform_indices = @transform_2, window_bounds = array<i64: 1, 128>}, {transform_indices = @transform_3, window_bounds = array<i64: 1, 128>}, {transform_indices = @transform_4, window_bounds = array<i64: 1, 128, 128>}, {transform_indices = @transform_5, window_bounds = array<i64: 1, 128, 128>}]} {
    %c0_i32 = arith.constant 0 : i32
    %0 = arith.cmpi eq, %arg3, %c0_i32 : i32
    %1 = arith.extui %0 : i1 to i32
    %c0_i32_0 = arith.constant 0 : i32
    %2 = arith.cmpi ne, %1, %c0_i32_0 : i32
    scf.if %2 {
      %cst_11 = arith.constant 0.000000e+00 : f32
      %13 = vector.broadcast %cst_11 : f32 to vector<128x128xf32>
      %c0_12 = arith.constant 0 : index
      %c0_13 = arith.constant 0 : index
      %14 = vector.load %arg10[%c0_12, %c0_13] : memref<128x128xf32, #tpu.memory_space<vmem>>, vector<128x128xf32>
      tpu.vector_store %arg10[%c0_12, %c0_13], %13 {strides = array<i32>} : memref<128x128xf32, #tpu.memory_space<vmem>>, vector<128x128xf32>,
    } else {
    }
    %c0 = arith.constant 0 : index
    %c0_1 = arith.constant 0 : index
    %c0_2 = arith.constant 0 : index
    %3 = vector.load %arg4[%c0, %c0_1, %c0_2] : memref<1x128x128xbf16, #tpu.memory_space<vmem>>, vector<1x128x128xbf16>
    %4 = vector.shape_cast %3 : vector<1x128x128xbf16> to vector<128x128xbf16>
    %c0_3 = arith.constant 0 : index
    %c0_4 = arith.constant 0 : index
    %5 = vector.load %arg10[%c0_3, %c0_4] : memref<128x128xf32, #tpu.memory_space<vmem>>, vector<128x128xf32>
    %c0_5 = arith.constant 0 : index
    %c0_6 = arith.constant 0 : index
    %6 = vector.load %arg5[%c0_5, %c0_6] : memref<128x128xbf16, #tpu.memory_space<vmem>>, vector<128x128xbf16>
    %cst = arith.constant dense<0.000000e+00> : vector<128x128xf32>
    %7 = tpu.matmul %4, %6, %cst {dimension_numbers = #tpu.dot_dimension_numbers<[1], [0], [0], [1], [0, 0, 1, 1], [], []>} : vector<128x128xbf16>, vector<128x128xbf16>, vector<128x128xf32> -> vector<128x128xf32>
    %8 = arith.addf %5, %7 : vector<128x128xf32>
    %c0_7 = arith.constant 0 : index
    %c0_8 = arith.constant 0 : index
    %9 = vector.load %arg10[%c0_7, %c0_8] : memref<128x128xf32, #tpu.memory_space<vmem>>, vector<128x128xf32>
    tpu.vector_store %arg10[%c0_7, %c0_8], %8 {strides = array<i32>} : memref<128x128xf32, #tpu.memory_space<vmem>>, vector<128x128xf32>,
    %c0_i32_9 = arith.constant 0 : i32
    %10 = arith.cmpi eq, %arg3, %c0_i32_9 : i32
    %11 = arith.extui %10 : i1 to i32
    %c0_i32_10 = arith.constant 0 : i32
    %12 = arith.cmpi ne, %11, %c0_i32_10 : i32
    scf.if %12 {
      %c0_11 = arith.constant 0 : index
      %c0_12 = arith.constant 0 : index
      %13 = vector.load %arg10[%c0_11, %c0_12] : memref<128x128xf32, #tpu.memory_space<vmem>>, vector<128x128xf32>
      %c0_13 = arith.constant 0 : index
      %c0_14 = arith.constant 0 : index
      %14 = vector.load %arg6[%c0_13, %c0_14] : memref<1x128xf32, #tpu.memory_space<vmem>>, vector<1x128xf32>
      %15 = vector.broadcast %14 : vector<1x128xf32> to vector<128x128xf32>
      %16 = arith.mulf %13, %15 : vector<128x128xf32>
      %c0_15 = arith.constant 0 : index
      %c0_16 = arith.constant 0 : index
      %17 = vector.load %arg7[%c0_15, %c0_16] : memref<1x128xf32, #tpu.memory_space<vmem>>, vector<1x128xf32>
      %18 = vector.broadcast %17 : vector<1x128xf32> to vector<128x128xf32>
      %19 = arith.addf %16, %18 : vector<128x128xf32>
      %20 = arith.negf %19 : vector<128x128xf32>
      %21 = math.exp %20 : vector<128x128xf32>
      %cst_17 = arith.constant 1.000000e+00 : f32
      %22 = vector.broadcast %cst_17 : f32 to vector<128x128xf32>
      %23 = arith.addf %22, %21 : vector<128x128xf32>
      %24 = arith.divf %22, %23 : vector<128x128xf32>
      %25 = arith.mulf %19, %24 : vector<128x128xf32>
      %c0_18 = arith.constant 0 : index
      %c0_19 = arith.constant 0 : index
      %c0_20 = arith.constant 0 : index
      %26 = vector.load %arg8[%c0_18, %c0_19, %c0_20] : memref<1x128x128xbf16, #tpu.memory_space<vmem>>, vector<1x128x128xbf16>
      %27 = vector.shape_cast %26 : vector<1x128x128xbf16> to vector<128x128xbf16>
      %28 = arith.extf %27 : vector<128x128xbf16> to vector<128x128xf32>
      %29 = arith.addf %25, %28 : vector<128x128xf32>
      %30 = arith.truncf %29 : vector<128x128xf32> to vector<128x128xbf16>
      %c0_21 = arith.constant 0 : index
      %c0_22 = arith.constant 0 : index
      %c0_23 = arith.constant 0 : index
      %31 = vector.load %arg9[%c0_21, %c0_22, %c0_23] : memref<1x128x128xbf16, #tpu.memory_space<vmem>>, vector<1x128x128xbf16>
      %32 = vector.shape_cast %31 : vector<1x128x128xbf16> to vector<128x128xbf16>
      %33 = vector.shape_cast %30 : vector<128x128xbf16> to vector<1x128x128xbf16>
      tpu.vector_store %arg9[%c0_21, %c0_22, %c0_23], %33 {strides = array<i32>} : memref<1x128x128xbf16, #tpu.memory_space<vmem>>, vector<1x128x128xbf16>,
    } else {
    }
    return
  }
  func.func @transform_0(%arg0: i32, %arg1: i32, %arg2: i32, %arg3: i32) -> (i32, i32, i32) {
    %c0_i32 = arith.constant 0 : i32
    return %arg0, %arg1, %arg3 : i32, i32, i32
  }
  func.func @transform_1(%arg0: i32, %arg1: i32, %arg2: i32, %arg3: i32) -> (i32, i32) {
    %c0_i32 = arith.constant 0 : i32
    return %arg3, %arg2 : i32, i32
  }
  func.func @transform_2(%arg0: i32, %arg1: i32, %arg2: i32, %arg3: i32) -> (i32, i32) {
    %c0_i32 = arith.constant 0 : i32
    %c0_i32_0 = arith.constant 0 : i32
    return %c0_i32, %arg2 : i32, i32
  }
  func.func @transform_3(%arg0: i32, %arg1: i32, %arg2: i32, %arg3: i32) -> (i32, i32) {
    %c0_i32 = arith.constant 0 : i32
    %c0_i32_0 = arith.constant 0 : i32
    return %c0_i32, %arg2 : i32, i32
  }
  func.func @transform_4(%arg0: i32, %arg1: i32, %arg2: i32, %arg3: i32) -> (i32, i32, i32) {
    %c0_i32 = arith.constant 0 : i32
    return %arg0, %arg1, %arg2 : i32, i32, i32
  }
  func.func @transform_5(%arg0: i32, %arg1: i32, %arg2: i32, %arg3: i32) -> (i32, i32, i32) {
    %c0_i32 = arith.constant 0 : i32
    return %arg0, %arg1, %arg2 : i32, i32, i32
  }
}

module attributes {stable_mosaic.version = 11 : i64} {
  func.func @kernel(%arg0: i32, %arg1: i32, %arg2: i32, %arg3: i32, %arg4: memref<1x32x128xbf16, #tpu.memory_space<vmem>>, %arg5: memref<128x128xbf16, #tpu.memory_space<vmem>>, %arg6: memref<1x128xf32, #tpu.memory_space<vmem>>, %arg7: memref<1x128xf32, #tpu.memory_space<vmem>>, %arg8: memref<1x32x128xbf16, #tpu.memory_space<vmem>>, %arg9: memref<32x128xf32, #tpu.memory_space<vmem>>) attributes {dimension_semantics = [#tpu.dimension_semantics<parallel>, #tpu.dimension_semantics<parallel>, #tpu.dimension_semantics<parallel>, #tpu.dimension_semantics<arbitrary>], iteration_bounds = array<i64: 1, 1, 1, 1>, scalar_prefetch = 0 : i64, scratch_operands = 1 : i64, tpu.core_type = #tpu.core_type<tc>, window_params = [{transform_indices = @transform_0, window_bounds = array<i64: 1, 32, 128>}, {transform_indices = @transform_1, window_bounds = array<i64: 128, 128>}, {transform_indices = @transform_2, window_bounds = array<i64: 1, 128>}, {transform_indices = @transform_3, window_bounds = array<i64: 1, 128>}, {transform_indices = @transform_4, window_bounds = array<i64: 1, 32, 128>}]} {
    %c0_i32 = arith.constant 0 : i32
    %0 = arith.cmpi eq, %arg3, %c0_i32 : i32
    %1 = arith.extui %0 : i1 to i32
    %c0_i32_0 = arith.constant 0 : i32
    %2 = arith.cmpi ne, %1, %c0_i32_0 : i32
    scf.if %2 {
      %cst_11 = arith.constant 0.000000e+00 : f32
      %13 = vector.broadcast %cst_11 : f32 to vector<32x128xf32>
      %c0_12 = arith.constant 0 : index
      %c0_13 = arith.constant 0 : index
      %14 = vector.load %arg9[%c0_12, %c0_13] : memref<32x128xf32, #tpu.memory_space<vmem>>, vector<32x128xf32>
      tpu.vector_store %arg9[%c0_12, %c0_13], %13 {strides = array<i32>} : memref<32x128xf32, #tpu.memory_space<vmem>>, vector<32x128xf32>,
    } else {
    }
    %c0 = arith.constant 0 : index
    %c0_1 = arith.constant 0 : index
    %c0_2 = arith.constant 0 : index
    %3 = vector.load %arg4[%c0, %c0_1, %c0_2] : memref<1x32x128xbf16, #tpu.memory_space<vmem>>, vector<1x32x128xbf16>
    %4 = vector.shape_cast %3 : vector<1x32x128xbf16> to vector<32x128xbf16>
    %c0_3 = arith.constant 0 : index
    %c0_4 = arith.constant 0 : index
    %5 = vector.load %arg9[%c0_3, %c0_4] : memref<32x128xf32, #tpu.memory_space<vmem>>, vector<32x128xf32>
    %c0_5 = arith.constant 0 : index
    %c0_6 = arith.constant 0 : index
    %6 = vector.load %arg5[%c0_5, %c0_6] : memref<128x128xbf16, #tpu.memory_space<vmem>>, vector<128x128xbf16>
    %cst = arith.constant dense<0.000000e+00> : vector<32x128xf32>
    %7 = tpu.matmul %4, %6, %cst {dimension_numbers = #tpu.dot_dimension_numbers<[1], [0], [0], [1], [0, 0, 1, 1], [], []>} : vector<32x128xbf16>, vector<128x128xbf16>, vector<32x128xf32> -> vector<32x128xf32>
    %8 = arith.addf %5, %7 : vector<32x128xf32>
    %c0_7 = arith.constant 0 : index
    %c0_8 = arith.constant 0 : index
    %9 = vector.load %arg9[%c0_7, %c0_8] : memref<32x128xf32, #tpu.memory_space<vmem>>, vector<32x128xf32>
    tpu.vector_store %arg9[%c0_7, %c0_8], %8 {strides = array<i32>} : memref<32x128xf32, #tpu.memory_space<vmem>>, vector<32x128xf32>,
    %c0_i32_9 = arith.constant 0 : i32
    %10 = arith.cmpi eq, %arg3, %c0_i32_9 : i32
    %11 = arith.extui %10 : i1 to i32
    %c0_i32_10 = arith.constant 0 : i32
    %12 = arith.cmpi ne, %11, %c0_i32_10 : i32
    scf.if %12 {
      %c0_11 = arith.constant 0 : index
      %c0_12 = arith.constant 0 : index
      %13 = vector.load %arg9[%c0_11, %c0_12] : memref<32x128xf32, #tpu.memory_space<vmem>>, vector<32x128xf32>
      %c0_13 = arith.constant 0 : index
      %c0_14 = arith.constant 0 : index
      %14 = vector.load %arg6[%c0_13, %c0_14] : memref<1x128xf32, #tpu.memory_space<vmem>>, vector<1x128xf32>
      %15 = vector.broadcast %14 : vector<1x128xf32> to vector<32x128xf32>
      %16 = arith.mulf %13, %15 : vector<32x128xf32>
      %c0_15 = arith.constant 0 : index
      %c0_16 = arith.constant 0 : index
      %17 = vector.load %arg7[%c0_15, %c0_16] : memref<1x128xf32, #tpu.memory_space<vmem>>, vector<1x128xf32>
      %18 = vector.broadcast %17 : vector<1x128xf32> to vector<32x128xf32>
      %19 = arith.addf %16, %18 : vector<32x128xf32>
      %20 = arith.negf %19 : vector<32x128xf32>
      %21 = math.exp %20 : vector<32x128xf32>
      %cst_17 = arith.constant 1.000000e+00 : f32
      %22 = vector.broadcast %cst_17 : f32 to vector<32x128xf32>
      %23 = arith.addf %22, %21 : vector<32x128xf32>
      %24 = arith.divf %22, %23 : vector<32x128xf32>
      %25 = arith.mulf %19, %24 : vector<32x128xf32>
      %26 = arith.truncf %25 : vector<32x128xf32> to vector<32x128xbf16>
      %c0_18 = arith.constant 0 : index
      %c0_19 = arith.constant 0 : index
      %c0_20 = arith.constant 0 : index
      %27 = vector.load %arg8[%c0_18, %c0_19, %c0_20] : memref<1x32x128xbf16, #tpu.memory_space<vmem>>, vector<1x32x128xbf16>
      %28 = vector.shape_cast %27 : vector<1x32x128xbf16> to vector<32x128xbf16>
      %29 = vector.shape_cast %26 : vector<32x128xbf16> to vector<1x32x128xbf16>
      tpu.vector_store %arg8[%c0_18, %c0_19, %c0_20], %29 {strides = array<i32>} : memref<1x32x128xbf16, #tpu.memory_space<vmem>>, vector<1x32x128xbf16>,
    } else {
    }
    return
  }
  func.func @transform_0(%arg0: i32, %arg1: i32, %arg2: i32, %arg3: i32) -> (i32, i32, i32) {
    %c0_i32 = arith.constant 0 : i32
    return %arg0, %arg1, %arg3 : i32, i32, i32
  }
  func.func @transform_1(%arg0: i32, %arg1: i32, %arg2: i32, %arg3: i32) -> (i32, i32) {
    %c0_i32 = arith.constant 0 : i32
    return %arg3, %arg2 : i32, i32
  }
  func.func @transform_2(%arg0: i32, %arg1: i32, %arg2: i32, %arg3: i32) -> (i32, i32) {
    %c0_i32 = arith.constant 0 : i32
    %c0_i32_0 = arith.constant 0 : i32
    return %c0_i32, %arg2 : i32, i32
  }
  func.func @transform_3(%arg0: i32, %arg1: i32, %arg2: i32, %arg3: i32) -> (i32, i32) {
    %c0_i32 = arith.constant 0 : i32
    %c0_i32_0 = arith.constant 0 : i32
    return %c0_i32, %arg2 : i32, i32
  }
  func.func @transform_4(%arg0: i32, %arg1: i32, %arg2: i32, %arg3: i32) -> (i32, i32, i32) {
    %c0_i32 = arith.constant 0 : i32
    return %arg0, %arg1, %arg2 : i32, i32, i32
  }
}

module attributes {stable_mosaic.version = 11 : i64} {
  func.func @kernel(%arg0: i32, %arg1: i32, %arg2: i32, %arg3: i32, %arg4: memref<1x32x128xbf16, #tpu.memory_space<vmem>>, %arg5: memref<128x128xbf16, #tpu.memory_space<vmem>>, %arg6: memref<1x128xf32, #tpu.memory_space<vmem>>, %arg7: memref<1x128xf32, #tpu.memory_space<vmem>>, %arg8: memref<1x32x128xbf16, #tpu.memory_space<vmem>>, %arg9: memref<32x128xf32, #tpu.memory_space<vmem>>) attributes {dimension_semantics = [#tpu.dimension_semantics<parallel>, #tpu.dimension_semantics<parallel>, #tpu.dimension_semantics<parallel>, #tpu.dimension_semantics<arbitrary>], iteration_bounds = array<i64: 1, 1, 1, 1>, scalar_prefetch = 0 : i64, scratch_operands = 1 : i64, tpu.core_type = #tpu.core_type<tc>, window_params = [{transform_indices = @transform_0, window_bounds = array<i64: 1, 32, 128>}, {transform_indices = @transform_1, window_bounds = array<i64: 128, 128>}, {transform_indices = @transform_2, window_bounds = array<i64: 1, 128>}, {transform_indices = @transform_3, window_bounds = array<i64: 1, 128>}, {transform_indices = @transform_4, window_bounds = array<i64: 1, 32, 128>}]} {
    %c0_i32 = arith.constant 0 : i32
    %0 = arith.cmpi eq, %arg3, %c0_i32 : i32
    %1 = arith.extui %0 : i1 to i32
    %c0_i32_0 = arith.constant 0 : i32
    %2 = arith.cmpi ne, %1, %c0_i32_0 : i32
    scf.if %2 {
      %cst_11 = arith.constant 0.000000e+00 : f32
      %13 = vector.broadcast %cst_11 : f32 to vector<32x128xf32>
      %c0_12 = arith.constant 0 : index
      %c0_13 = arith.constant 0 : index
      %14 = vector.load %arg9[%c0_12, %c0_13] : memref<32x128xf32, #tpu.memory_space<vmem>>, vector<32x128xf32>
      tpu.vector_store %arg9[%c0_12, %c0_13], %13 {strides = array<i32>} : memref<32x128xf32, #tpu.memory_space<vmem>>, vector<32x128xf32>,
    } else {
    }
    %c0 = arith.constant 0 : index
    %c0_1 = arith.constant 0 : index
    %c0_2 = arith.constant 0 : index
    %3 = vector.load %arg4[%c0, %c0_1, %c0_2] : memref<1x32x128xbf16, #tpu.memory_space<vmem>>, vector<1x32x128xbf16>
    %4 = vector.shape_cast %3 : vector<1x32x128xbf16> to vector<32x128xbf16>
    %c0_3 = arith.constant 0 : index
    %c0_4 = arith.constant 0 : index
    %5 = vector.load %arg9[%c0_3, %c0_4] : memref<32x128xf32, #tpu.memory_space<vmem>>, vector<32x128xf32>
    %c0_5 = arith.constant 0 : index
    %c0_6 = arith.constant 0 : index
    %6 = vector.load %arg5[%c0_5, %c0_6] : memref<128x128xbf16, #tpu.memory_space<vmem>>, vector<128x128xbf16>
    %cst = arith.constant dense<0.000000e+00> : vector<32x128xf32>
    %7 = tpu.matmul %4, %6, %cst {dimension_numbers = #tpu.dot_dimension_numbers<[1], [0], [0], [1], [0, 0, 1, 1], [], []>} : vector<32x128xbf16>, vector<128x128xbf16>, vector<32x128xf32> -> vector<32x128xf32>
    %8 = arith.addf %5, %7 : vector<32x128xf32>
    %c0_7 = arith.constant 0 : index
    %c0_8 = arith.constant 0 : index
    %9 = vector.load %arg9[%c0_7, %c0_8] : memref<32x128xf32, #tpu.memory_space<vmem>>, vector<32x128xf32>
    tpu.vector_store %arg9[%c0_7, %c0_8], %8 {strides = array<i32>} : memref<32x128xf32, #tpu.memory_space<vmem>>, vector<32x128xf32>,
    %c0_i32_9 = arith.constant 0 : i32
    %10 = arith.cmpi eq, %arg3, %c0_i32_9 : i32
    %11 = arith.extui %10 : i1 to i32
    %c0_i32_10 = arith.constant 0 : i32
    %12 = arith.cmpi ne, %11, %c0_i32_10 : i32
    scf.if %12 {
      %c0_11 = arith.constant 0 : index
      %c0_12 = arith.constant 0 : index
      %13 = vector.load %arg9[%c0_11, %c0_12] : memref<32x128xf32, #tpu.memory_space<vmem>>, vector<32x128xf32>
      %c0_13 = arith.constant 0 : index
      %c0_14 = arith.constant 0 : index
      %14 = vector.load %arg6[%c0_13, %c0_14] : memref<1x128xf32, #tpu.memory_space<vmem>>, vector<1x128xf32>
      %15 = vector.broadcast %14 : vector<1x128xf32> to vector<32x128xf32>
      %16 = arith.mulf %13, %15 : vector<32x128xf32>
      %c0_15 = arith.constant 0 : index
      %c0_16 = arith.constant 0 : index
      %17 = vector.load %arg7[%c0_15, %c0_16] : memref<1x128xf32, #tpu.memory_space<vmem>>, vector<1x128xf32>
      %18 = vector.broadcast %17 : vector<1x128xf32> to vector<32x128xf32>
      %19 = arith.addf %16, %18 : vector<32x128xf32>
      %20 = arith.truncf %19 : vector<32x128xf32> to vector<32x128xbf16>
      %c0_17 = arith.constant 0 : index
      %c0_18 = arith.constant 0 : index
      %c0_19 = arith.constant 0 : index
      %21 = vector.load %arg8[%c0_17, %c0_18, %c0_19] : memref<1x32x128xbf16, #tpu.memory_space<vmem>>, vector<1x32x128xbf16>
      %22 = vector.shape_cast %21 : vector<1x32x128xbf16> to vector<32x128xbf16>
      %23 = vector.shape_cast %20 : vector<32x128xbf16> to vector<1x32x128xbf16>
      tpu.vector_store %arg8[%c0_17, %c0_18, %c0_19], %23 {strides = array<i32>} : memref<1x32x128xbf16, #tpu.memory_space<vmem>>, vector<1x32x128xbf16>,
    } else {
    }
    return
  }
  func.func @transform_0(%arg0: i32, %arg1: i32, %arg2: i32, %arg3: i32) -> (i32, i32, i32) {
    %c0_i32 = arith.constant 0 : i32
    return %arg0, %arg1, %arg3 : i32, i32, i32
  }
  func.func @transform_1(%arg0: i32, %arg1: i32, %arg2: i32, %arg3: i32) -> (i32, i32) {
    %c0_i32 = arith.constant 0 : i32
    return %arg3, %arg2 : i32, i32
  }
  func.func @transform_2(%arg0: i32, %arg1: i32, %arg2: i32, %arg3: i32) -> (i32, i32) {
    %c0_i32 = arith.constant 0 : i32
    %c0_i32_0 = arith.constant 0 : i32
    return %c0_i32, %arg2 : i32, i32
  }
  func.func @transform_3(%arg0: i32, %arg1: i32, %arg2: i32, %arg3: i32) -> (i32, i32) {
    %c0_i32 = arith.constant 0 : i32
    %c0_i32_0 = arith.constant 0 : i32
    return %c0_i32, %arg2 : i32, i32
  }
  func.func @transform_4(%arg0: i32, %arg1: i32, %arg2: i32, %arg3: i32) -> (i32, i32, i32) {
    %c0_i32 = arith.constant 0 : i32
    return %arg0, %arg1, %arg2 : i32, i32, i32
  }
}

module attributes {stable_mosaic.version = 11 : i64} {
  func.func @kernel(%arg0: i32, %arg1: memref<9x32x64xbf16, #tpu.memory_space<vmem>>, %arg2: memref<9x1x64xf32, #tpu.memory_space<vmem>>, %arg3: memref<1x64xf32, #tpu.memory_space<vmem>>, %arg4: memref<1x64xf32, #tpu.memory_space<vmem>>, %arg5: memref<32x64xbf16, #tpu.memory_space<vmem>>) attributes {dimension_semantics = [#tpu.dimension_semantics<parallel>], iteration_bounds = array<i64: 1>, scalar_prefetch = 0 : i64, scratch_operands = 0 : i64, tpu.core_type = #tpu.core_type<tc>, window_params = [{transform_indices = @transform_0, window_bounds = array<i64: 9, 32, 64>}, {pipeline_mode = #tpu.pipeline_mode<synchronous>, transform_indices = @transform_1, window_bounds = array<i64: 9, 1, 64>}, {pipeline_mode = #tpu.pipeline_mode<synchronous>, transform_indices = @transform_2, window_bounds = array<i64: 1, 64>}, {pipeline_mode = #tpu.pipeline_mode<synchronous>, transform_indices = @transform_3, window_bounds = array<i64: 1, 64>}, {transform_indices = @transform_4, window_bounds = array<i64: 32, 64>}]} {
    %c0 = arith.constant 0 : index
    %c0_0 = arith.constant 0 : index
    %c0_1 = arith.constant 0 : index
    %0 = vector.load %arg1[%c0, %c0_0, %c0_1] : memref<9x32x64xbf16, #tpu.memory_space<vmem>>, vector<1x32x64xbf16>
    %1 = vector.shape_cast %0 : vector<1x32x64xbf16> to vector<32x64xbf16>
    %2 = arith.extf %1 : vector<32x64xbf16> to vector<32x64xf32>
    %c0_2 = arith.constant 0 : index
    %c0_3 = arith.constant 0 : index
    %c0_4 = arith.constant 0 : index
    %3 = vector.load %arg2[%c0_2, %c0_3, %c0_4] : memref<9x1x64xf32, #tpu.memory_space<vmem>>, vector<1x1x64xf32>
    %4 = vector.shape_cast %3 : vector<1x1x64xf32> to vector<1x64xf32>
    %5 = vector.broadcast %4 : vector<1x64xf32> to vector<32x64xf32>
    %6 = arith.mulf %2, %5 : vector<32x64xf32>
    %c1 = arith.constant 1 : index
    %c0_5 = arith.constant 0 : index
    %c0_6 = arith.constant 0 : index
    %7 = vector.load %arg1[%c1, %c0_5, %c0_6] : memref<9x32x64xbf16, #tpu.memory_space<vmem>>, vector<1x32x64xbf16>
    %8 = vector.shape_cast %7 : vector<1x32x64xbf16> to vector<32x64xbf16>
    %9 = arith.extf %8 : vector<32x64xbf16> to vector<32x64xf32>
    %c1_7 = arith.constant 1 : index
    %c0_8 = arith.constant 0 : index
    %c0_9 = arith.constant 0 : index
    %10 = vector.load %arg2[%c1_7, %c0_8, %c0_9] : memref<9x1x64xf32, #tpu.memory_space<vmem>>, vector<1x1x64xf32>
    %11 = vector.shape_cast %10 : vector<1x1x64xf32> to vector<1x64xf32>
    %12 = vector.broadcast %11 : vector<1x64xf32> to vector<32x64xf32>
    %13 = arith.mulf %9, %12 : vector<32x64xf32>
    %14 = arith.addf %6, %13 : vector<32x64xf32>
    %c2 = arith.constant 2 : index
    %c0_10 = arith.constant 0 : index
    %c0_11 = arith.constant 0 : index
    %15 = vector.load %arg1[%c2, %c0_10, %c0_11] : memref<9x32x64xbf16, #tpu.memory_space<vmem>>, vector<1x32x64xbf16>
    %16 = vector.shape_cast %15 : vector<1x32x64xbf16> to vector<32x64xbf16>
    %17 = arith.extf %16 : vector<32x64xbf16> to vector<32x64xf32>
    %c2_12 = arith.constant 2 : index
    %c0_13 = arith.constant 0 : index
    %c0_14 = arith.constant 0 : index
    %18 = vector.load %arg2[%c2_12, %c0_13, %c0_14] : memref<9x1x64xf32, #tpu.memory_space<vmem>>, vector<1x1x64xf32>
    %19 = vector.shape_cast %18 : vector<1x1x64xf32> to vector<1x64xf32>
    %20 = vector.broadcast %19 : vector<1x64xf32> to vector<32x64xf32>
    %21 = arith.mulf %17, %20 : vector<32x64xf32>
    %22 = arith.addf %14, %21 : vector<32x64xf32>
    %c3 = arith.constant 3 : index
    %c0_15 = arith.constant 0 : index
    %c0_16 = arith.constant 0 : index
    %23 = vector.load %arg1[%c3, %c0_15, %c0_16] : memref<9x32x64xbf16, #tpu.memory_space<vmem>>, vector<1x32x64xbf16>
    %24 = vector.shape_cast %23 : vector<1x32x64xbf16> to vector<32x64xbf16>
    %25 = arith.extf %24 : vector<32x64xbf16> to vector<32x64xf32>
    %c3_17 = arith.constant 3 : index
    %c0_18 = arith.constant 0 : index
    %c0_19 = arith.constant 0 : index
    %26 = vector.load %arg2[%c3_17, %c0_18, %c0_19] : memref<9x1x64xf32, #tpu.memory_space<vmem>>, vector<1x1x64xf32>
    %27 = vector.shape_cast %26 : vector<1x1x64xf32> to vector<1x64xf32>
    %28 = vector.broadcast %27 : vector<1x64xf32> to vector<32x64xf32>
    %29 = arith.mulf %25, %28 : vector<32x64xf32>
    %30 = arith.addf %22, %29 : vector<32x64xf32>
    %c4 = arith.constant 4 : index
    %c0_20 = arith.constant 0 : index
    %c0_21 = arith.constant 0 : index
    %31 = vector.load %arg1[%c4, %c0_20, %c0_21] : memref<9x32x64xbf16, #tpu.memory_space<vmem>>, vector<1x32x64xbf16>
    %32 = vector.shape_cast %31 : vector<1x32x64xbf16> to vector<32x64xbf16>
    %33 = arith.extf %32 : vector<32x64xbf16> to vector<32x64xf32>
    %c4_22 = arith.constant 4 : index
    %c0_23 = arith.constant 0 : index
    %c0_24 = arith.constant 0 : index
    %34 = vector.load %arg2[%c4_22, %c0_23, %c0_24] : memref<9x1x64xf32, #tpu.memory_space<vmem>>, vector<1x1x64xf32>
    %35 = vector.shape_cast %34 : vector<1x1x64xf32> to vector<1x64xf32>
    %36 = vector.broadcast %35 : vector<1x64xf32> to vector<32x64xf32>
    %37 = arith.mulf %33, %36 : vector<32x64xf32>
    %38 = arith.addf %30, %37 : vector<32x64xf32>
    %c5 = arith.constant 5 : index
    %c0_25 = arith.constant 0 : index
    %c0_26 = arith.constant 0 : index
    %39 = vector.load %arg1[%c5, %c0_25, %c0_26] : memref<9x32x64xbf16, #tpu.memory_space<vmem>>, vector<1x32x64xbf16>
    %40 = vector.shape_cast %39 : vector<1x32x64xbf16> to vector<32x64xbf16>
    %41 = arith.extf %40 : vector<32x64xbf16> to vector<32x64xf32>
    %c5_27 = arith.constant 5 : index
    %c0_28 = arith.constant 0 : index
    %c0_29 = arith.constant 0 : index
    %42 = vector.load %arg2[%c5_27, %c0_28, %c0_29] : memref<9x1x64xf32, #tpu.memory_space<vmem>>, vector<1x1x64xf32>
    %43 = vector.shape_cast %42 : vector<1x1x64xf32> to vector<1x64xf32>
    %44 = vector.broadcast %43 : vector<1x64xf32> to vector<32x64xf32>
    %45 = arith.mulf %41, %44 : vector<32x64xf32>
    %46 = arith.addf %38, %45 : vector<32x64xf32>
    %c6 = arith.constant 6 : index
    %c0_30 = arith.constant 0 : index
    %c0_31 = arith.constant 0 : index
    %47 = vector.load %arg1[%c6, %c0_30, %c0_31] : memref<9x32x64xbf16, #tpu.memory_space<vmem>>, vector<1x32x64xbf16>
    %48 = vector.shape_cast %47 : vector<1x32x64xbf16> to vector<32x64xbf16>
    %49 = arith.extf %48 : vector<32x64xbf16> to vector<32x64xf32>
    %c6_32 = arith.constant 6 : index
    %c0_33 = arith.constant 0 : index
    %c0_34 = arith.constant 0 : index
    %50 = vector.load %arg2[%c6_32, %c0_33, %c0_34] : memref<9x1x64xf32, #tpu.memory_space<vmem>>, vector<1x1x64xf32>
    %51 = vector.shape_cast %50 : vector<1x1x64xf32> to vector<1x64xf32>
    %52 = vector.broadcast %51 : vector<1x64xf32> to vector<32x64xf32>
    %53 = arith.mulf %49, %52 : vector<32x64xf32>
    %54 = arith.addf %46, %53 : vector<32x64xf32>
    %c7 = arith.constant 7 : index
    %c0_35 = arith.constant 0 : index
    %c0_36 = arith.constant 0 : index
    %55 = vector.load %arg1[%c7, %c0_35, %c0_36] : memref<9x32x64xbf16, #tpu.memory_space<vmem>>, vector<1x32x64xbf16>
    %56 = vector.shape_cast %55 : vector<1x32x64xbf16> to vector<32x64xbf16>
    %57 = arith.extf %56 : vector<32x64xbf16> to vector<32x64xf32>
    %c7_37 = arith.constant 7 : index
    %c0_38 = arith.constant 0 : index
    %c0_39 = arith.constant 0 : index
    %58 = vector.load %arg2[%c7_37, %c0_38, %c0_39] : memref<9x1x64xf32, #tpu.memory_space<vmem>>, vector<1x1x64xf32>
    %59 = vector.shape_cast %58 : vector<1x1x64xf32> to vector<1x64xf32>
    %60 = vector.broadcast %59 : vector<1x64xf32> to vector<32x64xf32>
    %61 = arith.mulf %57, %60 : vector<32x64xf32>
    %62 = arith.addf %54, %61 : vector<32x64xf32>
    %c8 = arith.constant 8 : index
    %c0_40 = arith.constant 0 : index
    %c0_41 = arith.constant 0 : index
    %63 = vector.load %arg1[%c8, %c0_40, %c0_41] : memref<9x32x64xbf16, #tpu.memory_space<vmem>>, vector<1x32x64xbf16>
    %64 = vector.shape_cast %63 : vector<1x32x64xbf16> to vector<32x64xbf16>
    %65 = arith.extf %64 : vector<32x64xbf16> to vector<32x64xf32>
    %c8_42 = arith.constant 8 : index
    %c0_43 = arith.constant 0 : index
    %c0_44 = arith.constant 0 : index
    %66 = vector.load %arg2[%c8_42, %c0_43, %c0_44] : memref<9x1x64xf32, #tpu.memory_space<vmem>>, vector<1x1x64xf32>
    %67 = vector.shape_cast %66 : vector<1x1x64xf32> to vector<1x64xf32>
    %68 = vector.broadcast %67 : vector<1x64xf32> to vector<32x64xf32>
    %69 = arith.mulf %65, %68 : vector<32x64xf32>
    %70 = arith.addf %62, %69 : vector<32x64xf32>
    %c0_45 = arith.constant 0 : index
    %c0_46 = arith.constant 0 : index
    %71 = vector.load %arg3[%c0_45, %c0_46] : memref<1x64xf32, #tpu.memory_space<vmem>>, vector<1x64xf32>
    %72 = vector.broadcast %71 : vector<1x64xf32> to vector<32x64xf32>
    %73 = arith.mulf %70, %72 : vector<32x64xf32>
    %c0_47 = arith.constant 0 : index
    %c0_48 = arith.constant 0 : index
    %74 = vector.load %arg4[%c0_47, %c0_48] : memref<1x64xf32, #tpu.memory_space<vmem>>, vector<1x64xf32>
    %75 = vector.broadcast %74 : vector<1x64xf32> to vector<32x64xf32>
    %76 = arith.addf %73, %75 : vector<32x64xf32>
    %77 = arith.negf %76 : vector<32x64xf32>
    %78 = math.exp %77 : vector<32x64xf32>
    %cst = arith.constant 1.000000e+00 : f32
    %79 = vector.broadcast %cst : f32 to vector<32x64xf32>
    %80 = arith.addf %79, %78 : vector<32x64xf32>
    %81 = arith.divf %79, %80 : vector<32x64xf32>
    %82 = arith.mulf %76, %81 : vector<32x64xf32>
    %83 = arith.truncf %82 : vector<32x64xf32> to vector<32x64xbf16>
    %c0_49 = arith.constant 0 : index
    %c0_50 = arith.constant 0 : index
    %84 = vector.load %arg5[%c0_49, %c0_50] : memref<32x64xbf16, #tpu.memory_space<vmem>>, vector<32x64xbf16>
    tpu.vector_store %arg5[%c0_49, %c0_50], %83 {strides = array<i32>} : memref<32x64xbf16, #tpu.memory_space<vmem>>, vector<32x64xbf16>,
    return
  }
  func.func @transform_0(%arg0: i32) -> (i32, i32, i32) {
    %c0_i32 = arith.constant 0 : i32
    %c0_i32_0 = arith.constant 0 : i32
    %c0_i32_1 = arith.constant 0 : i32
    return %c0_i32, %arg0, %c0_i32_0 : i32, i32, i32
  }
  func.func @transform_1(%arg0: i32) -> (i32, i32, i32) {
    %c0_i32 = arith.constant 0 : i32
    %c0_i32_0 = arith.constant 0 : i32
    %c0_i32_1 = arith.constant 0 : i32
    %c0_i32_2 = arith.constant 0 : i32
    return %c0_i32, %c0_i32_0, %c0_i32_1 : i32, i32, i32
  }
  func.func @transform_2(%arg0: i32) -> (i32, i32) {
    %c0_i32 = arith.constant 0 : i32
    %c0_i32_0 = arith.constant 0 : i32
    %c0_i32_1 = arith.constant 0 : i32
    return %c0_i32, %c0_i32_0 : i32, i32
  }
  func.func @transform_3(%arg0: i32) -> (i32, i32) {
    %c0_i32 = arith.constant 0 : i32
    %c0_i32_0 = arith.constant 0 : i32
    %c0_i32_1 = arith.constant 0 : i32
    return %c0_i32, %c0_i32_0 : i32, i32
  }
  func.func @transform_4(%arg0: i32) -> (i32, i32) {
    %c0_i32 = arith.constant 0 : i32
    %c0_i32_0 = arith.constant 0 : i32
    return %arg0, %c0_i32 : i32, i32
  }
}

module attributes {stable_mosaic.version = 11 : i64} {
  func.func @kernel(%arg0: i32, %arg1: memref<2x16x64xbf16, #tpu.memory_space<vmem>>, %arg2: memref<2x64xf32, #tpu.memory_space<vmem>>, %arg3: memref<2x64xf32, #tpu.memory_space<vmem>>) attributes {dimension_semantics = [#tpu.dimension_semantics<arbitrary>], iteration_bounds = array<i64: 1>, scalar_prefetch = 0 : i64, scratch_operands = 1 : i64, tpu.core_type = #tpu.core_type<tc>, window_params = [{transform_indices = @transform_0, window_bounds = array<i64: 2, 16, 64>}, {pipeline_mode = #tpu.pipeline_mode<synchronous>, transform_indices = @transform_1, window_bounds = array<i64: 2, 64>}]} {
    %c0_i32 = arith.constant 0 : i32
    %0 = arith.cmpi eq, %arg0, %c0_i32 : i32
    %1 = arith.extui %0 : i1 to i32
    %c0_i32_0 = arith.constant 0 : i32
    %2 = arith.cmpi ne, %1, %c0_i32_0 : i32
    scf.if %2 {
      %cst_9 = arith.constant 0.000000e+00 : f32
      %12 = vector.broadcast %cst_9 : f32 to vector<2x64xf32>
      %c0_10 = arith.constant 0 : index
      %c0_11 = arith.constant 0 : index
      %13 = vector.load %arg3[%c0_10, %c0_11] : memref<2x64xf32, #tpu.memory_space<vmem>>, vector<2x64xf32>
      tpu.vector_store %arg3[%c0_10, %c0_11], %12 {strides = array<i32>} : memref<2x64xf32, #tpu.memory_space<vmem>>, vector<2x64xf32>,
    } else {
    }
    %c0 = arith.constant 0 : index
    %c0_1 = arith.constant 0 : index
    %3 = vector.load %arg3[%c0, %c0_1] : memref<2x64xf32, #tpu.memory_space<vmem>>, vector<2x64xf32>
    %c0_2 = arith.constant 0 : index
    %c0_3 = arith.constant 0 : index
    %c0_4 = arith.constant 0 : index
    %4 = vector.load %arg1[%c0_2, %c0_3, %c0_4] : memref<2x16x64xbf16, #tpu.memory_space<vmem>>, vector<2x16x64xbf16>
    %5 = arith.extf %4 : vector<2x16x64xbf16> to vector<2x16x64xf32>
    %cst = arith.constant dense<0.000000e+00> : vector<2x64xf32>
    %6 = vector.multi_reduction <add>, %5, %cst [1] : vector<2x16x64xf32> to vector<2x64xf32>
    %7 = arith.addf %3, %6 : vector<2x64xf32>
    %c0_5 = arith.constant 0 : index
    %c0_6 = arith.constant 0 : index
    %8 = vector.load %arg3[%c0_5, %c0_6] : memref<2x64xf32, #tpu.memory_space<vmem>>, vector<2x64xf32>
    tpu.vector_store %arg3[%c0_5, %c0_6], %7 {strides = array<i32>} : memref<2x64xf32, #tpu.memory_space<vmem>>, vector<2x64xf32>,
    %c0_i32_7 = arith.constant 0 : i32
    %9 = arith.cmpi eq, %arg0, %c0_i32_7 : i32
    %10 = arith.extui %9 : i1 to i32
    %c0_i32_8 = arith.constant 0 : i32
    %11 = arith.cmpi ne, %10, %c0_i32_8 : i32
    scf.if %11 {
      %c0_9 = arith.constant 0 : index
      %c0_10 = arith.constant 0 : index
      %12 = vector.load %arg3[%c0_9, %c0_10] : memref<2x64xf32, #tpu.memory_space<vmem>>, vector<2x64xf32>
      %cst_11 = arith.constant 6.250000e-02 : f32
      %13 = vector.broadcast %cst_11 : f32 to vector<2x64xf32>
      %14 = arith.mulf %12, %13 : vector<2x64xf32>
      %c0_12 = arith.constant 0 : index
      %c0_13 = arith.constant 0 : index
      %15 = vector.load %arg2[%c0_12, %c0_13] : memref<2x64xf32, #tpu.memory_space<vmem>>, vector<2x64xf32>
      tpu.vector_store %arg2[%c0_12, %c0_13], %14 {strides = array<i32>} : memref<2x64xf32, #tpu.memory_space<vmem>>, vector<2x64xf32>,
    } else {
    }
    return
  }
  func.func @transform_0(%arg0: i32) -> (i32, i32, i32) {
    %c0_i32 = arith.constant 0 : i32
    %c0_i32_0 = arith.constant 0 : i32
    %c0_i32_1 = arith.constant 0 : i32
    return %c0_i32, %arg0, %c0_i32_0 : i32, i32, i32
  }
  func.func @transform_1(%arg0: i32) -> (i32, i32) {
    %c0_i32 = arith.constant 0 : i32
    %c0_i32_0 = arith.constant 0 : i32
    %c0_i32_1 = arith.constant 0 : i32
    return %c0_i32, %c0_i32_0 : i32, i32
  }
}

module attributes {stable_mosaic.version = 11 : i64} {
  func.func @kernel(%arg0: i32, %arg1: i32, %arg2: i32, %arg3: i32, %arg4: memref<1x8x128xbf16, #tpu.memory_space<vmem>>, %arg5: memref<128x128xbf16, #tpu.memory_space<vmem>>, %arg6: memref<1x128xf32, #tpu.memory_space<vmem>>, %arg7: memref<1x128xf32, #tpu.memory_space<vmem>>, %arg8: memref<1x8x128xf32, #tpu.memory_space<vmem>>, %arg9: memref<8x128xf32, #tpu.memory_space<vmem>>) attributes {dimension_semantics = [#tpu.dimension_semantics<parallel>, #tpu.dimension_semantics<parallel>, #tpu.dimension_semantics<parallel>, #tpu.dimension_semantics<arbitrary>], iteration_bounds = array<i64: 1, 1, 1, 1>, scalar_prefetch = 0 : i64, scratch_operands = 1 : i64, tpu.core_type = #tpu.core_type<tc>, window_params = [{transform_indices = @transform_0, window_bounds = array<i64: 1, 8, 128>}, {transform_indices = @transform_1, window_bounds = array<i64: 128, 128>}, {transform_indices = @transform_2, window_bounds = array<i64: 1, 128>}, {transform_indices = @transform_3, window_bounds = array<i64: 1, 128>}, {transform_indices = @transform_4, window_bounds = array<i64: 1, 8, 128>}]} {
    %c0_i32 = arith.constant 0 : i32
    %0 = arith.cmpi eq, %arg3, %c0_i32 : i32
    %1 = arith.extui %0 : i1 to i32
    %c0_i32_0 = arith.constant 0 : i32
    %2 = arith.cmpi ne, %1, %c0_i32_0 : i32
    scf.if %2 {
      %cst_11 = arith.constant 0.000000e+00 : f32
      %13 = vector.broadcast %cst_11 : f32 to vector<8x128xf32>
      %c0_12 = arith.constant 0 : index
      %c0_13 = arith.constant 0 : index
      %14 = vector.load %arg9[%c0_12, %c0_13] : memref<8x128xf32, #tpu.memory_space<vmem>>, vector<8x128xf32>
      tpu.vector_store %arg9[%c0_12, %c0_13], %13 {strides = array<i32>} : memref<8x128xf32, #tpu.memory_space<vmem>>, vector<8x128xf32>,
    } else {
    }
    %c0 = arith.constant 0 : index
    %c0_1 = arith.constant 0 : index
    %c0_2 = arith.constant 0 : index
    %3 = vector.load %arg4[%c0, %c0_1, %c0_2] : memref<1x8x128xbf16, #tpu.memory_space<vmem>>, vector<1x8x128xbf16>
    %4 = vector.shape_cast %3 : vector<1x8x128xbf16> to vector<8x128xbf16>
    %c0_3 = arith.constant 0 : index
    %c0_4 = arith.constant 0 : index
    %5 = vector.load %arg9[%c0_3, %c0_4] : memref<8x128xf32, #tpu.memory_space<vmem>>, vector<8x128xf32>
    %c0_5 = arith.constant 0 : index
    %c0_6 = arith.constant 0 : index
    %6 = vector.load %arg5[%c0_5, %c0_6] : memref<128x128xbf16, #tpu.memory_space<vmem>>, vector<128x128xbf16>
    %cst = arith.constant dense<0.000000e+00> : vector<8x128xf32>
    %7 = tpu.matmul %4, %6, %cst {dimension_numbers = #tpu.dot_dimension_numbers<[1], [0], [0], [1], [0, 0, 1, 1], [], []>} : vector<8x128xbf16>, vector<128x128xbf16>, vector<8x128xf32> -> vector<8x128xf32>
    %8 = arith.addf %5, %7 : vector<8x128xf32>
    %c0_7 = arith.constant 0 : index
    %c0_8 = arith.constant 0 : index
    %9 = vector.load %arg9[%c0_7, %c0_8] : memref<8x128xf32, #tpu.memory_space<vmem>>, vector<8x128xf32>
    tpu.vector_store %arg9[%c0_7, %c0_8], %8 {strides = array<i32>} : memref<8x128xf32, #tpu.memory_space<vmem>>, vector<8x128xf32>,
    %c0_i32_9 = arith.constant 0 : i32
    %10 = arith.cmpi eq, %arg3, %c0_i32_9 : i32
    %11 = arith.extui %10 : i1 to i32
    %c0_i32_10 = arith.constant 0 : i32
    %12 = arith.cmpi ne, %11, %c0_i32_10 : i32
    scf.if %12 {
      %c0_11 = arith.constant 0 : index
      %c0_12 = arith.constant 0 : index
      %13 = vector.load %arg9[%c0_11, %c0_12] : memref<8x128xf32, #tpu.memory_space<vmem>>, vector<8x128xf32>
      %c0_13 = arith.constant 0 : index
      %c0_14 = arith.constant 0 : index
      %14 = vector.load %arg6[%c0_13, %c0_14] : memref<1x128xf32, #tpu.memory_space<vmem>>, vector<1x128xf32>
      %15 = vector.broadcast %14 : vector<1x128xf32> to vector<8x128xf32>
      %16 = arith.mulf %13, %15 : vector<8x128xf32>
      %c0_15 = arith.constant 0 : index
      %c0_16 = arith.constant 0 : index
      %17 = vector.load %arg7[%c0_15, %c0_16] : memref<1x128xf32, #tpu.memory_space<vmem>>, vector<1x128xf32>
      %18 = vector.broadcast %17 : vector<1x128xf32> to vector<8x128xf32>
      %19 = arith.addf %16, %18 : vector<8x128xf32>
      %20 = arith.negf %19 : vector<8x128xf32>
      %21 = math.exp %20 : vector<8x128xf32>
      %cst_17 = arith.constant 1.000000e+00 : f32
      %22 = vector.broadcast %cst_17 : f32 to vector<8x128xf32>
      %23 = arith.addf %22, %21 : vector<8x128xf32>
      %24 = arith.divf %22, %23 : vector<8x128xf32>
      %25 = arith.mulf %19, %24 : vector<8x128xf32>
      %c0_18 = arith.constant 0 : index
      %c0_19 = arith.constant 0 : index
      %c0_20 = arith.constant 0 : index
      %26 = vector.load %arg8[%c0_18, %c0_19, %c0_20] : memref<1x8x128xf32, #tpu.memory_space<vmem>>, vector<1x8x128xf32>
      %27 = vector.shape_cast %26 : vector<1x8x128xf32> to vector<8x128xf32>
      %28 = vector.shape_cast %25 : vector<8x128xf32> to vector<1x8x128xf32>
      tpu.vector_store %arg8[%c0_18, %c0_19, %c0_20], %28 {strides = array<i32>} : memref<1x8x128xf32, #tpu.memory_space<vmem>>, vector<1x8x128xf32>,
    } else {
    }
    return
  }
  func.func @transform_0(%arg0: i32, %arg1: i32, %arg2: i32, %arg3: i32) -> (i32, i32, i32) {
    %c0_i32 = arith.constant 0 : i32
    return %arg0, %arg1, %arg3 : i32, i32, i32
  }
  func.func @transform_1(%arg0: i32, %arg1: i32, %arg2: i32, %arg3: i32) -> (i32, i32) {
    %c0_i32 = arith.constant 0 : i32
    return %arg3, %arg2 : i32, i32
  }
  func.func @transform_2(%arg0: i32, %arg1: i32, %arg2: i32, %arg3: i32) -> (i32, i32) {
    %c0_i32 = arith.constant 0 : i32
    %c0_i32_0 = arith.constant 0 : i32
    return %c0_i32, %arg2 : i32, i32
  }
  func.func @transform_3(%arg0: i32, %arg1: i32, %arg2: i32, %arg3: i32) -> (i32, i32) {
    %c0_i32 = arith.constant 0 : i32
    %c0_i32_0 = arith.constant 0 : i32
    return %c0_i32, %arg2 : i32, i32
  }
  func.func @transform_4(%arg0: i32, %arg1: i32, %arg2: i32, %arg3: i32) -> (i32, i32, i32) {
    %c0_i32 = arith.constant 0 : i32
    return %arg0, %arg1, %arg2 : i32, i32, i32
  }
}

module attributes {stable_mosaic.version = 11 : i64} {
  func.func @kernel(%arg0: i32, %arg1: i32, %arg2: i32, %arg3: i32, %arg4: memref<1x8x128xbf16, #tpu.memory_space<vmem>>, %arg5: memref<128x128xbf16, #tpu.memory_space<vmem>>, %arg6: memref<1x128xf32, #tpu.memory_space<vmem>>, %arg7: memref<1x128xf32, #tpu.memory_space<vmem>>, %arg8: memref<1x8x128xf32, #tpu.memory_space<vmem>>, %arg9: memref<8x128xf32, #tpu.memory_space<vmem>>) attributes {dimension_semantics = [#tpu.dimension_semantics<parallel>, #tpu.dimension_semantics<parallel>, #tpu.dimension_semantics<parallel>, #tpu.dimension_semantics<arbitrary>], iteration_bounds = array<i64: 1, 1, 1, 1>, scalar_prefetch = 0 : i64, scratch_operands = 1 : i64, tpu.core_type = #tpu.core_type<tc>, window_params = [{transform_indices = @transform_0, window_bounds = array<i64: 1, 8, 128>}, {transform_indices = @transform_1, window_bounds = array<i64: 128, 128>}, {transform_indices = @transform_2, window_bounds = array<i64: 1, 128>}, {transform_indices = @transform_3, window_bounds = array<i64: 1, 128>}, {transform_indices = @transform_4, window_bounds = array<i64: 1, 8, 128>}]} {
    %c0_i32 = arith.constant 0 : i32
    %0 = arith.cmpi eq, %arg3, %c0_i32 : i32
    %1 = arith.extui %0 : i1 to i32
    %c0_i32_0 = arith.constant 0 : i32
    %2 = arith.cmpi ne, %1, %c0_i32_0 : i32
    scf.if %2 {
      %cst_11 = arith.constant 0.000000e+00 : f32
      %13 = vector.broadcast %cst_11 : f32 to vector<8x128xf32>
      %c0_12 = arith.constant 0 : index
      %c0_13 = arith.constant 0 : index
      %14 = vector.load %arg9[%c0_12, %c0_13] : memref<8x128xf32, #tpu.memory_space<vmem>>, vector<8x128xf32>
      tpu.vector_store %arg9[%c0_12, %c0_13], %13 {strides = array<i32>} : memref<8x128xf32, #tpu.memory_space<vmem>>, vector<8x128xf32>,
    } else {
    }
    %c0 = arith.constant 0 : index
    %c0_1 = arith.constant 0 : index
    %c0_2 = arith.constant 0 : index
    %3 = vector.load %arg4[%c0, %c0_1, %c0_2] : memref<1x8x128xbf16, #tpu.memory_space<vmem>>, vector<1x8x128xbf16>
    %4 = vector.shape_cast %3 : vector<1x8x128xbf16> to vector<8x128xbf16>
    %c0_3 = arith.constant 0 : index
    %c0_4 = arith.constant 0 : index
    %5 = vector.load %arg9[%c0_3, %c0_4] : memref<8x128xf32, #tpu.memory_space<vmem>>, vector<8x128xf32>
    %c0_5 = arith.constant 0 : index
    %c0_6 = arith.constant 0 : index
    %6 = vector.load %arg5[%c0_5, %c0_6] : memref<128x128xbf16, #tpu.memory_space<vmem>>, vector<128x128xbf16>
    %cst = arith.constant dense<0.000000e+00> : vector<8x128xf32>
    %7 = tpu.matmul %4, %6, %cst {dimension_numbers = #tpu.dot_dimension_numbers<[1], [0], [0], [1], [0, 0, 1, 1], [], []>} : vector<8x128xbf16>, vector<128x128xbf16>, vector<8x128xf32> -> vector<8x128xf32>
    %8 = arith.addf %5, %7 : vector<8x128xf32>
    %c0_7 = arith.constant 0 : index
    %c0_8 = arith.constant 0 : index
    %9 = vector.load %arg9[%c0_7, %c0_8] : memref<8x128xf32, #tpu.memory_space<vmem>>, vector<8x128xf32>
    tpu.vector_store %arg9[%c0_7, %c0_8], %8 {strides = array<i32>} : memref<8x128xf32, #tpu.memory_space<vmem>>, vector<8x128xf32>,
    %c0_i32_9 = arith.constant 0 : i32
    %10 = arith.cmpi eq, %arg3, %c0_i32_9 : i32
    %11 = arith.extui %10 : i1 to i32
    %c0_i32_10 = arith.constant 0 : i32
    %12 = arith.cmpi ne, %11, %c0_i32_10 : i32
    scf.if %12 {
      %c0_11 = arith.constant 0 : index
      %c0_12 = arith.constant 0 : index
      %13 = vector.load %arg9[%c0_11, %c0_12] : memref<8x128xf32, #tpu.memory_space<vmem>>, vector<8x128xf32>
      %c0_13 = arith.constant 0 : index
      %c0_14 = arith.constant 0 : index
      %14 = vector.load %arg6[%c0_13, %c0_14] : memref<1x128xf32, #tpu.memory_space<vmem>>, vector<1x128xf32>
      %15 = vector.broadcast %14 : vector<1x128xf32> to vector<8x128xf32>
      %16 = arith.mulf %13, %15 : vector<8x128xf32>
      %c0_15 = arith.constant 0 : index
      %c0_16 = arith.constant 0 : index
      %17 = vector.load %arg7[%c0_15, %c0_16] : memref<1x128xf32, #tpu.memory_space<vmem>>, vector<1x128xf32>
      %18 = vector.broadcast %17 : vector<1x128xf32> to vector<8x128xf32>
      %19 = arith.addf %16, %18 : vector<8x128xf32>
      %20 = arith.negf %19 : vector<8x128xf32>
      %21 = math.exp %20 : vector<8x128xf32>
      %cst_17 = arith.constant 1.000000e+00 : f32
      %22 = vector.broadcast %cst_17 : f32 to vector<8x128xf32>
      %23 = arith.addf %22, %21 : vector<8x128xf32>
      %24 = arith.divf %22, %23 : vector<8x128xf32>
      %c0_18 = arith.constant 0 : index
      %c0_19 = arith.constant 0 : index
      %c0_20 = arith.constant 0 : index
      %25 = vector.load %arg8[%c0_18, %c0_19, %c0_20] : memref<1x8x128xf32, #tpu.memory_space<vmem>>, vector<1x8x128xf32>
      %26 = vector.shape_cast %25 : vector<1x8x128xf32> to vector<8x128xf32>
      %27 = vector.shape_cast %24 : vector<8x128xf32> to vector<1x8x128xf32>
      tpu.vector_store %arg8[%c0_18, %c0_19, %c0_20], %27 {strides = array<i32>} : memref<1x8x128xf32, #tpu.memory_space<vmem>>, vector<1x8x128xf32>,
    } else {
    }
    return
  }
  func.func @transform_0(%arg0: i32, %arg1: i32, %arg2: i32, %arg3: i32) -> (i32, i32, i32) {
    %c0_i32 = arith.constant 0 : i32
    return %arg0, %arg1, %arg3 : i32, i32, i32
  }
  func.func @transform_1(%arg0: i32, %arg1: i32, %arg2: i32, %arg3: i32) -> (i32, i32) {
    %c0_i32 = arith.constant 0 : i32
    return %arg3, %arg2 : i32, i32
  }
  func.func @transform_2(%arg0: i32, %arg1: i32, %arg2: i32, %arg3: i32) -> (i32, i32) {
    %c0_i32 = arith.constant 0 : i32
    %c0_i32_0 = arith.constant 0 : i32
    return %c0_i32, %arg2 : i32, i32
  }
  func.func @transform_3(%arg0: i32, %arg1: i32, %arg2: i32, %arg3: i32) -> (i32, i32) {
    %c0_i32 = arith.constant 0 : i32
    %c0_i32_0 = arith.constant 0 : i32
    return %c0_i32, %arg2 : i32, i32
  }
  func.func @transform_4(%arg0: i32, %arg1: i32, %arg2: i32, %arg3: i32) -> (i32, i32, i32) {
    %c0_i32 = arith.constant 0 : i32
    return %arg0, %arg1, %arg2 : i32, i32, i32
  }
}

module attributes {stable_mosaic.version = 11 : i64} {
  func.func @kernel(%arg0: i32, %arg1: i32, %arg2: i32, %arg3: i32, %arg4: memref<1x8x128xbf16, #tpu.memory_space<vmem>>, %arg5: memref<128x128xbf16, #tpu.memory_space<vmem>>, %arg6: memref<1x128xf32, #tpu.memory_space<vmem>>, %arg7: memref<1x128xf32, #tpu.memory_space<vmem>>, %arg8: memref<1x8x128xf32, #tpu.memory_space<vmem>>, %arg9: memref<8x128xf32, #tpu.memory_space<vmem>>) attributes {dimension_semantics = [#tpu.dimension_semantics<parallel>, #tpu.dimension_semantics<parallel>, #tpu.dimension_semantics<parallel>, #tpu.dimension_semantics<arbitrary>], iteration_bounds = array<i64: 1, 1, 1, 1>, scalar_prefetch = 0 : i64, scratch_operands = 1 : i64, tpu.core_type = #tpu.core_type<tc>, window_params = [{transform_indices = @transform_0, window_bounds = array<i64: 1, 8, 128>}, {transform_indices = @transform_1, window_bounds = array<i64: 128, 128>}, {transform_indices = @transform_2, window_bounds = array<i64: 1, 128>}, {transform_indices = @transform_3, window_bounds = array<i64: 1, 128>}, {transform_indices = @transform_4, window_bounds = array<i64: 1, 8, 128>}]} {
    %c0_i32 = arith.constant 0 : i32
    %0 = arith.cmpi eq, %arg3, %c0_i32 : i32
    %1 = arith.extui %0 : i1 to i32
    %c0_i32_0 = arith.constant 0 : i32
    %2 = arith.cmpi ne, %1, %c0_i32_0 : i32
    scf.if %2 {
      %cst_11 = arith.constant 0.000000e+00 : f32
      %13 = vector.broadcast %cst_11 : f32 to vector<8x128xf32>
      %c0_12 = arith.constant 0 : index
      %c0_13 = arith.constant 0 : index
      %14 = vector.load %arg9[%c0_12, %c0_13] : memref<8x128xf32, #tpu.memory_space<vmem>>, vector<8x128xf32>
      tpu.vector_store %arg9[%c0_12, %c0_13], %13 {strides = array<i32>} : memref<8x128xf32, #tpu.memory_space<vmem>>, vector<8x128xf32>,
    } else {
    }
    %c0 = arith.constant 0 : index
    %c0_1 = arith.constant 0 : index
    %c0_2 = arith.constant 0 : index
    %3 = vector.load %arg4[%c0, %c0_1, %c0_2] : memref<1x8x128xbf16, #tpu.memory_space<vmem>>, vector<1x8x128xbf16>
    %4 = vector.shape_cast %3 : vector<1x8x128xbf16> to vector<8x128xbf16>
    %c0_3 = arith.constant 0 : index
    %c0_4 = arith.constant 0 : index
    %5 = vector.load %arg9[%c0_3, %c0_4] : memref<8x128xf32, #tpu.memory_space<vmem>>, vector<8x128xf32>
    %c0_5 = arith.constant 0 : index
    %c0_6 = arith.constant 0 : index
    %6 = vector.load %arg5[%c0_5, %c0_6] : memref<128x128xbf16, #tpu.memory_space<vmem>>, vector<128x128xbf16>
    %cst = arith.constant dense<0.000000e+00> : vector<8x128xf32>
    %7 = tpu.matmul %4, %6, %cst {dimension_numbers = #tpu.dot_dimension_numbers<[1], [0], [0], [1], [0, 0, 1, 1], [], []>} : vector<8x128xbf16>, vector<128x128xbf16>, vector<8x128xf32> -> vector<8x128xf32>
    %8 = arith.addf %5, %7 : vector<8x128xf32>
    %c0_7 = arith.constant 0 : index
    %c0_8 = arith.constant 0 : index
    %9 = vector.load %arg9[%c0_7, %c0_8] : memref<8x128xf32, #tpu.memory_space<vmem>>, vector<8x128xf32>
    tpu.vector_store %arg9[%c0_7, %c0_8], %8 {strides = array<i32>} : memref<8x128xf32, #tpu.memory_space<vmem>>, vector<8x128xf32>,
    %c0_i32_9 = arith.constant 0 : i32
    %10 = arith.cmpi eq, %arg3, %c0_i32_9 : i32
    %11 = arith.extui %10 : i1 to i32
    %c0_i32_10 = arith.constant 0 : i32
    %12 = arith.cmpi ne, %11, %c0_i32_10 : i32
    scf.if %12 {
      %c0_11 = arith.constant 0 : index
      %c0_12 = arith.constant 0 : index
      %13 = vector.load %arg9[%c0_11, %c0_12] : memref<8x128xf32, #tpu.memory_space<vmem>>, vector<8x128xf32>
      %c0_13 = arith.constant 0 : index
      %c0_14 = arith.constant 0 : index
      %14 = vector.load %arg6[%c0_13, %c0_14] : memref<1x128xf32, #tpu.memory_space<vmem>>, vector<1x128xf32>
      %15 = vector.broadcast %14 : vector<1x128xf32> to vector<8x128xf32>
      %16 = arith.mulf %13, %15 : vector<8x128xf32>
      %c0_15 = arith.constant 0 : index
      %c0_16 = arith.constant 0 : index
      %17 = vector.load %arg7[%c0_15, %c0_16] : memref<1x128xf32, #tpu.memory_space<vmem>>, vector<1x128xf32>
      %18 = vector.broadcast %17 : vector<1x128xf32> to vector<8x128xf32>
      %19 = arith.addf %16, %18 : vector<8x128xf32>
      %c0_17 = arith.constant 0 : index
      %c0_18 = arith.constant 0 : index
      %c0_19 = arith.constant 0 : index
      %20 = vector.load %arg8[%c0_17, %c0_18, %c0_19] : memref<1x8x128xf32, #tpu.memory_space<vmem>>, vector<1x8x128xf32>
      %21 = vector.shape_cast %20 : vector<1x8x128xf32> to vector<8x128xf32>
      %22 = vector.shape_cast %19 : vector<8x128xf32> to vector<1x8x128xf32>
      tpu.vector_store %arg8[%c0_17, %c0_18, %c0_19], %22 {strides = array<i32>} : memref<1x8x128xf32, #tpu.memory_space<vmem>>, vector<1x8x128xf32>,
    } else {
    }
    return
  }
  func.func @transform_0(%arg0: i32, %arg1: i32, %arg2: i32, %arg3: i32) -> (i32, i32, i32) {
    %c0_i32 = arith.constant 0 : i32
    return %arg0, %arg1, %arg3 : i32, i32, i32
  }
  func.func @transform_1(%arg0: i32, %arg1: i32, %arg2: i32, %arg3: i32) -> (i32, i32) {
    %c0_i32 = arith.constant 0 : i32
    return %arg3, %arg2 : i32, i32
  }
  func.func @transform_2(%arg0: i32, %arg1: i32, %arg2: i32, %arg3: i32) -> (i32, i32) {
    %c0_i32 = arith.constant 0 : i32
    %c0_i32_0 = arith.constant 0 : i32
    return %c0_i32, %arg2 : i32, i32
  }
  func.func @transform_3(%arg0: i32, %arg1: i32, %arg2: i32, %arg3: i32) -> (i32, i32) {
    %c0_i32 = arith.constant 0 : i32
    %c0_i32_0 = arith.constant 0 : i32
    return %c0_i32, %arg2 : i32, i32
  }
  func.func @transform_4(%arg0: i32, %arg1: i32, %arg2: i32, %arg3: i32) -> (i32, i32, i32) {
    %c0_i32 = arith.constant 0 : i32
    return %arg0, %arg1, %arg2 : i32, i32, i32
  }
}

module attributes {stable_mosaic.version = 11 : i64} {
  func.func @kernel(%arg0: i32, %arg1: i32, %arg2: i32, %arg3: i32, %arg4: memref<1x16x128xbf16, #tpu.memory_space<vmem>>, %arg5: memref<128x128xbf16, #tpu.memory_space<vmem>>, %arg6: memref<1x128xf32, #tpu.memory_space<vmem>>, %arg7: memref<1x128xf32, #tpu.memory_space<vmem>>, %arg8: memref<1x1x128xf32, #tpu.memory_space<vmem>>, %arg9: memref<1x16x128xbf16, #tpu.memory_space<vmem>>, %arg10: memref<1x16x128xbf16, #tpu.memory_space<vmem>>, %arg11: memref<16x128xf32, #tpu.memory_space<vmem>>) attributes {dimension_semantics = [#tpu.dimension_semantics<parallel>, #tpu.dimension_semantics<parallel>, #tpu.dimension_semantics<parallel>, #tpu.dimension_semantics<arbitrary>], iteration_bounds = array<i64: 2, 1, 1, 1>, scalar_prefetch = 0 : i64, scratch_operands = 1 : i64, tpu.core_type = #tpu.core_type<tc>, window_params = [{transform_indices = @transform_0, window_bounds = array<i64: 1, 16, 128>}, {transform_indices = @transform_1, window_bounds = array<i64: 128, 128>}, {transform_indices = @transform_2, window_bounds = array<i64: 1, 128>}, {transform_indices = @transform_3, window_bounds = array<i64: 1, 128>}, {transform_indices = @transform_4, window_bounds = array<i64: 1, 1, 128>}, {transform_indices = @transform_5, window_bounds = array<i64: 1, 16, 128>}, {transform_indices = @transform_6, window_bounds = array<i64: 1, 16, 128>}]} {
    %c0_i32 = arith.constant 0 : i32
    %0 = arith.cmpi eq, %arg3, %c0_i32 : i32
    %1 = arith.extui %0 : i1 to i32
    %c0_i32_0 = arith.constant 0 : i32
    %2 = arith.cmpi ne, %1, %c0_i32_0 : i32
    scf.if %2 {
      %cst_14 = arith.constant 0.000000e+00 : f32
      %19 = vector.broadcast %cst_14 : f32 to vector<16x128xf32>
      %c0_15 = arith.constant 0 : index
      %c0_16 = arith.constant 0 : index
      %20 = vector.load %arg11[%c0_15, %c0_16] : memref<16x128xf32, #tpu.memory_space<vmem>>, vector<16x128xf32>
      tpu.vector_store %arg11[%c0_15, %c0_16], %19 {strides = array<i32>} : memref<16x128xf32, #tpu.memory_space<vmem>>, vector<16x128xf32>,
    } else {
    }
    %c0 = arith.constant 0 : index
    %c0_1 = arith.constant 0 : index
    %c0_2 = arith.constant 0 : index
    %3 = vector.load %arg4[%c0, %c0_1, %c0_2] : memref<1x16x128xbf16, #tpu.memory_space<vmem>>, vector<1x16x128xbf16>
    %4 = vector.shape_cast %3 : vector<1x16x128xbf16> to vector<16x128xbf16>
    %c0_3 = arith.constant 0 : index
    %c0_4 = arith.constant 0 : index
    %c0_5 = arith.constant 0 : index
    %5 = vector.load %arg8[%c0_3, %c0_4, %c0_5] : memref<1x1x128xf32, #tpu.memory_space<vmem>>, vector<1x1x128xf32>
    %6 = vector.shape_cast %5 : vector<1x1x128xf32> to vector<1x128xf32>
    %7 = arith.extf %4 : vector<16x128xbf16> to vector<16x128xf32>
    %8 = vector.broadcast %6 : vector<1x128xf32> to vector<16x128xf32>
    %9 = arith.mulf %7, %8 : vector<16x128xf32>
    %c0_6 = arith.constant 0 : index
    %c0_7 = arith.constant 0 : index
    %10 = vector.load %arg11[%c0_6, %c0_7] : memref<16x128xf32, #tpu.memory_space<vmem>>, vector<16x128xf32>
    %11 = arith.truncf %9 : vector<16x128xf32> to vector<16x128xbf16>
    %c0_8 = arith.constant 0 : index
    %c0_9 = arith.constant 0 : index
    %12 = vector.load %arg5[%c0_8, %c0_9] : memref<128x128xbf16, #tpu.memory_space<vmem>>, vector<128x128xbf16>
    %cst = arith.constant dense<0.000000e+00> : vector<16x128xf32>
    %13 = tpu.matmul %11, %12, %cst {dimension_numbers = #tpu.dot_dimension_numbers<[1], [0], [0], [1], [0, 0, 1, 1], [], []>} : vector<16x128xbf16>, vector<128x128xbf16>, vector<16x128xf32> -> vector<16x128xf32>
    %14 = arith.addf %10, %13 : vector<16x128xf32>
    %c0_10 = arith.constant 0 : index
    %c0_11 = arith.constant 0 : index
    %15 = vector.load %arg11[%c0_10, %c0_11] : memref<16x128xf32, #tpu.memory_space<vmem>>, vector<16x128xf32>
    tpu.vector_store %arg11[%c0_10, %c0_11], %14 {strides = array<i32>} : memref<16x128xf32, #tpu.memory_space<vmem>>, vector<16x128xf32>,
    %c0_i32_12 = arith.constant 0 : i32
    %16 = arith.cmpi eq, %arg3, %c0_i32_12 : i32
    %17 = arith.extui %16 : i1 to i32
    %c0_i32_13 = arith.constant 0 : i32
    %18 = arith.cmpi ne, %17, %c0_i32_13 : i32
    scf.if %18 {
      %c0_14 = arith.constant 0 : index
      %c0_15 = arith.constant 0 : index
      %19 = vector.load %arg11[%c0_14, %c0_15] : memref<16x128xf32, #tpu.memory_space<vmem>>, vector<16x128xf32>
      %c0_16 = arith.constant 0 : index
      %c0_17 = arith.constant 0 : index
      %20 = vector.load %arg6[%c0_16, %c0_17] : memref<1x128xf32, #tpu.memory_space<vmem>>, vector<1x128xf32>
      %21 = vector.broadcast %20 : vector<1x128xf32> to vector<16x128xf32>
      %22 = arith.mulf %19, %21 : vector<16x128xf32>
      %c0_18 = arith.constant 0 : index
      %c0_19 = arith.constant 0 : index
      %23 = vector.load %arg7[%c0_18, %c0_19] : memref<1x128xf32, #tpu.memory_space<vmem>>, vector<1x128xf32>
      %24 = vector.broadcast %23 : vector<1x128xf32> to vector<16x128xf32>
      %25 = arith.addf %22, %24 : vector<16x128xf32>
      %c0_20 = arith.constant 0 : index
      %c0_21 = arith.constant 0 : index
      %c0_22 = arith.constant 0 : index
      %26 = vector.load %arg9[%c0_20, %c0_21, %c0_22] : memref<1x16x128xbf16, #tpu.memory_space<vmem>>, vector<1x16x128xbf16>
      %27 = vector.shape_cast %26 : vector<1x16x128xbf16> to vector<16x128xbf16>
      %28 = arith.extf %27 : vector<16x128xbf16> to vector<16x128xf32>
      %29 = arith.addf %25, %28 : vector<16x128xf32>
      %30 = arith.truncf %29 : vector<16x128xf32> to vector<16x128xbf16>
      %c0_23 = arith.constant 0 : index
      %c0_24 = arith.constant 0 : index
      %c0_25 = arith.constant 0 : index
      %31 = vector.load %arg10[%c0_23, %c0_24, %c0_25] : memref<1x16x128xbf16, #tpu.memory_space<vmem>>, vector<1x16x128xbf16>
      %32 = vector.shape_cast %31 : vector<1x16x128xbf16> to vector<16x128xbf16>
      %33 = vector.shape_cast %30 : vector<16x128xbf16> to vector<1x16x128xbf16>
      tpu.vector_store %arg10[%c0_23, %c0_24, %c0_25], %33 {strides = array<i32>} : memref<1x16x128xbf16, #tpu.memory_space<vmem>>, vector<1x16x128xbf16>,
    } else {
    }
    return
  }
  func.func @transform_0(%arg0: i32, %arg1: i32, %arg2: i32, %arg3: i32) -> (i32, i32, i32) {
    %c0_i32 = arith.constant 0 : i32
    return %arg0, %arg1, %arg3 : i32, i32, i32
  }
  func.func @transform_1(%arg0: i32, %arg1: i32, %arg2: i32, %arg3: i32) -> (i32, i32) {
    %c0_i32 = arith.constant 0 : i32
    return %arg3, %arg2 : i32, i32
  }
  func.func @transform_2(%arg0: i32, %arg1: i32, %arg2: i32, %arg3: i32) -> (i32, i32) {
    %c0_i32 = arith.constant 0 : i32
    %c0_i32_0 = arith.constant 0 : i32
    return %c0_i32, %arg2 : i32, i32
  }
  func.func @transform_3(%arg0: i32, %arg1: i32, %arg2: i32, %arg3: i32) -> (i32, i32) {
    %c0_i32 = arith.constant 0 : i32
    %c0_i32_0 = arith.constant 0 : i32
    return %c0_i32, %arg2 : i32, i32
  }
  func.func @transform_4(%arg0: i32, %arg1: i32, %arg2: i32, %arg3: i32) -> (i32, i32, i32) {
    %c0_i32 = arith.constant 0 : i32
    %c0_i32_0 = arith.constant 0 : i32
    return %arg0, %c0_i32, %arg3 : i32, i32, i32
  }
  func.func @transform_5(%arg0: i32, %arg1: i32, %arg2: i32, %arg3: i32) -> (i32, i32, i32) {
    %c0_i32 = arith.constant 0 : i32
    return %arg0, %arg1, %arg2 : i32, i32, i32
  }
  func.func @transform_6(%arg0: i32, %arg1: i32, %arg2: i32, %arg3: i32) -> (i32, i32, i32) {
    %c0_i32 = arith.constant 0 : i32
    return %arg0, %arg1, %arg2 : i32, i32, i32
  }
}

</mosaic_0001>

<bundles_post_ra>
// kernel: _lambda_.13
= control target key start
LH: loop header
LB: loop body
LE: loop exit
PB: predicated region body
PF: predicated region fallthrough
CT: control target
= control target key end

     0   :  { %s1032_s1 = inlined_call_operand.vmem [shape: bf16[128,128], index: 1, kind: input, shape index: {}]   ;;  %s1033_s0 = inlined_call_operand.vmem [shape: bf16[1,128,128], index: 0, kind: input, shape index: {}]   ;;  %s1034_s2 = inlined_call_operand.vmem [shape: f32[1,128], index: 2, kind: input, shape index: {}]   ;;  %s1035_s3 = inlined_call_operand.vmem [shape: f32[1,128], index: 3, kind: input, shape index: {}]   ;;  %s1036_s4 = inlined_call_operand.vmem [shape: bf16[1,128,128], index: 4, kind: output, shape index: {}]  }
   0x1   :  { %v749_v0 = vld [vmem:[%s1032_s1] sm:$0xff]   ;;  %v750_v1 = vld [vmem:[%s1032_s1 + $0x8] sm:$0xff]   ;;  %v751_v2 = vld [vmem:[%s1032_s1 + $0x10] sm:$0xff]  }
   0x2   :  { %701 = vmatprep.subr.bf16.mxu0 %v749_v0  ;;  %733 = vmatprep.subr.bf16.mxu1 %v749_v0  ;;  %v752_v3 = vld [vmem:[%s1032_s1 + $0x18] sm:$0xff]   ;;  %v757_v4 = vld [vmem:[%s1033_s0] sm:$0xff]   ;;  %v754_v7 = vld [vmem:[%s1032_s1 + $0x28] sm:$0xff]  }
   0x3   :  { %702 = vmatpush3.bf16.msra.mxu0 %v749_v0  ;;  %741 = vmatpush3.bf16.msra.mxu1 %v749_v0  ;;  %v758_v5 = vld [vmem:[%s1033_s0 + $0x20] sm:$0xff]   ;;  %v755_v8 = vld [vmem:[%s1032_s1 + $0x30] sm:$0xff]   ;;  %v756_v9 = vld [vmem:[%s1032_s1 + $0x38] sm:$0xff]  }
   0x4   :  { %703 = vmatprep.subr.bf16.mxu0 %v750_v1  ;;  %734 = vmatprep.subr.bf16.mxu1 %v750_v1  ;;  %v753_v6 = vld [vmem:[%s1032_s1 + $0x20] sm:$0xff]   ;;  %v759_v10 = vld [vmem:[%s1033_s0 + $0x8] sm:$0xff]   ;;  %v761_v12 = vld [vmem:[%s1033_s0 + $0x10] sm:$0xff]  }
   0x5   :  { %717 = vmatprep.mubr.bf16.mxu0 %v757_v4  ;;  %725 = vmatprep.mubr.bf16.mxu1 %v758_v5  ;;  %v760_v11 = vld [vmem:[%s1033_s0 + $0x28] sm:$0xff]   ;;  %v762_v13 = vld [vmem:[%s1033_s0 + $0x30] sm:$0xff]   ;;  %v763_v14 = vld [vmem:[%s1033_s0 + $0x18] sm:$0xff]  }
   0x6   :  { %v764_v15 = vld [vmem:[%s1033_s0 + $0x38] sm:$0xff]   ;;  %v905_v16 = vld [vmem:[%s1034_s2] ss:$0 sm:$0xff] }
   0x7   :  { %704 = vmatpush3.bf16.msra.mxu0 %v750_v1  ;;  %742 = vmatpush3.bf16.msra.mxu1 %v750_v1  ;;  %v910_v18 = vld [vmem:[%s1035_s3] ss:$0 sm:$0xff] }
   0x8   :  { %705 = vmatprep.subr.bf16.mxu0 %v751_v2  ;;  %735 = vmatprep.subr.bf16.mxu1 %v751_v2 }
   0xb   :  { %706 = vmatpush3.bf16.msra.mxu0 %v751_v2  ;;  %743 = vmatpush3.bf16.msra.mxu1 %v751_v2 }
   0xc   :  { %707 = vmatprep.subr.bf16.mxu0 %v752_v3  ;;  %736 = vmatprep.subr.bf16.mxu1 %v752_v3 }
   0xf   :  { %708 = vmatpush3.bf16.msra.mxu0 %v752_v3  ;;  %744 = vmatpush3.bf16.msra.mxu1 %v752_v3 }
  0x10   :  { %709 = vmatprep.subr.bf16.mxu0 %v753_v6  ;;  %737 = vmatprep.subr.bf16.mxu1 %v753_v6 }
  0x13   :  { %710 = vmatpush3.bf16.msra.mxu0 %v753_v6  ;;  %745 = vmatpush3.bf16.msra.mxu1 %v753_v6 }
  0x14   :  { %711 = vmatprep.subr.bf16.mxu0 %v754_v7  ;;  %738 = vmatprep.subr.bf16.mxu1 %v754_v7 }
  0x17   :  { %712 = vmatpush3.bf16.msra.mxu0 %v754_v7  ;;  %746 = vmatpush3.bf16.msra.mxu1 %v754_v7 }
  0x18   :  { %713 = vmatprep.subr.bf16.mxu0 %v755_v8  ;;  %739 = vmatprep.subr.bf16.mxu1 %v755_v8 }
  0x1b   :  { %714 = vmatpush3.bf16.msra.mxu0 %v755_v8  ;;  %747 = vmatpush3.bf16.msra.mxu1 %v755_v8 }
  0x1c   :  { %715 = vmatprep.subr.bf16.mxu0 %v756_v9  ;;  %740 = vmatprep.subr.bf16.mxu1 %v756_v9 }
  0x1f   :  { %716 = vmatpush3.bf16.msra.mxu0 %v756_v9  ;;  %748 = vmatpush3.bf16.msra.mxu1 %v756_v9 }
  0x22   :  { %718 = vmatmul.mubr.bf16.vlgmr.msra.gmra.mrb[0].mxu0 %v759_v10  ;;  %726 = vmatmul.mubr.bf16.vlgmr.msra.gmra.mrb[0].mxu1 %v760_v11 }
  0x23   :  { %721 = vmatprep.mubr.bf16.mxu0 %v761_v12  ;;  %729 = vmatprep.mubr.bf16.mxu1 %v762_v13 }
  0x2a   :  { %722 = vmatmul.mubr.bf16.gmra.mrb[4].mxu0 %v763_v14  ;;  %730 = vmatmul.mubr.bf16.gmra.mrb[4].mxu1 %v764_v15 }
  0xf5   :  { %v719_v17 = vpop.f32.mrb[0].mxu0  ;;  %v727_v19 = vpop.f32.mrb[0].mxu1 }
  0xf6   :  { %v339_v20 = vmul.f32 %v719_v17, %v905_v16  ;;  %v347_v21 = vmul.f32 %v727_v19, %v905_v16  ;;  %v216_v22 = vpop.f32.mrb[1].mxu0  ;;  %v248_v23 = vpop.f32.mrb[1].mxu1 }
  0xf7   :  { %v337_v24 = vmul.f32 %v905_v16, %v216_v22  ;;  %v345_v25 = vmul.f32 %v905_v16, %v248_v23  ;;  %v720_v26 = vpop.f32.mrb[2].mxu0  ;;  %v728_v27 = vpop.f32.mrb[2].mxu1 }
  0xf8   :  { %v917_v28 = vadd.f32 %v910_v18, %v339_v20  ;;  %v920_v29 = vadd.f32 %v910_v18, %v347_v21  ;;  %v340_v30 = vmul.f32 %v720_v26, %v905_v16  ;;  %v348_v31 = vmul.f32 %v728_v27, %v905_v16  ;;  %v219_v32 = vpop.f32.mrb[3].mxu0  ;;  %v251_v33 = vpop.f32.mrb[3].mxu1 }
  0xf9   :  { %v925_v34 = vadd.f32 %v910_v18, %v337_v24  ;;  %v928_v35 = vadd.f32 %v910_v18, %v345_v25  ;;  %v338_v36 = vmul.f32 %v905_v16, %v219_v32  ;;  %v346_v37 = vmul.f32 %v905_v16, %v251_v33 }
  0xfa   :  { %v592_v38 = vmul.f32 -1.442695, %v917_v28  ;;  %v600_v39 = vmul.f32 -1.442695, %v920_v29  ;;  %v935_v40 = vadd.f32 %v910_v18, %v340_v30  ;;  %v938_v41 = vadd.f32 %v910_v18, %v348_v31 }
  0xfb   :  { %v590_v42 = vmul.f32 -1.442695, %v925_v34  ;;  %v598_v43 = vmul.f32 -1.442695, %v928_v35  ;;  %v943_v44 = vadd.f32 %v910_v18, %v338_v36  ;;  %v946_v45 = vadd.f32 %v910_v18, %v346_v37 }
  0xfc   :  { %765 = vpow2.f32 %v592_v38  ;;  %v593_v46 = vmul.f32 -1.442695, %v935_v40  ;;  %v601_v47 = vmul.f32 -1.442695, %v938_v41 }
  0xfd   :  { %767 = vpow2.f32 %v600_v39  ;;  %v723_v48 = vpop.f32.mrb[4].mxu0  ;;  %v731_v49 = vpop.f32.mrb[4].mxu1  ;;  %v591_v50 = vmul.f32 -1.442695, %v943_v44  ;;  %v599_v55 = vmul.f32 -1.442695, %v946_v45 }
  0xfe   :  { %769 = vpow2.f32 %v590_v42  ;;  %v343_v51 = vmul.f32 %v723_v48, %v905_v16  ;;  %v351_v52 = vmul.f32 %v731_v49, %v905_v16  ;;  %v232_v53 = vpop.f32.mrb[5].mxu0  ;;  %v264_v54 = vpop.f32.mrb[5].mxu1 }
  0xff   :  { %771 = vpow2.f32 %v598_v43  ;;  %v341_v56 = vmul.f32 %v905_v16, %v232_v53  ;;  %v724_v57 = vpop.f32.mrb[6].mxu0  ;;  %v732_v58 = vpop.f32.mrb[6].mxu1  ;;  %v349_v6 = vmul.f32 %v905_v16, %v264_v54 }
 0x100   :  { %773 = vpow2.f32 %v593_v46  ;;  %v956_v59 = vadd.f32 %v910_v18, %v343_v51  ;;  %v959_v60 = vadd.f32 %v910_v18, %v351_v52  ;;  %v344_v61 = vmul.f32 %v724_v57, %v905_v16  ;;  %v235_v62 = vpop.f32.mrb[7].mxu0  ;;  %v267_v63 = vpop.f32.mrb[7].mxu1 }
 0x101   :  { %775 = vpow2.f32 %v601_v47  ;;  %v963_v0 = vadd.f32 %v910_v18, %v341_v56  ;;  %v974_v14 = vadd.f32 %v910_v18, %v349_v6  ;;  %v352_v19 = vmul.f32 %v732_v58, %v905_v16 }
 0x102   :  { %777 = vpow2.f32 %v591_v50  ;;  %v596_v1 = vmul.f32 -1.442695, %v956_v59  ;;  %v604_v2 = vmul.f32 -1.442695, %v959_v60  ;;  %v968_v3 = vadd.f32 %v910_v18, %v344_v61 }
 0x103   :  { %779 = vpow2.f32 %v599_v55  ;;  %v594_v4 = vmul.f32 -1.442695, %v963_v0  ;;  %v342_v22 = vmul.f32 %v905_v16, %v235_v62  ;;  %v350_v25 = vmul.f32 %v905_v16, %v267_v63 }
 0x104   :  { %781 = vpow2.f32 %v596_v1  ;;  %v597_v5 = vmul.f32 -1.442695, %v968_v3  ;;  %v602_v30 = vmul.f32 -1.442695, %v974_v14  ;;  %v981_v33 = vadd.f32 %v910_v18, %v352_v19 }
 0x105   :  { %783 = vpow2.f32 %v604_v2  ;;  %v984_v37 = vadd.f32 %v910_v18, %v342_v22  ;;  %v987_v16 = vadd.f32 %v910_v18, %v350_v25 }
 0x106   :  { %v766_v7 = vpop.eup %765  ;;  %785 = vpow2.f32 %v594_v4  ;;  %v605_v43 = vmul.f32 -1.442695, %v981_v33 }
 0x107   :  { %v768_v8 = vpop.eup %767  ;;  %v426_v9 = vadd.f32 1.0, %v766_v7  ;;  %787 = vpow2.f32 %v597_v5  ;;  %v595_v48 = vmul.f32 -1.442695, %v984_v37  ;;  %v603_v50 = vmul.f32 -1.442695, %v987_v16 }
 0x108   :  { %v770_v10 = vpop.eup %769  ;;  %v434_v11 = vadd.f32 1.0, %v768_v8 }
 0x109   :  { %v772_v12 = vpop.eup %771  ;;  %789 = vrcp.f32 %v426_v9  ;;  %v424_v13 = vadd.f32 1.0, %v770_v10 }
 0x10a   :  { %v774_v15 = vpop.eup %773  ;;  %791 = vrcp.f32 %v434_v11  ;;  %v432_v17 = vadd.f32 1.0, %v772_v12 }
 0x10b   :  { %v776_v20 = vpop.eup %775  ;;  %793 = vrcp.f32 %v424_v13  ;;  %v427_v21 = vadd.f32 1.0, %v774_v15 }
 0x10c   :  { %v778_v23 = vpop.eup %777  ;;  %795 = vrcp.f32 %v432_v17  ;;  %v435_v24 = vadd.f32 1.0, %v776_v20 }
 0x10d   :  { %v780_v26 = vpop.eup %779  ;;  %797 = vrcp.f32 %v427_v21  ;;  %v425_v27 = vadd.f32 1.0, %v778_v23 }
 0x10e   :  { %v782_v31 = vpop.eup %781  ;;  %799 = vrcp.f32 %v435_v24  ;;  %v433_v32 = vadd.f32 1.0, %v780_v26 }
 0x10f   :  { %801 = vrcp.f32 %v425_v27  ;;  %v430_v36 = vadd.f32 1.0, %v782_v31  ;;  %v784_v38 = vpop.eup %783 }
 0x110   :  { %803 = vrcp.f32 %v433_v32  ;;  %v786_v39 = vpop.eup %785 }
 0x111   :  { %805 = vpow2.f32 %v602_v30  ;;  %v788_v42 = vpop.eup %787 }
 0x112   :  { %807 = vrcp.f32 %v430_v36  ;;  %v431_v47 = vadd.f32 1.0, %v788_v42 }
 0x113   :  { %v790_v46 = vpop.eup %789 }
 0x114   :  { %v792_v49 = vpop.eup %791  ;;  %809 = vrcp.f32 %v431_v47  ;;  %v474_v54 = vmul.f32 %v790_v46, %v917_v28 }
 0x115   :  { %v794_v51 = vpop.eup %793  ;;  %811 = vpow2.f32 %v605_v43  ;;  %v482_v57 = vmul.f32 %v792_v49, %v920_v29  ;;  %v438_v29 = vadd.f32 1.0, %v784_v38 }
 0x116   :  { %v796_v52 = vpop.eup %795  ;;  %813 = vpow2.f32 %v595_v48  ;;  %v472_v62 = vmul.f32 %v794_v51, %v925_v34 }
 0x117   :  { %v798_v53 = vpop.eup %797  ;;  %815 = vpow2.f32 %v603_v50  ;;  %v480_v4 = vmul.f32 %v796_v52, %v928_v35 }
 0x118   :  { %v800_v18 = vpop.eup %799  ;;  %v475_v55 = vmul.f32 %v798_v53, %v935_v40  ;;  %817 = vrcp.f32 %v438_v29 }
 0x119   :  { %v802_v56 = vpop.eup %801  ;;  %v483_v58 = vmul.f32 %v800_v18, %v938_v41  ;;  %v428_v41 = vadd.f32 1.0, %v786_v39 }
 0x11a   :  { %v804_v61 = vpop.eup %803  ;;  %v646_v63 = vpack.c.bf16 %v475_v55, %v474_v54  ;;  %v473_v1 = vmul.f32 %v802_v56, %v943_v44 }
 0x11b   :  { %v806_v2 = vpop.eup %805  ;;  %v666_v5 = vpack.c.bf16 %v483_v58, %v482_v57  ;;  %v481_v28 = vmul.f32 %v804_v61, %v946_v45  ;;  %819 = vrcp.f32 %v428_v41 }
 0x11c   :  { %678 = vst [vmem:[%s1036_s4 + $0x8] sm:$0xff] %v646_v63   ;;  %v641_v40 = vpack.c.bf16 %v473_v1, %v472_v62  ;;  %v808_v6 = vpop.eup %807  ;;  %v436_v35 = vadd.f32 1.0, %v806_v2 }
 0x11d   :  { %682 = vst [vmem:[%s1036_s4 + $0x28] sm:$0xff] %v666_v5   ;;  %v661_v34 = vpack.c.bf16 %v481_v28, %v480_v4  ;;  %v478_v7 = vmul.f32 %v808_v6, %v956_v59 }
 0x11e   :  { %642 = vst [vmem:[%s1036_s4] sm:$0xff] %v641_v40   ;;  %v810_v44 = vpop.eup %809  ;;  %821 = vrcp.f32 %v436_v35 }
 0x11f   :  { %681 = vst [vmem:[%s1036_s4 + $0x20] sm:$0xff] %v661_v34   ;;  %v812_v45 = vpop.eup %811  ;;  %v479_v8 = vmul.f32 %v810_v44, %v968_v3 }
 0x120   :  { %v814_v9 = vpop.eup %813  ;;  %v439_v10 = vadd.f32 1.0, %v812_v45 }
 0x121   :  { %v816_v11 = vpop.eup %815  ;;  %v656_v12 = vpack.c.bf16 %v479_v8, %v478_v7  ;;  %v429_v13 = vadd.f32 1.0, %v814_v9 }
 0x122   :  { %823 = vrcp.f32 %v439_v10  ;;  %v437_v15 = vadd.f32 1.0, %v816_v11  ;;  %v818_v17 = vpop.eup %817 }
 0x123   :  { %680 = vst [vmem:[%s1036_s4 + $0x18] sm:$0xff] %v656_v12   ;;  %825 = vrcp.f32 %v429_v13  ;;  %v486_v21 = vmul.f32 %v818_v17, %v959_v60 }
 0x124   :  { %827 = vrcp.f32 %v437_v15 }
 0x125   :  { %v820_v59 = vpop.eup %819 }
 0x126   :  { %v476_v24 = vmul.f32 %v820_v59, %v963_v0 }
 0x128   :  { %v822_v19 = vpop.eup %821 }
 0x129   :  { %v484_v26 = vmul.f32 %v822_v19, %v974_v14 }
 0x12c   :  { %v824_v20 = vpop.eup %823 }
 0x12d   :  { %v826_v3 = vpop.eup %825  ;;  %v487_v22 = vmul.f32 %v824_v20, %v981_v33 }
 0x12e   :  { %v828_v23 = vpop.eup %827  ;;  %v477_v25 = vmul.f32 %v826_v3, %v984_v37 }
 0x12f   :  { %v676_v27 = vpack.c.bf16 %v487_v22, %v486_v21  ;;  %v485_v30 = vmul.f32 %v828_v23, %v987_v16 }
 0x130   :  { %v651_v31 = vpack.c.bf16 %v477_v25, %v476_v24 }
 0x131   :  { %684 = vst [vmem:[%s1036_s4 + $0x38] sm:$0xff] %v676_v27   ;;  %v671_v32 = vpack.c.bf16 %v485_v30, %v484_v26 }
 0x132   :  { %679 = vst [vmem:[%s1036_s4 + $0x10] sm:$0xff] %v651_v31  }
 0x133   :  { %683 = vst [vmem:[%s1036_s4 + $0x30] sm:$0xff] %v671_v32  }

// kernel: _lambda_.14
= control target key start
LH: loop header
LB: loop body
LE: loop exit
PB: predicated region body
PF: predicated region fallthrough
CT: control target
= control target key end

     0   :  { %s1151_s1 = inlined_call_operand.vmem [shape: bf16[128,128], index: 1, kind: input, shape index: {}]   ;;  %s1152_s0 = inlined_call_operand.vmem [shape: bf16[1,128,128], index: 0, kind: input, shape index: {}]   ;;  %s1153_s2 = inlined_call_operand.vmem [shape: f32[1,128], index: 2, kind: input, shape index: {}]   ;;  %s1154_s3 = inlined_call_operand.vmem [shape: f32[1,128], index: 3, kind: input, shape index: {}]   ;;  %s1155_s4 = inlined_call_operand.vmem [shape: bf16[1,128,128], index: 4, kind: input, shape index: {}]   ;;  %s1156_s5 = inlined_call_operand.vmem [shape: bf16[1,128,128], index: 5, kind: output, shape index: {}]  }
   0x1   :  { %v839_v0 = vld [vmem:[%s1151_s1] sm:$0xff]   ;;  %v840_v1 = vld [vmem:[%s1151_s1 + $0x8] sm:$0xff]   ;;  %v841_v2 = vld [vmem:[%s1151_s1 + $0x10] sm:$0xff]  }
   0x2   :  { %791 = vmatprep.subr.bf16.mxu0 %v839_v0  ;;  %823 = vmatprep.subr.bf16.mxu1 %v839_v0  ;;  %v842_v3 = vld [vmem:[%s1151_s1 + $0x18] sm:$0xff]   ;;  %v847_v4 = vld [vmem:[%s1152_s0] sm:$0xff]   ;;  %v844_v7 = vld [vmem:[%s1151_s1 + $0x28] sm:$0xff]  }
   0x3   :  { %792 = vmatpush3.bf16.msra.mxu0 %v839_v0  ;;  %831 = vmatpush3.bf16.msra.mxu1 %v839_v0  ;;  %v848_v5 = vld [vmem:[%s1152_s0 + $0x20] sm:$0xff]   ;;  %v845_v8 = vld [vmem:[%s1151_s1 + $0x30] sm:$0xff]   ;;  %v846_v9 = vld [vmem:[%s1151_s1 + $0x38] sm:$0xff]  }
   0x4   :  { %793 = vmatprep.subr.bf16.mxu0 %v840_v1  ;;  %824 = vmatprep.subr.bf16.mxu1 %v840_v1  ;;  %v843_v6 = vld [vmem:[%s1151_s1 + $0x20] sm:$0xff]   ;;  %v849_v10 = vld [vmem:[%s1152_s0 + $0x8] sm:$0xff]   ;;  %v851_v12 = vld [vmem:[%s1152_s0 + $0x10] sm:$0xff]  }
   0x5   :  { %807 = vmatprep.mubr.bf16.mxu0 %v847_v4  ;;  %815 = vmatprep.mubr.bf16.mxu1 %v848_v5  ;;  %v850_v11 = vld [vmem:[%s1152_s0 + $0x28] sm:$0xff]   ;;  %v852_v13 = vld [vmem:[%s1152_s0 + $0x30] sm:$0xff]   ;;  %v853_v14 = vld [vmem:[%s1152_s0 + $0x18] sm:$0xff]  }
   0x6   :  { %v854_v15 = vld [vmem:[%s1152_s0 + $0x38] sm:$0xff]   ;;  %v1000_v16 = vld [vmem:[%s1153_s2] ss:$0 sm:$0xff] }
   0x7   :  { %794 = vmatpush3.bf16.msra.mxu0 %v840_v1  ;;  %832 = vmatpush3.bf16.msra.mxu1 %v840_v1  ;;  %v1005_v18 = vld [vmem:[%s1154_s3] ss:$0 sm:$0xff] }
   0x8   :  { %795 = vmatprep.subr.bf16.mxu0 %v841_v2  ;;  %825 = vmatprep.subr.bf16.mxu1 %v841_v2 }
   0xb   :  { %796 = vmatpush3.bf16.msra.mxu0 %v841_v2  ;;  %833 = vmatpush3.bf16.msra.mxu1 %v841_v2 }
   0xc   :  { %797 = vmatprep.subr.bf16.mxu0 %v842_v3  ;;  %826 = vmatprep.subr.bf16.mxu1 %v842_v3 }
   0xf   :  { %798 = vmatpush3.bf16.msra.mxu0 %v842_v3  ;;  %834 = vmatpush3.bf16.msra.mxu1 %v842_v3 }
  0x10   :  { %799 = vmatprep.subr.bf16.mxu0 %v843_v6  ;;  %827 = vmatprep.subr.bf16.mxu1 %v843_v6 }
  0x13   :  { %800 = vmatpush3.bf16.msra.mxu0 %v843_v6  ;;  %835 = vmatpush3.bf16.msra.mxu1 %v843_v6 }
  0x14   :  { %801 = vmatprep.subr.bf16.mxu0 %v844_v7  ;;  %828 = vmatprep.subr.bf16.mxu1 %v844_v7 }
  0x17   :  { %802 = vmatpush3.bf16.msra.mxu0 %v844_v7  ;;  %836 = vmatpush3.bf16.msra.mxu1 %v844_v7 }
  0x18   :  { %803 = vmatprep.subr.bf16.mxu0 %v845_v8  ;;  %829 = vmatprep.subr.bf16.mxu1 %v845_v8 }
  0x1b   :  { %804 = vmatpush3.bf16.msra.mxu0 %v845_v8  ;;  %837 = vmatpush3.bf16.msra.mxu1 %v845_v8 }
  0x1c   :  { %805 = vmatprep.subr.bf16.mxu0 %v846_v9  ;;  %830 = vmatprep.subr.bf16.mxu1 %v846_v9 }
  0x1f   :  { %806 = vmatpush3.bf16.msra.mxu0 %v846_v9  ;;  %838 = vmatpush3.bf16.msra.mxu1 %v846_v9 }
  0x22   :  { %808 = vmatmul.mubr.bf16.vlgmr.msra.gmra.mrb[0].mxu0 %v849_v10  ;;  %816 = vmatmul.mubr.bf16.vlgmr.msra.gmra.mrb[0].mxu1 %v850_v11 }
  0x23   :  { %811 = vmatprep.mubr.bf16.mxu0 %v851_v12  ;;  %819 = vmatprep.mubr.bf16.mxu1 %v852_v13 }
  0x2a   :  { %812 = vmatmul.mubr.bf16.gmra.mrb[4].mxu0 %v853_v14  ;;  %820 = vmatmul.mubr.bf16.gmra.mrb[4].mxu1 %v854_v15 }
  0xf5   :  { %v809_v17 = vpop.f32.mrb[0].mxu0  ;;  %v817_v19 = vpop.f32.mrb[0].mxu1 }
  0xf6   :  { %v342_v20 = vmul.f32 %v809_v17, %v1000_v16  ;;  %v350_v21 = vmul.f32 %v817_v19, %v1000_v16  ;;  %v219_v22 = vpop.f32.mrb[1].mxu0  ;;  %v251_v23 = vpop.f32.mrb[1].mxu1 }
  0xf7   :  { %v340_v24 = vmul.f32 %v1000_v16, %v219_v22  ;;  %v348_v25 = vmul.f32 %v1000_v16, %v251_v23  ;;  %v810_v26 = vpop.f32.mrb[2].mxu0  ;;  %v818_v27 = vpop.f32.mrb[2].mxu1 }
  0xf8   :  { %v1012_v28 = vadd.f32 %v1005_v18, %v342_v20  ;;  %v1015_v29 = vadd.f32 %v1005_v18, %v350_v21  ;;  %v343_v30 = vmul.f32 %v810_v26, %v1000_v16  ;;  %v351_v31 = vmul.f32 %v818_v27, %v1000_v16  ;;  %v222_v32 = vpop.f32.mrb[3].mxu0  ;;  %v254_v33 = vpop.f32.mrb[3].mxu1 }
  0xf9   :  { %v1020_v34 = vadd.f32 %v1005_v18, %v340_v24  ;;  %v1023_v35 = vadd.f32 %v1005_v18, %v348_v25  ;;  %v341_v36 = vmul.f32 %v1000_v16, %v222_v32  ;;  %v349_v37 = vmul.f32 %v1000_v16, %v254_v33 }
  0xfa   :  { %v643_v38 = vmul.f32 -1.442695, %v1012_v28  ;;  %v651_v39 = vmul.f32 -1.442695, %v1015_v29  ;;  %v1030_v40 = vadd.f32 %v1005_v18, %v343_v30  ;;  %v1033_v41 = vadd.f32 %v1005_v18, %v351_v31 }
  0xfb   :  { %v641_v42 = vmul.f32 -1.442695, %v1020_v34  ;;  %v649_v43 = vmul.f32 -1.442695, %v1023_v35  ;;  %v1038_v44 = vadd.f32 %v1005_v18, %v341_v36  ;;  %v1041_v45 = vadd.f32 %v1005_v18, %v349_v37 }
  0xfc   :  { %855 = vpow2.f32 %v643_v38  ;;  %v644_v46 = vmul.f32 -1.442695, %v1030_v40  ;;  %v652_v47 = vmul.f32 -1.442695, %v1033_v41 }
  0xfd   :  { %857 = vpow2.f32 %v651_v39  ;;  %v813_v48 = vpop.f32.mrb[4].mxu0  ;;  %v821_v49 = vpop.f32.mrb[4].mxu1  ;;  %v642_v50 = vmul.f32 -1.442695, %v1038_v44  ;;  %v650_v55 = vmul.f32 -1.442695, %v1041_v45 }
  0xfe   :  { %859 = vpow2.f32 %v641_v42  ;;  %v346_v51 = vmul.f32 %v813_v48, %v1000_v16  ;;  %v354_v52 = vmul.f32 %v821_v49, %v1000_v16  ;;  %v235_v53 = vpop.f32.mrb[5].mxu0  ;;  %v267_v54 = vpop.f32.mrb[5].mxu1  ;;  %v765_v49 = vld [vmem:[%s1155_s4 + $0x28] sm:$0xff]  }
  0xff   :  { %861 = vpow2.f32 %v649_v43  ;;  %v344_v56 = vmul.f32 %v1000_v16, %v235_v53  ;;  %v352_v57 = vmul.f32 %v1000_v16, %v267_v54  ;;  %v814_v58 = vpop.f32.mrb[6].mxu0  ;;  %v822_v59 = vpop.f32.mrb[6].mxu1 }
 0x100   :  { %863 = vpow2.f32 %v644_v46  ;;  %v1052_v60 = vadd.f32 %v1005_v18, %v346_v51  ;;  %v1055_v61 = vadd.f32 %v1005_v18, %v354_v52  ;;  %v347_v62 = vmul.f32 %v814_v58, %v1000_v16  ;;  %v238_v63 = vpop.f32.mrb[7].mxu0  ;;  %v270_v0 = vpop.f32.mrb[7].mxu1  ;;  %v761_v46 = vld [vmem:[%s1155_s4 + $0x8] sm:$0xff]  }
 0x101   :  { %865 = vpow2.f32 %v652_v47  ;;  %v1059_v1 = vadd.f32 %v1005_v18, %v344_v56  ;;  %v1062_v2 = vadd.f32 %v1005_v18, %v352_v57  ;;  %v355_v20 = vmul.f32 %v822_v59, %v1000_v16  ;;  %v764_v59 = vld [vmem:[%s1155_s4 + $0x20] sm:$0xff]  }
 0x102   :  { %867 = vpow2.f32 %v642_v50  ;;  %v647_v3 = vmul.f32 -1.442695, %v1052_v60  ;;  %v655_v4 = vmul.f32 -1.442695, %v1055_v61  ;;  %v1067_v5 = vadd.f32 %v1005_v18, %v347_v62 }
 0x103   :  { %869 = vpow2.f32 %v650_v55  ;;  %v645_v6 = vmul.f32 -1.442695, %v1059_v1  ;;  %v653_v7 = vmul.f32 -1.442695, %v1062_v2  ;;  %v345_v23 = vmul.f32 %v1000_v16, %v238_v63 }
 0x104   :  { %871 = vpow2.f32 %v647_v3  ;;  %v648_v8 = vmul.f32 -1.442695, %v1067_v5  ;;  %v353_v26 = vmul.f32 %v1000_v16, %v270_v0  ;;  %v1076_v33 = vadd.f32 %v1005_v18, %v355_v20 }
 0x105   :  { %873 = vpow2.f32 %v655_v4  ;;  %v1079_v38 = vadd.f32 %v1005_v18, %v345_v23  ;;  %v695_v55 = vunpack.c.l.bf16 %v761_v46  ;;  %v711_v58 = vunpack.c.l.bf16 %v765_v49 }
 0x106   :  { %v856_v9 = vpop.eup %855  ;;  %875 = vpow2.f32 %v645_v6  ;;  %v1082_v42 = vadd.f32 %v1005_v18, %v353_v26  ;;  %v656_v47 = vmul.f32 -1.442695, %v1076_v33  ;;  %v690_v18 = vld [vmem:[%s1155_s4] sm:$0xff]   ;;  %v696_v62 = vunpack.c.h.bf16 %v761_v46 }
 0x107   :  { %v858_v10 = vpop.eup %857  ;;  %v429_v11 = vadd.f32 1.0, %v856_v9  ;;  %877 = vpow2.f32 %v653_v7  ;;  %v646_v51 = vmul.f32 -1.442695, %v1079_v38  ;;  %v691_v3 = vunpack.c.l.bf16 %v690_v18 }
 0x108   :  { %v860_v12 = vpop.eup %859  ;;  %v437_v13 = vadd.f32 1.0, %v858_v10  ;;  %879 = vpow2.f32 %v648_v8  ;;  %v654_v53 = vmul.f32 -1.442695, %v1082_v42  ;;  %v712_v4 = vunpack.c.h.bf16 %v765_v49 }
 0x109   :  { %v862_v14 = vpop.eup %861  ;;  %881 = vrcp.f32 %v429_v11  ;;  %v427_v15 = vadd.f32 1.0, %v860_v12  ;;  %v692_v9 = vunpack.c.h.bf16 %v690_v18  ;;  %v707_v11 = vunpack.c.l.bf16 %v764_v59 }
 0x10a   :  { %v864_v17 = vpop.eup %863  ;;  %883 = vrcp.f32 %v437_v13  ;;  %v435_v19 = vadd.f32 1.0, %v862_v14  ;;  %v708_v13 = vunpack.c.h.bf16 %v764_v59 }
 0x10b   :  { %v866_v21 = vpop.eup %865  ;;  %885 = vrcp.f32 %v427_v15  ;;  %v430_v22 = vadd.f32 1.0, %v864_v17 }
 0x10c   :  { %v868_v24 = vpop.eup %867  ;;  %887 = vrcp.f32 %v435_v19  ;;  %v438_v25 = vadd.f32 1.0, %v866_v21 }
 0x10d   :  { %v870_v27 = vpop.eup %869  ;;  %889 = vrcp.f32 %v430_v22  ;;  %v428_v30 = vadd.f32 1.0, %v868_v24 }
 0x10e   :  { %v872_v31 = vpop.eup %871  ;;  %891 = vrcp.f32 %v438_v25  ;;  %v436_v32 = vadd.f32 1.0, %v870_v27 }
 0x10f   :  { %v874_v36 = vpop.eup %873  ;;  %893 = vrcp.f32 %v428_v30  ;;  %v433_v37 = vadd.f32 1.0, %v872_v31 }
 0x110   :  { %v876_v39 = vpop.eup %875  ;;  %895 = vrcp.f32 %v436_v32  ;;  %v441_v22 = vadd.f32 1.0, %v874_v36 }
 0x111   :  { %v878_v16 = vpop.eup %877  ;;  %897 = vrcp.f32 %v433_v37 }
 0x112   :  { %v880_v43 = vpop.eup %879  ;;  %v439_v30 = vadd.f32 1.0, %v878_v16 }
 0x113   :  { %v882_v48 = vpop.eup %881  ;;  %v434_v50 = vadd.f32 1.0, %v880_v43 }
 0x114   :  { %v884_v52 = vpop.eup %883  ;;  %v477_v57 = vmul.f32 %v882_v48, %v1012_v28 }
 0x115   :  { %v886_v54 = vpop.eup %885  ;;  %899 = vrcp.f32 %v434_v50  ;;  %v485_v0 = vmul.f32 %v884_v52, %v1015_v29  ;;  %v767_v52 = vld [vmem:[%s1155_s4 + $0x38] sm:$0xff]  }
 0x116   :  { %v888_v56 = vpop.eup %887  ;;  %901 = vpow2.f32 %v656_v47  ;;  %v475_v7 = vmul.f32 %v886_v54, %v1020_v34  ;;  %v525_v15 = vadd.f32 %v695_v55, %v477_v57  ;;  %v766_v55 = vld [vmem:[%s1155_s4 + $0x30] sm:$0xff]   ;;  %v719_v57 = vunpack.c.l.bf16 %v767_v52 }
 0x117   :  { %v890_v63 = vpop.eup %889  ;;  %903 = vpow2.f32 %v646_v51  ;;  %v483_v10 = vmul.f32 %v888_v56, %v1023_v35  ;;  %v533_v20 = vadd.f32 %v711_v58, %v485_v0  ;;  %v720_v58 = vunpack.c.h.bf16 %v767_v52 }
 0x118   :  { %v892_v6 = vpop.eup %891  ;;  %v478_v8 = vmul.f32 %v890_v63, %v1030_v40  ;;  %905 = vpow2.f32 %v654_v53  ;;  %v763_v40 = vld [vmem:[%s1155_s4 + $0x18] sm:$0xff]   ;;  %v523_v35 = vadd.f32 %v691_v3, %v475_v7  ;;  %v762_v53 = vld [vmem:[%s1155_s4 + $0x10] sm:$0xff]  }
 0x119   :  { %v894_v28 = vpop.eup %893  ;;  %v486_v12 = vmul.f32 %v892_v6, %v1033_v41  ;;  %v431_v41 = vadd.f32 1.0, %v876_v39  ;;  %v531_v25 = vadd.f32 %v707_v11, %v483_v10  ;;  %v703_v31 = vunpack.c.l.bf16 %v763_v40 }
 0x11a   :  { %v896_v14 = vpop.eup %895  ;;  %v526_v29 = vadd.f32 %v696_v62, %v478_v8  ;;  %v476_v17 = vmul.f32 %v894_v28, %v1038_v44  ;;  %v704_v32 = vunpack.c.h.bf16 %v763_v40  ;;  %907 = vrcp.f32 %v441_v22 }
 0x11b   :  { %v898_v19 = vpop.eup %897  ;;  %v534_v21 = vadd.f32 %v712_v4, %v486_v12  ;;  %v484_v34 = vmul.f32 %v896_v14, %v1041_v45  ;;  %909 = vrcp.f32 %v431_v41  ;;  %v699_v63 = vunpack.c.l.bf16 %v762_v53 }
 0x11c   :  { %v729_v23 = vpack.c.bf16 %v526_v29, %v525_v15  ;;  %v524_v24 = vadd.f32 %v692_v9, %v476_v17  ;;  %v481_v45 = vmul.f32 %v898_v19, %v1052_v60  ;;  %911 = vrcp.f32 %v439_v30 }
 0x11d   :  { %v749_v26 = vpack.c.bf16 %v534_v21, %v533_v20  ;;  %v532_v27 = vadd.f32 %v708_v13, %v484_v34  ;;  %v700_v0 = vunpack.c.h.bf16 %v762_v53  ;;  %v715_v6 = vunpack.c.l.bf16 %v766_v55 }
 0x11e   :  { %768 = vst [vmem:[%s1156_s5 + $0x8] sm:$0xff] %v729_v23   ;;  %v724_v44 = vpack.c.bf16 %v524_v24, %v523_v35  ;;  %v529_v47 = vadd.f32 %v703_v31, %v481_v45  ;;  %v716_v8 = vunpack.c.h.bf16 %v766_v55 }
 0x11f   :  { %v900_v37 = vpop.eup %899  ;;  %772 = vst [vmem:[%s1156_s5 + $0x28] sm:$0xff] %v749_v26   ;;  %v744_v36 = vpack.c.bf16 %v532_v27, %v531_v25 }
 0x120   :  { %v902_v39 = vpop.eup %901  ;;  %725 = vst [vmem:[%s1156_s5] sm:$0xff] %v724_v44   ;;  %v482_v16 = vmul.f32 %v900_v37, %v1067_v5 }
 0x121   :  { %v904_v43 = vpop.eup %903  ;;  %771 = vst [vmem:[%s1156_s5 + $0x20] sm:$0xff] %v744_v36   ;;  %v442_v60 = vadd.f32 1.0, %v902_v39 }
 0x122   :  { %v906_v46 = vpop.eup %905  ;;  %v530_v48 = vadd.f32 %v704_v32, %v482_v16  ;;  %v432_v49 = vadd.f32 1.0, %v904_v43 }
 0x123   :  { %913 = vrcp.f32 %v442_v60  ;;  %v440_v50 = vadd.f32 1.0, %v906_v46 }
 0x124   :  { %v739_v51 = vpack.c.bf16 %v530_v48, %v529_v47  ;;  %915 = vrcp.f32 %v432_v49  ;;  %v908_v5 = vpop.eup %907 }
 0x125   :  { %917 = vrcp.f32 %v440_v50  ;;  %v910_v18 = vpop.eup %909  ;;  %v489_v56 = vmul.f32 %v908_v5, %v1055_v61 }
 0x126   :  { %770 = vst [vmem:[%s1156_s5 + $0x18] sm:$0xff] %v739_v51   ;;  %v912_v54 = vpop.eup %911  ;;  %v479_v62 = vmul.f32 %v910_v18, %v1059_v1 }
 0x127   :  { %v487_v4 = vmul.f32 %v912_v54, %v1062_v2  ;;  %v537_v10 = vadd.f32 %v719_v57, %v489_v56 }
 0x128   :  { %v527_v12 = vadd.f32 %v699_v63, %v479_v62 }
 0x129   :  { %v535_v14 = vadd.f32 %v715_v6, %v487_v4 }
 0x12d   :  { %v914_v59 = vpop.eup %913 }
 0x12e   :  { %v916_v3 = vpop.eup %915  ;;  %v490_v7 = vmul.f32 %v914_v59, %v1076_v33 }
 0x12f   :  { %v918_v9 = vpop.eup %917  ;;  %v480_v28 = vmul.f32 %v916_v3, %v1079_v38 }
 0x130   :  { %v538_v11 = vadd.f32 %v720_v58, %v490_v7  ;;  %v488_v61 = vmul.f32 %v918_v9, %v1082_v42 }
 0x131   :  { %v528_v13 = vadd.f32 %v700_v0, %v480_v28 }
 0x132   :  { %v759_v1 = vpack.c.bf16 %v538_v11, %v537_v10  ;;  %v536_v15 = vadd.f32 %v716_v8, %v488_v61 }
 0x133   :  { %v734_v29 = vpack.c.bf16 %v528_v13, %v527_v12 }
 0x134   :  { %774 = vst [vmem:[%s1156_s5 + $0x38] sm:$0xff] %v759_v1   ;;  %v754_v2 = vpack.c.bf16 %v536_v15, %v535_v14 }
 0x135   :  { %769 = vst [vmem:[%s1156_s5 + $0x10] sm:$0xff] %v734_v29  }
 0x136   :  { %773 = vst [vmem:[%s1156_s5 + $0x30] sm:$0xff] %v754_v2  }

// kernel: _lambda_.16
= control target key start
LH: loop header
LB: loop body
LE: loop exit
PB: predicated region body
PF: predicated region fallthrough
CT: control target
= control target key end

     0   :  { %s358_s1 = inlined_call_operand.vmem [shape: bf16[128,128], index: 1, kind: input, shape index: {}]   ;;  %s359_s0 = inlined_call_operand.vmem [shape: bf16[1,32,128], index: 0, kind: input, shape index: {}]   ;;  %s360_s2 = inlined_call_operand.vmem [shape: f32[1,128], index: 2, kind: input, shape index: {}]   ;;  %s361_s3 = inlined_call_operand.vmem [shape: f32[1,128], index: 3, kind: input, shape index: {}]   ;;  %s362_s4 = inlined_call_operand.vmem [shape: bf16[1,32,128], index: 4, kind: output, shape index: {}]  }
   0x1   :  { %v281_v0 = vld [vmem:[%s358_s1] sm:$0xff]   ;;  %v282_v1 = vld [vmem:[%s358_s1 + $0x8] sm:$0xff]   ;;  %v283_v2 = vld [vmem:[%s358_s1 + $0x10] sm:$0xff]  }
   0x2   :  { %261 = vmatprep.subr.bf16.mxu0 %v281_v0  ;;  %v284_v3 = vld [vmem:[%s358_s1 + $0x18] sm:$0xff]   ;;  %v289_v4 = vld [vmem:[%s359_s0] sm:$0xff]   ;;  %v286_v6 = vld [vmem:[%s358_s1 + $0x28] sm:$0xff]  }
   0x3   :  { %262 = vmatpush3.bf16.msra.mxu0 %v281_v0  ;;  %277 = vmatprep.mubr.bf16.mxu0 %v289_v4  ;;  %v285_v5 = vld [vmem:[%s358_s1 + $0x20] sm:$0xff]   ;;  %v287_v7 = vld [vmem:[%s358_s1 + $0x30] sm:$0xff]   ;;  %v288_v8 = vld [vmem:[%s358_s1 + $0x38] sm:$0xff]  }
   0x4   :  { %263 = vmatprep.subr.bf16.mxu0 %v282_v1  ;;  %v290_v9 = vld [vmem:[%s359_s0 + $0x8] sm:$0xff]   ;;  %v230_v10 = vld [vmem:[%s360_s2] ss:$0 sm:$0xff] }
   0x5   :  { %v231_v14 = vld [vmem:[%s361_s3] ss:$0 sm:$0xff] }
   0x7   :  { %264 = vmatpush3.bf16.msra.mxu0 %v282_v1 }
   0x8   :  { %265 = vmatprep.subr.bf16.mxu0 %v283_v2 }
   0xb   :  { %266 = vmatpush3.bf16.msra.mxu0 %v283_v2 }
   0xc   :  { %267 = vmatprep.subr.bf16.mxu0 %v284_v3 }
   0xf   :  { %268 = vmatpush3.bf16.msra.mxu0 %v284_v3 }
  0x10   :  { %269 = vmatprep.subr.bf16.mxu0 %v285_v5 }
  0x13   :  { %270 = vmatpush3.bf16.msra.mxu0 %v285_v5 }
  0x14   :  { %271 = vmatprep.subr.bf16.mxu0 %v286_v6 }
  0x17   :  { %272 = vmatpush3.bf16.msra.mxu0 %v286_v6 }
  0x18   :  { %273 = vmatprep.subr.bf16.mxu0 %v287_v7 }
  0x1b   :  { %274 = vmatpush3.bf16.msra.mxu0 %v287_v7 }
  0x1c   :  { %275 = vmatprep.subr.bf16.mxu0 %v288_v8 }
  0x1f   :  { %276 = vmatpush3.bf16.msra.mxu0 %v288_v8 }
  0x22   :  { %278 = vmatmul.mubr.bf16.vlgmr.msra.gmra.mrb[0].mxu0 %v290_v9 }
  0xf5   :  { %v279_v11 = vpop.f32.mrb[0].mxu0 }
  0xf6   :  { %v183_v12 = vmul.f32 %v279_v11, %v230_v10  ;;  %v144_v13 = vpop.f32.mrb[1].mxu0 }
  0xf7   :  { %v181_v15 = vmul.f32 %v230_v10, %v144_v13  ;;  %v280_v16 = vpop.f32.mrb[2].mxu0 }
  0xf8   :  { %v184_v17 = vmul.f32 %v280_v16, %v230_v10  ;;  %v147_v18 = vpop.f32.mrb[3].mxu0  ;;  %v194_v20 = vadd.f32 %v231_v14, %v183_v12 }
  0xf9   :  { %v182_v19 = vmul.f32 %v230_v10, %v147_v18  ;;  %v192_v22 = vadd.f32 %v231_v14, %v181_v15 }
  0xfa   :  { %v195_v21 = vadd.f32 %v231_v14, %v184_v17 }
  0xfb   :  { %v193_v23 = vadd.f32 %v231_v14, %v182_v19 }
  0xfc   :  { %v248_v24 = vpack.c.bf16 %v195_v21, %v194_v20 }
  0xfd   :  { %v243_v25 = vpack.c.bf16 %v193_v23, %v192_v22 }
  0xfe   :  { %250 = vst [vmem:[%s362_s4 + $0x8] sm:$0xff] %v248_v24  }
  0xff   :  { %244 = vst [vmem:[%s362_s4] sm:$0xff] %v243_v25  }

// kernel: _lambda_.15
= control target key start
LH: loop header
LB: loop body
LE: loop exit
PB: predicated region body
PF: predicated region fallthrough
CT: control target
= control target key end

     0   :  { %s406_s1 = inlined_call_operand.vmem [shape: bf16[128,128], index: 1, kind: input, shape index: {}]   ;;  %s407_s0 = inlined_call_operand.vmem [shape: bf16[1,32,128], index: 0, kind: input, shape index: {}]   ;;  %s408_s2 = inlined_call_operand.vmem [shape: f32[1,128], index: 2, kind: input, shape index: {}]   ;;  %s409_s3 = inlined_call_operand.vmem [shape: f32[1,128], index: 3, kind: input, shape index: {}]   ;;  %s410_s4 = inlined_call_operand.vmem [shape: bf16[1,32,128], index: 4, kind: output, shape index: {}]  }
   0x1   :  { %v313_v0 = vld [vmem:[%s406_s1] sm:$0xff]   ;;  %v314_v1 = vld [vmem:[%s406_s1 + $0x8] sm:$0xff]   ;;  %v315_v2 = vld [vmem:[%s406_s1 + $0x10] sm:$0xff]  }
   0x2   :  { %293 = vmatprep.subr.bf16.mxu0 %v313_v0  ;;  %v316_v3 = vld [vmem:[%s406_s1 + $0x18] sm:$0xff]   ;;  %v321_v4 = vld [vmem:[%s407_s0] sm:$0xff]   ;;  %v318_v6 = vld [vmem:[%s406_s1 + $0x28] sm:$0xff]  }
   0x3   :  { %294 = vmatpush3.bf16.msra.mxu0 %v313_v0  ;;  %309 = vmatprep.mubr.bf16.mxu0 %v321_v4  ;;  %v317_v5 = vld [vmem:[%s406_s1 + $0x20] sm:$0xff]   ;;  %v319_v7 = vld [vmem:[%s406_s1 + $0x30] sm:$0xff]   ;;  %v320_v8 = vld [vmem:[%s406_s1 + $0x38] sm:$0xff]  }
   0x4   :  { %295 = vmatprep.subr.bf16.mxu0 %v314_v1  ;;  %v322_v9 = vld [vmem:[%s407_s0 + $0x8] sm:$0xff]   ;;  %v258_v10 = vld [vmem:[%s408_s2] ss:$0 sm:$0xff] }
   0x5   :  { %v259_v12 = vld [vmem:[%s409_s3] ss:$0 sm:$0xff] }
   0x7   :  { %296 = vmatpush3.bf16.msra.mxu0 %v314_v1 }
   0x8   :  { %297 = vmatprep.subr.bf16.mxu0 %v315_v2 }
   0xb   :  { %298 = vmatpush3.bf16.msra.mxu0 %v315_v2 }
   0xc   :  { %299 = vmatprep.subr.bf16.mxu0 %v316_v3 }
   0xf   :  { %300 = vmatpush3.bf16.msra.mxu0 %v316_v3 }
  0x10   :  { %301 = vmatprep.subr.bf16.mxu0 %v317_v5 }
  0x13   :  { %302 = vmatpush3.bf16.msra.mxu0 %v317_v5 }
  0x14   :  { %303 = vmatprep.subr.bf16.mxu0 %v318_v6 }
  0x17   :  { %304 = vmatpush3.bf16.msra.mxu0 %v318_v6 }
  0x18   :  { %305 = vmatprep.subr.bf16.mxu0 %v319_v7 }
  0x1b   :  { %306 = vmatpush3.bf16.msra.mxu0 %v319_v7 }
  0x1c   :  { %307 = vmatprep.subr.bf16.mxu0 %v320_v8 }
  0x1f   :  { %308 = vmatpush3.bf16.msra.mxu0 %v320_v8 }
  0x22   :  { %310 = vmatmul.mubr.bf16.vlgmr.msra.gmra.mrb[0].mxu0 %v322_v9 }
  0xf5   :  { %v311_v11 = vpop.f32.mrb[0].mxu0 }
  0xf6   :  { %v183_v13 = vmul.f32 %v311_v11, %v258_v10  ;;  %v144_v14 = vpop.f32.mrb[1].mxu0 }
  0xf7   :  { %v181_v15 = vmul.f32 %v258_v10, %v144_v14  ;;  %v312_v16 = vpop.f32.mrb[2].mxu0 }
  0xf8   :  { %v194_v17 = vadd.f32 %v259_v12, %v183_v13  ;;  %v184_v18 = vmul.f32 %v312_v16, %v258_v10  ;;  %v147_v19 = vpop.f32.mrb[3].mxu0 }
  0xf9   :  { %v192_v20 = vadd.f32 %v259_v12, %v181_v15  ;;  %v182_v21 = vmul.f32 %v258_v10, %v147_v19 }
  0xfa   :  { %v262_v22 = vmul.f32 -1.442695, %v194_v17  ;;  %v195_v23 = vadd.f32 %v259_v12, %v184_v18 }
  0xfb   :  { %v260_v24 = vmul.f32 -1.442695, %v192_v20  ;;  %v193_v25 = vadd.f32 %v259_v12, %v182_v21 }
  0xfc   :  { %323 = vpow2.f32 %v262_v22  ;;  %v263_v26 = vmul.f32 -1.442695, %v195_v23 }
  0xfd   :  { %325 = vpow2.f32 %v260_v24  ;;  %v261_v27 = vmul.f32 -1.442695, %v193_v25 }
  0xfe   :  { %327 = vpow2.f32 %v263_v26 }
  0xff   :  { %329 = vpow2.f32 %v261_v27 }
 0x106   :  { %v324_v28 = vpop.eup %323 }
 0x107   :  { %v326_v29 = vpop.eup %325  ;;  %v210_v30 = vadd.f32 1.0, %v324_v28 }
 0x108   :  { %v328_v31 = vpop.eup %327  ;;  %v208_v32 = vadd.f32 1.0, %v326_v29 }
 0x109   :  { %v330_v33 = vpop.eup %329  ;;  %331 = vrcp.f32 %v210_v30  ;;  %v211_v34 = vadd.f32 1.0, %v328_v31 }
 0x10a   :  { %333 = vrcp.f32 %v208_v32  ;;  %v209_v35 = vadd.f32 1.0, %v330_v33 }
 0x10b   :  { %335 = vrcp.f32 %v211_v34 }
 0x10c   :  { %337 = vrcp.f32 %v209_v35 }
 0x113   :  { %v332_v36 = vpop.eup %331 }
 0x114   :  { %v334_v37 = vpop.eup %333  ;;  %v222_v40 = vmul.f32 %v332_v36, %v194_v17 }
 0x115   :  { %v336_v38 = vpop.eup %335  ;;  %v220_v42 = vmul.f32 %v334_v37, %v192_v20 }
 0x116   :  { %v338_v39 = vpop.eup %337  ;;  %v223_v41 = vmul.f32 %v336_v38, %v195_v23 }
 0x117   :  { %v221_v43 = vmul.f32 %v338_v39, %v193_v25 }
 0x118   :  { %v280_v44 = vpack.c.bf16 %v223_v41, %v222_v40 }
 0x119   :  { %v275_v45 = vpack.c.bf16 %v221_v43, %v220_v42 }
 0x11a   :  { %282 = vst [vmem:[%s410_s4 + $0x8] sm:$0xff] %v280_v44  }
 0x11b   :  { %276 = vst [vmem:[%s410_s4] sm:$0xff] %v275_v45  }

// kernel: _lambda_.19
= control target key start
LH: loop header
LB: loop body
LE: loop exit
PB: predicated region body
PF: predicated region fallthrough
CT: control target
= control target key end

     0   :  { %vm12_vm0 = vcmask 517120   ;;  %v70_v0 = vmov 0.0   ;;  %vm23_vm1 = vcmask 523264   ;;  %vm44_vm2 = vcmask 1041409   ;;  %s93_s0 = inlined_call_operand.vmem [shape: bf16[2,16,64], index: 0, kind: input, shape index: {}]   ;;  %s94_s1 = inlined_call_operand.vmem [shape: f32[2,64], index: 1, kind: output, shape index: {}]  }
   0x1   :  { %13 = vst.msk [vmem:[#allocation2] sm:$0x3] %vm12_vm0, %v70_v0  ;;  %v61_v1 = vld [vmem:[%s93_s0] sm:$0xff]   ;;  %v68_v2 = vld [vmem:[%s93_s0 + $0x8] sm:$0xff]  }
   0x2   :  { %v62_v3 = vunpack.c.l.bf16 %v61_v1  ;;  %v63_v4 = vunpack.c.h.bf16 %v61_v1  ;;  %v66_v5 = vunpack.c.l.bf16 %v68_v2  ;;  %v67_v6 = vunpack.c.h.bf16 %v68_v2 }
   0x4   :  { %v24_v7 = vsel %vm23_vm1, %v62_v3, 0.0  ;;  %v25_v8 = vsel %vm23_vm1, %v63_v4, 0.0  ;;  %v33_v9 = vsel %vm23_vm1, %v66_v5, 0.0  ;;  %v34_v10 = vsel %vm23_vm1, %v67_v6, 0.0 }
   0x5   :  { %v26_v11 = vadd.f32 %v25_v8, %v24_v7  ;;  %v35_v12 = vadd.f32 %v34_v10, %v33_v9 }
   0x7   :  { %v27_v13 = vrot.slane %v26_v11, 4  ;;  %v36_v14 = vrot.slane %v35_v12, 4 }
   0x8   :  { %v14_v23 = vld [vmem:[#allocation2] sm:$0x3] }
   0x9   :  { %v28_v15 = vadd.f32 %v27_v13, %v26_v11  ;;  %v37_v16 = vadd.f32 %v36_v14, %v35_v12 }
   0xb   :  { %v29_v17 = vrot.slane %v28_v15, 2  ;;  %v38_v18 = vrot.slane %v37_v16, 2 }
   0xd   :  { %v30_v19 = vadd.f32 %v29_v17, %v28_v15  ;;  %v39_v20 = vadd.f32 %v38_v18, %v37_v16 }
   0xf   :  { %v31_v21 = vrot.slane %v30_v19, 1  ;;  %v40_v22 = vrot.slane %v39_v20, 1 }
  0x11   :  { %v32_v24 = vadd.f32 %v31_v21, %v30_v19  ;;  %v41_v25 = vadd.f32 %v40_v22, %v39_v20 }
  0x13   :  { %v45_v26 = vsel %vm44_vm2, %v41_v25, %v32_v24 }
  0x14   :  { %v47_v27 = vadd.f32 %v45_v26, %v14_v23 }
  0x16   :  { %49 = vst.msk [vmem:[#allocation2] sm:$0x3] %vm12_vm0, %v47_v27 }
  0x1d   :  { %v53_v28 = vld [vmem:[#allocation2] sm:$0x3] }
  0x1e   :  { %v54_v29 = vmul.f32 0.0625, %v53_v28 }
  0x20   :  { %55 = vst.msk [vmem:[%s94_s1] sm:$0x3] %vm12_vm0, %v54_v29 }

// kernel: _lambda_.18
= control target key start
LH: loop header
LB: loop body
LE: loop exit
PB: predicated region body
PF: predicated region fallthrough
CT: control target
= control target key end

     0   :  { %vm302_vm0 = vcmask 519168   ;;  %s669_s0 = inlined_call_operand.vmem [shape: bf16[9,32,64], index: 0, kind: input, shape index: {}]   ;;  %s670_s1 = inlined_call_operand.vmem [shape: f32[9,1,64], index: 1, kind: input, shape index: {}]   ;;  %s671_s2 = inlined_call_operand.vmem [shape: f32[1,64], index: 2, kind: input, shape index: {}]   ;;  %s672_s3 = inlined_call_operand.vmem [shape: f32[1,64], index: 3, kind: input, shape index: {}]   ;;  %s673_s4 = inlined_call_operand.vmem [shape: bf16[32,64], index: 4, kind: output, shape index: {}]  }
   0x1   :  { %v375_v0 = vld [vmem:[%s669_s0] sm:$0xff]   ;;  %v447_v2 = vld [vmem:[%s669_s0 + $0x10] sm:$0xff]   ;;  %v581_v39 = vld [vmem:[%s670_s1 + $0x8] ss:$0 sm:$0xff] }
   0x2   :  { %v510_v1 = vld [vmem:[%s670_s1] ss:$0 sm:$0xff]  ;;  %v376_v3 = vunpack.c.l.bf16 %v375_v0  ;;  %v384_v4 = vunpack.c.l.bf16 %v447_v2  ;;  %v518_v5 = vld [vmem:[%s670_s1 + $0x1] ss:$0 sm:$0xff]  ;;  %v526_v7 = vld [vmem:[%s670_s1 + $0x2] ss:$0 sm:$0xff]  ;;  %v377_v8 = vunpack.c.h.bf16 %v375_v0  ;;  %v385_v9 = vunpack.c.h.bf16 %v447_v2 }
   0x3   :  { %v449_v6 = vld [vmem:[%s669_s0 + $0x20] sm:$0xff]   ;;  %v451_v11 = vld [vmem:[%s669_s0 + $0x30] sm:$0xff]   ;;  %v446_v46 = vld [vmem:[%s669_s0 + $0x8] sm:$0xff]  }
   0x4   :  { %v392_v10 = vunpack.c.l.bf16 %v449_v6  ;;  %v534_v12 = vld [vmem:[%s670_s1 + $0x3] ss:$0 sm:$0xff]  ;;  %v393_v14 = vunpack.c.h.bf16 %v449_v6  ;;  %v32_v15 = vmul.f32 %v376_v3, %v510_v1  ;;  %v53_v16 = vmul.f32 %v384_v4, %v518_v5  ;;  %v455_v19 = vld [vmem:[%s669_s0 + $0x50] sm:$0xff]   ;;  %v548_v21 = vld [vmem:[%s670_s1 + $0x4] ss:$0 sm:$0xff] }
   0x5   :  { %v453_v13 = vld [vmem:[%s669_s0 + $0x40] sm:$0xff]   ;;  %v400_v17 = vunpack.c.l.bf16 %v451_v11  ;;  %v416_v22 = vunpack.c.l.bf16 %v455_v19  ;;  %v459_v24 = vld [vmem:[%s669_s0 + $0x70] sm:$0xff]   ;;  %v33_v25 = vmul.f32 %v377_v8, %v510_v1  ;;  %v54_v26 = vmul.f32 %v385_v9, %v518_v5  ;;  %v448_v51 = vld [vmem:[%s669_s0 + $0x18] sm:$0xff]  }
   0x6   :  { %v408_v18 = vunpack.c.l.bf16 %v453_v13  ;;  %v78_v20 = vmul.f32 %v392_v10, %v526_v7  ;;  %v457_v23 = vld [vmem:[%s669_s0 + $0x60] sm:$0xff]   ;;  %v57_v27 = vadd.f32 %v53_v16, %v32_v15  ;;  %v432_v33 = vunpack.c.l.bf16 %v459_v24  ;;  %v450_v52 = vld [vmem:[%s669_s0 + $0x28] sm:$0xff]   ;;  %v452_v57 = vld [vmem:[%s669_s0 + $0x38] sm:$0xff]  }
   0x7   :  { %v103_v28 = vmul.f32 %v400_v17, %v534_v12  ;;  %v562_v29 = vld [vmem:[%s670_s1 + $0x5] ss:$0 sm:$0xff]  ;;  %v424_v30 = vunpack.c.l.bf16 %v457_v23  ;;  %v567_v31 = vld [vmem:[%s670_s1 + $0x6] ss:$0 sm:$0xff]  ;;  %v58_v35 = vadd.f32 %v54_v26, %v33_v25  ;;  %v576_v38 = vld [vmem:[%s670_s1 + $0x7] ss:$0 sm:$0xff]  ;;  %v79_v40 = vmul.f32 %v393_v14, %v526_v7 }
   0x8   :  { %v461_v32 = vld [vmem:[%s669_s0 + $0x80] sm:$0xff]   ;;  %v82_v36 = vadd.f32 %v78_v20, %v57_v27  ;;  %v128_v37 = vmul.f32 %v408_v18, %v548_v21  ;;  %v401_v41 = vunpack.c.h.bf16 %v451_v11  ;;  %v153_v42 = vmul.f32 %v416_v22, %v562_v29  ;;  %v454_v62 = vld [vmem:[%s669_s0 + $0x48] sm:$0xff]   ;;  %v609_v63 = vld [vmem:[%s669_s0 + $0x58] sm:$0xff]  }
   0x9   :  { %v440_v34 = vunpack.c.l.bf16 %v461_v32  ;;  %v178_v43 = vmul.f32 %v424_v30, %v567_v31  ;;  %v409_v44 = vunpack.c.h.bf16 %v453_v13  ;;  %v417_v45 = vunpack.c.h.bf16 %v455_v19  ;;  %v615_v6 = vld [vmem:[%s669_s0 + $0x68] sm:$0xff]   ;;  %v460_v17 = vld [vmem:[%s669_s0 + $0x78] sm:$0xff]  }
   0xa   :  { %v107_v47 = vadd.f32 %v103_v28, %v82_v36  ;;  %v83_v48 = vadd.f32 %v79_v40, %v58_v35  ;;  %v104_v49 = vmul.f32 %v401_v41, %v534_v12  ;;  %v425_v50 = vunpack.c.h.bf16 %v457_v23  ;;  %v462_v27 = vld [vmem:[%s669_s0 + $0x88] sm:$0xff]  }
   0xb   :  { %v203_v53 = vmul.f32 %v432_v33, %v576_v38  ;;  %v228_v54 = vmul.f32 %v440_v34, %v581_v39  ;;  %v129_v55 = vmul.f32 %v409_v44, %v548_v21  ;;  %v154_v56 = vmul.f32 %v417_v45, %v562_v29  ;;  %v360_v34 = vld [vmem:[%s671_s2] ss:$0 sm:$0xff] }
   0xc   :  { %v132_v58 = vadd.f32 %v128_v37, %v107_v47  ;;  %v108_v59 = vadd.f32 %v104_v49, %v83_v48  ;;  %v433_v60 = vunpack.c.h.bf16 %v459_v24  ;;  %v380_v61 = vunpack.c.l.bf16 %v446_v46  ;;  %v361_v45 = vld [vmem:[%s672_s3] ss:$0 sm:$0xff] }
   0xd   :  { %v179_v0 = vmul.f32 %v425_v50, %v567_v31  ;;  %v441_v2 = vunpack.c.h.bf16 %v461_v32  ;;  %v388_v3 = vunpack.c.l.bf16 %v448_v51  ;;  %v396_v4 = vunpack.c.l.bf16 %v450_v52 }
   0xe   :  { %v157_v8 = vadd.f32 %v153_v42, %v132_v58  ;;  %v133_v9 = vadd.f32 %v129_v55, %v108_v59  ;;  %v34_v10 = vmul.f32 %v380_v61, %v510_v1  ;;  %v404_v11 = vunpack.c.l.bf16 %v452_v57 }
   0xf   :  { %v55_v13 = vmul.f32 %v388_v3, %v518_v5  ;;  %v80_v14 = vmul.f32 %v396_v4, %v526_v7  ;;  %v412_v15 = vunpack.c.l.bf16 %v454_v62  ;;  %v420_v16 = vunpack.c.l.bf16 %v609_v63 }
  0x10   :  { %v182_v18 = vadd.f32 %v178_v43, %v157_v8  ;;  %v158_v19 = vadd.f32 %v154_v56, %v133_v9  ;;  %v204_v20 = vmul.f32 %v433_v60, %v576_v38  ;;  %v428_v22 = vunpack.c.l.bf16 %v615_v6 }
  0x11   :  { %v229_v23 = vmul.f32 %v441_v2, %v581_v39  ;;  %v59_v24 = vadd.f32 %v55_v13, %v34_v10  ;;  %v105_v25 = vmul.f32 %v404_v11, %v534_v12  ;;  %v130_v26 = vmul.f32 %v412_v15, %v548_v21 }
  0x12   :  { %v207_v28 = vadd.f32 %v203_v53, %v182_v18  ;;  %v183_v30 = vadd.f32 %v179_v0, %v158_v19  ;;  %v155_v32 = vmul.f32 %v420_v16, %v562_v29  ;;  %v436_v33 = vunpack.c.l.bf16 %v460_v17 }
  0x13   :  { %v84_v35 = vadd.f32 %v80_v14, %v59_v24  ;;  %v180_v36 = vmul.f32 %v428_v22, %v567_v31  ;;  %v381_v37 = vunpack.c.h.bf16 %v446_v46  ;;  %v389_v40 = vunpack.c.h.bf16 %v448_v51 }
  0x14   :  { %v232_v41 = vadd.f32 %v228_v54, %v207_v28  ;;  %v208_v42 = vadd.f32 %v204_v20, %v183_v30  ;;  %v444_v43 = vunpack.c.l.bf16 %v462_v27  ;;  %v397_v44 = vunpack.c.h.bf16 %v450_v52 }
  0x15   :  { %v109_v47 = vadd.f32 %v105_v25, %v84_v35  ;;  %v35_v48 = vmul.f32 %v381_v37, %v510_v1  ;;  %v56_v49 = vmul.f32 %v389_v40, %v518_v5  ;;  %v405_v50 = vunpack.c.h.bf16 %v452_v57 }
  0x16   :  { %v243_v53 = vmul.f32 %v360_v34, %v232_v41  ;;  %v233_v55 = vadd.f32 %v229_v23, %v208_v42  ;;  %v81_v56 = vmul.f32 %v397_v44, %v526_v7  ;;  %v413_v46 = vunpack.c.h.bf16 %v454_v62 }
  0x17   :  { %v134_v51 = vadd.f32 %v130_v26, %v109_v47  ;;  %v60_v54 = vadd.f32 %v56_v49, %v35_v48  ;;  %v106_v58 = vmul.f32 %v405_v50, %v534_v12  ;;  %v421_v52 = vunpack.c.h.bf16 %v609_v63 }
  0x18   :  { %v254_v59 = vadd.f32 %v361_v45, %v243_v53  ;;  %v244_v60 = vmul.f32 %v360_v34, %v233_v55  ;;  %v205_v61 = vmul.f32 %v436_v33, %v576_v38  ;;  %v131_v5 = vmul.f32 %v413_v46, %v548_v21 }
  0x19   :  { %v159_v0 = vadd.f32 %v155_v32, %v134_v51  ;;  %v85_v1 = vadd.f32 %v81_v56, %v60_v54  ;;  %v429_v57 = vunpack.c.h.bf16 %v615_v6  ;;  %v230_v7 = vmul.f32 %v444_v43, %v581_v39 }
  0x1a   :  { %v362_v2 = vmul.f32 -1.442695, %v254_v59  ;;  %v255_v3 = vadd.f32 %v361_v45, %v244_v60  ;;  %v156_v12 = vmul.f32 %v421_v52, %v562_v29  ;;  %v437_v8 = vunpack.c.h.bf16 %v460_v17 }
  0x1b   :  { %v184_v62 = vadd.f32 %v180_v36, %v159_v0  ;;  %v110_v4 = vadd.f32 %v106_v58, %v85_v1  ;;  %v181_v11 = vmul.f32 %v429_v57, %v567_v31  ;;  %v445_v13 = vunpack.c.h.bf16 %v462_v27 }
  0x1c   :  { %463 = vpow2.f32 %v362_v2  ;;  %v363_v63 = vmul.f32 -1.442695, %v255_v3  ;;  %v206_v6 = vmul.f32 %v437_v8, %v576_v38 }
  0x1d   :  { %v209_v9 = vadd.f32 %v205_v61, %v184_v62  ;;  %v135_v10 = vadd.f32 %v131_v5, %v110_v4  ;;  %v231_v18 = vmul.f32 %v445_v13, %v581_v39 }
  0x1e   :  { %465 = vpow2.f32 %v363_v63 }
  0x1f   :  { %v234_v21 = vadd.f32 %v230_v7, %v209_v9  ;;  %v160_v14 = vadd.f32 %v156_v12, %v135_v10 }
  0x21   :  { %v245_v15 = vmul.f32 %v360_v34, %v234_v21  ;;  %v185_v16 = vadd.f32 %v181_v11, %v160_v14 }
  0x23   :  { %v256_v19 = vadd.f32 %v361_v45, %v245_v15  ;;  %v210_v20 = vadd.f32 %v206_v6, %v185_v16 }
  0x25   :  { %v364_v29 = vmul.f32 -1.442695, %v256_v19  ;;  %v235_v17 = vadd.f32 %v231_v18, %v210_v20 }
  0x26   :  { %v464_v22 = vpop.eup %463 }
  0x27   :  { %v270_v23 = vadd.f32 1.0, %v464_v22  ;;  %467 = vpow2.f32 %v364_v29  ;;  %v246_v24 = vmul.f32 %v360_v34, %v235_v17 }
  0x28   :  { %v466_v25 = vpop.eup %465 }
  0x29   :  { %469 = vrcp.f32 %v270_v23  ;;  %v271_v31 = vadd.f32 1.0, %v466_v25  ;;  %v257_v26 = vadd.f32 %v361_v45, %v246_v24 }
  0x2b   :  { %471 = vrcp.f32 %v271_v31  ;;  %v365_v27 = vmul.f32 -1.442695, %v257_v26 }
  0x2d   :  { %473 = vpow2.f32 %v365_v27 }
  0x31   :  { %v468_v38 = vpop.eup %467 }
  0x32   :  { %v272_v28 = vadd.f32 1.0, %v468_v38 }
  0x33   :  { %v470_v30 = vpop.eup %469 }
  0x34   :  { %v282_v32 = vmul.f32 %v470_v30, %v254_v59  ;;  %475 = vrcp.f32 %v272_v28 }
  0x35   :  { %v472_v39 = vpop.eup %471 }
  0x36   :  { %v370_v33 = vpack.c.bf16 %v282_v32, %v282_v32  ;;  %v283_v35 = vmul.f32 %v472_v39, %v255_v3 }
  0x37   :  { %v474_v36 = vpop.eup %473 }
  0x38   :  { %303 = vst.msk [vmem:[%s673_s4] sm:$0xf] %vm302_vm0, %v370_v33  ;;  %v371_v34 = vpack.c.bf16 %v283_v35, %v283_v35  ;;  %v273_v37 = vadd.f32 1.0, %v474_v36 }
  0x3a   :  { %304 = vst.msk [vmem:[%s673_s4 + $0x4] sm:$0xf] %vm302_vm0, %v371_v34  ;;  %477 = vrcp.f32 %v273_v37 }
  0x3e   :  { %v476_v40 = vpop.eup %475 }
  0x3f   :  { %v284_v41 = vmul.f32 %v476_v40, %v256_v19 }
  0x41   :  { %v372_v42 = vpack.c.bf16 %v284_v41, %v284_v41 }
  0x43   :  { %305 = vst.msk [vmem:[%s673_s4 + $0x8] sm:$0xf] %vm302_vm0, %v372_v42 }
  0x44   :  { %v478_v43 = vpop.eup %477 }
  0x45   :  { %v285_v44 = vmul.f32 %v478_v43, %v257_v26 }
  0x47   :  { %v373_v45 = vpack.c.bf16 %v285_v44, %v285_v44 }
  0x49   :  { %306 = vst.msk [vmem:[%s673_s4 + $0xc] sm:$0xf] %vm302_vm0, %v373_v45 }

// kernel: _lambda_.20
= control target key start
LH: loop header
LB: loop body
LE: loop exit
PB: predicated region body
PF: predicated region fallthrough
CT: control target
= control target key end

     0   :  { %v217_v0 = vmov 0.0   ;;  %vm218_vm0 = vmmov 0   ;;  %s280_s1 = inlined_call_operand.vmem [shape: bf16[128,128], index: 1, kind: input, shape index: {}]   ;;  %s281_s0 = inlined_call_operand.vmem [shape: bf16[1,8,128], index: 0, kind: input, shape index: {}]   ;;  %s282_s2 = inlined_call_operand.vmem [shape: f32[1,128], index: 2, kind: input, shape index: {}]   ;;  %s283_s3 = inlined_call_operand.vmem [shape: f32[1,128], index: 3, kind: input, shape index: {}]   ;;  %s284_s4 = inlined_call_operand.vmem [shape: f32[1,8,128], index: 4, kind: output, shape index: {}]  }
   0x1   :  { %183 = vmatprep.subr.bf16.mxu0 %v217_v0  ;;  %v205_v1 = vld [vmem:[%s280_s1] sm:$0xff]   ;;  %199 = vmatprep.mubr.msk.bf16.mxu0 %vm218_vm0, %v217_v0  ;;  %v206_v2 = vld [vmem:[%s280_s1 + $0x8] sm:$0xff]   ;;  %v207_v3 = vld [vmem:[%s280_s1 + $0x10] sm:$0xff]  }
   0x2   :  { %184 = vmatpush3.bf16.msra.mxu0 %v205_v1  ;;  %v208_v4 = vld [vmem:[%s280_s1 + $0x18] sm:$0xff]   ;;  %v209_v5 = vld [vmem:[%s280_s1 + $0x20] sm:$0xff]   ;;  %v210_v6 = vld [vmem:[%s280_s1 + $0x28] sm:$0xff]  }
   0x3   :  { %185 = vmatprep.subr.bf16.mxu0 %v217_v0  ;;  %v211_v7 = vld [vmem:[%s280_s1 + $0x30] sm:$0xff]   ;;  %v212_v8 = vld [vmem:[%s280_s1 + $0x38] sm:$0xff]   ;;  %v23_v9 = vld [vmem:[%s281_s0] sm:$0xf] }
   0x4   :  { %v171_v10 = vld [vmem:[%s282_s2] ss:$0 sm:$0xff] }
   0x5   :  { %v172_v12 = vld [vmem:[%s283_s3] ss:$0 sm:$0xff] }
   0x6   :  { %186 = vmatpush3.bf16.msra.mxu0 %v206_v2 }
   0x7   :  { %187 = vmatprep.subr.bf16.mxu0 %v217_v0 }
   0xa   :  { %188 = vmatpush3.bf16.msra.mxu0 %v207_v3 }
   0xb   :  { %189 = vmatprep.subr.bf16.mxu0 %v217_v0 }
   0xe   :  { %190 = vmatpush3.bf16.msra.mxu0 %v208_v4 }
   0xf   :  { %191 = vmatprep.subr.bf16.mxu0 %v217_v0 }
  0x12   :  { %192 = vmatpush3.bf16.msra.mxu0 %v209_v5 }
  0x13   :  { %193 = vmatprep.subr.bf16.mxu0 %v217_v0 }
  0x16   :  { %194 = vmatpush3.bf16.msra.mxu0 %v210_v6 }
  0x17   :  { %195 = vmatprep.subr.bf16.mxu0 %v217_v0 }
  0x1a   :  { %196 = vmatpush3.bf16.msra.mxu0 %v211_v7 }
  0x1b   :  { %197 = vmatprep.subr.bf16.mxu0 %v217_v0 }
  0x1e   :  { %198 = vmatpush3.bf16.msra.mxu0 %v212_v8 }
  0x21   :  { %200 = vmatmul.mubr.bf16.vlgmr.msra.gmra.mrb[0].mxu0 %v23_v9 }
  0xf4   :  { %v123_v11 = vpop.f32.mrb[0].mxu0 }
  0xf5   :  { %v142_v13 = vmul.f32 %v171_v10, %v123_v11  ;;  %v201_v14 = vpop.f32.mrb[1].mxu0 }
  0xf6   :  { %v126_v15 = vpop.f32.mrb[2].mxu0 }
  0xf7   :  { %v150_v16 = vadd.f32 %v172_v12, %v142_v13  ;;  %v202_v17 = vpop.f32.mrb[3].mxu0 }
  0xf9   :  { %v173_v18 = vmul.f32 -1.442695, %v150_v16 }
  0xfb   :  { %213 = vpow2.f32 %v173_v18 }
 0x105   :  { %v214_v19 = vpop.eup %213 }
 0x106   :  { %v154_v20 = vadd.f32 1.0, %v214_v19 }
 0x108   :  { %215 = vrcp.f32 %v154_v20 }
 0x112   :  { %v216_v21 = vpop.eup %215 }
 0x113   :  { %v157_v22 = vmul.f32 %v216_v21, %v150_v16 }
 0x115   :  { %158 = vst [vmem:[%s284_s4] sm:$0xff] %v157_v22 }

// kernel: _lambda_.21
= control target key start
LH: loop header
LB: loop body
LE: loop exit
PB: predicated region body
PF: predicated region fallthrough
CT: control target
= control target key end

     0   :  { %v216_v0 = vmov 0.0   ;;  %vm217_vm0 = vmmov 0   ;;  %s279_s1 = inlined_call_operand.vmem [shape: bf16[128,128], index: 1, kind: input, shape index: {}]   ;;  %s280_s0 = inlined_call_operand.vmem [shape: bf16[1,8,128], index: 0, kind: input, shape index: {}]   ;;  %s281_s2 = inlined_call_operand.vmem [shape: f32[1,128], index: 2, kind: input, shape index: {}]   ;;  %s282_s3 = inlined_call_operand.vmem [shape: f32[1,128], index: 3, kind: input, shape index: {}]   ;;  %s283_s4 = inlined_call_operand.vmem [shape: f32[1,8,128], index: 4, kind: output, shape index: {}]  }
   0x1   :  { %182 = vmatprep.subr.bf16.mxu0 %v216_v0  ;;  %v204_v1 = vld [vmem:[%s279_s1] sm:$0xff]   ;;  %198 = vmatprep.mubr.msk.bf16.mxu0 %vm217_vm0, %v216_v0  ;;  %v205_v2 = vld [vmem:[%s279_s1 + $0x8] sm:$0xff]   ;;  %v206_v3 = vld [vmem:[%s279_s1 + $0x10] sm:$0xff]  }
   0x2   :  { %183 = vmatpush3.bf16.msra.mxu0 %v204_v1  ;;  %v207_v4 = vld [vmem:[%s279_s1 + $0x18] sm:$0xff]   ;;  %v208_v5 = vld [vmem:[%s279_s1 + $0x20] sm:$0xff]   ;;  %v209_v6 = vld [vmem:[%s279_s1 + $0x28] sm:$0xff]  }
   0x3   :  { %184 = vmatprep.subr.bf16.mxu0 %v216_v0  ;;  %v210_v7 = vld [vmem:[%s279_s1 + $0x30] sm:$0xff]   ;;  %v211_v8 = vld [vmem:[%s279_s1 + $0x38] sm:$0xff]   ;;  %v23_v9 = vld [vmem:[%s280_s0] sm:$0xf] }
   0x4   :  { %v170_v10 = vld [vmem:[%s281_s2] ss:$0 sm:$0xff] }
   0x5   :  { %v171_v12 = vld [vmem:[%s282_s3] ss:$0 sm:$0xff] }
   0x6   :  { %185 = vmatpush3.bf16.msra.mxu0 %v205_v2 }
   0x7   :  { %186 = vmatprep.subr.bf16.mxu0 %v216_v0 }
   0xa   :  { %187 = vmatpush3.bf16.msra.mxu0 %v206_v3 }
   0xb   :  { %188 = vmatprep.subr.bf16.mxu0 %v216_v0 }
   0xe   :  { %189 = vmatpush3.bf16.msra.mxu0 %v207_v4 }
   0xf   :  { %190 = vmatprep.subr.bf16.mxu0 %v216_v0 }
  0x12   :  { %191 = vmatpush3.bf16.msra.mxu0 %v208_v5 }
  0x13   :  { %192 = vmatprep.subr.bf16.mxu0 %v216_v0 }
  0x16   :  { %193 = vmatpush3.bf16.msra.mxu0 %v209_v6 }
  0x17   :  { %194 = vmatprep.subr.bf16.mxu0 %v216_v0 }
  0x1a   :  { %195 = vmatpush3.bf16.msra.mxu0 %v210_v7 }
  0x1b   :  { %196 = vmatprep.subr.bf16.mxu0 %v216_v0 }
  0x1e   :  { %197 = vmatpush3.bf16.msra.mxu0 %v211_v8 }
  0x21   :  { %199 = vmatmul.mubr.bf16.vlgmr.msra.gmra.mrb[0].mxu0 %v23_v9 }
  0xf4   :  { %v123_v11 = vpop.f32.mrb[0].mxu0 }
  0xf5   :  { %v142_v13 = vmul.f32 %v170_v10, %v123_v11  ;;  %v200_v14 = vpop.f32.mrb[1].mxu0 }
  0xf6   :  { %v126_v15 = vpop.f32.mrb[2].mxu0 }
  0xf7   :  { %v150_v16 = vadd.f32 %v171_v12, %v142_v13  ;;  %v201_v17 = vpop.f32.mrb[3].mxu0 }
  0xf9   :  { %v172_v18 = vmul.f32 -1.442695, %v150_v16 }
  0xfb   :  { %212 = vpow2.f32 %v172_v18 }
 0x105   :  { %v213_v19 = vpop.eup %212 }
 0x106   :  { %v154_v20 = vadd.f32 1.0, %v213_v19 }
 0x108   :  { %214 = vrcp.f32 %v154_v20 }
 0x112   :  { %v215_v21 = vpop.eup %214 }
 0x113   :  { %157 = vst [vmem:[%s283_s4] sm:$0xff] %v215_v21 }

// kernel: _lambda_.25
= control target key start
LH: loop header
LB: loop body
LE: loop exit
PB: predicated region body
PF: predicated region fallthrough
CT: control target
= control target key end

     0   :  { %v205_v0 = vmov 0.0   ;;  %vm206_vm0 = vmmov 0   ;;  %s268_s1 = inlined_call_operand.vmem [shape: bf16[128,128], index: 1, kind: input, shape index: {}]   ;;  %s269_s0 = inlined_call_operand.vmem [shape: bf16[1,8,128], index: 0, kind: input, shape index: {}]   ;;  %s270_s2 = inlined_call_operand.vmem [shape: f32[1,128], index: 2, kind: input, shape index: {}]   ;;  %s271_s3 = inlined_call_operand.vmem [shape: f32[1,128], index: 3, kind: input, shape index: {}]   ;;  %s272_s4 = inlined_call_operand.vmem [shape: f32[1,8,128], index: 4, kind: output, shape index: {}]  }
   0x1   :  { %175 = vmatprep.subr.bf16.mxu0 %v205_v0  ;;  %v197_v1 = vld [vmem:[%s268_s1] sm:$0xff]   ;;  %191 = vmatprep.mubr.msk.bf16.mxu0 %vm206_vm0, %v205_v0  ;;  %v198_v2 = vld [vmem:[%s268_s1 + $0x8] sm:$0xff]   ;;  %v199_v3 = vld [vmem:[%s268_s1 + $0x10] sm:$0xff]  }
   0x2   :  { %176 = vmatpush3.bf16.msra.mxu0 %v197_v1  ;;  %v200_v4 = vld [vmem:[%s268_s1 + $0x18] sm:$0xff]   ;;  %v201_v5 = vld [vmem:[%s268_s1 + $0x20] sm:$0xff]   ;;  %v202_v6 = vld [vmem:[%s268_s1 + $0x28] sm:$0xff]  }
   0x3   :  { %177 = vmatprep.subr.bf16.mxu0 %v205_v0  ;;  %v203_v7 = vld [vmem:[%s268_s1 + $0x30] sm:$0xff]   ;;  %v204_v8 = vld [vmem:[%s268_s1 + $0x38] sm:$0xff]   ;;  %v23_v9 = vld [vmem:[%s269_s0] sm:$0xf] }
   0x4   :  { %v164_v10 = vld [vmem:[%s270_s2] ss:$0 sm:$0xff] }
   0x5   :  { %v165_v12 = vld [vmem:[%s271_s3] ss:$0 sm:$0xff] }
   0x6   :  { %178 = vmatpush3.bf16.msra.mxu0 %v198_v2 }
   0x7   :  { %179 = vmatprep.subr.bf16.mxu0 %v205_v0 }
   0xa   :  { %180 = vmatpush3.bf16.msra.mxu0 %v199_v3 }
   0xb   :  { %181 = vmatprep.subr.bf16.mxu0 %v205_v0 }
   0xe   :  { %182 = vmatpush3.bf16.msra.mxu0 %v200_v4 }
   0xf   :  { %183 = vmatprep.subr.bf16.mxu0 %v205_v0 }
  0x12   :  { %184 = vmatpush3.bf16.msra.mxu0 %v201_v5 }
  0x13   :  { %185 = vmatprep.subr.bf16.mxu0 %v205_v0 }
  0x16   :  { %186 = vmatpush3.bf16.msra.mxu0 %v202_v6 }
  0x17   :  { %187 = vmatprep.subr.bf16.mxu0 %v205_v0 }
  0x1a   :  { %188 = vmatpush3.bf16.msra.mxu0 %v203_v7 }
  0x1b   :  { %189 = vmatprep.subr.bf16.mxu0 %v205_v0 }
  0x1e   :  { %190 = vmatpush3.bf16.msra.mxu0 %v204_v8 }
  0x21   :  { %192 = vmatmul.mubr.bf16.vlgmr.msra.gmra.mrb[0].mxu0 %v23_v9 }
  0xf4   :  { %v123_v11 = vpop.f32.mrb[0].mxu0 }
  0xf5   :  { %v142_v13 = vmul.f32 %v164_v10, %v123_v11  ;;  %v193_v14 = vpop.f32.mrb[1].mxu0 }
  0xf6   :  { %v126_v15 = vpop.f32.mrb[2].mxu0 }
  0xf7   :  { %v150_v16 = vadd.f32 %v165_v12, %v142_v13  ;;  %v194_v17 = vpop.f32.mrb[3].mxu0 }
  0xf9   :  { %151 = vst [vmem:[%s272_s4] sm:$0xff] %v150_v16 }

// kernel: _lambda_.22
= control target key start
LH: loop header
LB: loop body
LE: loop exit
PB: predicated region body
PF: predicated region fallthrough
CT: control target
= control target key end

     0   :  { %s980_s21 = smov 0   ;;  %s982_s22 = smov 0   ;;  %s1054_s0 = inlined_call_operand.vmem [shape: bf16[2,16,128], index: 0, kind: input, shape index: {}]   ;;  %s1055_s1 = inlined_call_operand.vmem [shape: bf16[128,128], index: 1, kind: input, shape index: {}]   ;;  %s1056_s2 = inlined_call_operand.vmem [shape: f32[1,128], index: 2, kind: input, shape index: {}]   ;;  %s1057_s3 = inlined_call_operand.vmem [shape: f32[1,128], index: 3, kind: input, shape index: {}]   ;;  %s1058_s4 = inlined_call_operand.vmem [shape: f32[2,1,128], index: 4, kind: input, shape index: {}]   ;;  %s1059_s5 = inlined_call_operand.vmem [shape: bf16[2,16,128], index: 5, kind: input, shape index: {}]   ;;  %s1060_s6 = inlined_call_operand.vmem [shape: bf16[2,16,128], index: 6, kind: output, shape index: {}]  }
   0x1   :  { %s984_s23 = smov 0  }
   0x2 LB: > { %s42_s24 = sadd.s32 1, %s937_s22  ;;  %p816_p0 = scmp.ge.s32.totalorder %s941_s23, 1  ;;  %s941_s23 = sphi %s984_s23, %s16_s23   ;;  %s937_s22 = sphi %s982_s22, %s1062_s22   ;;  %s933_s21 = sphi %s980_s21, %s1061_s21  }
   0x3   : > { %p44_p1 = scmp.ge.s32.totalorder %s42_s24, 2  ;;  %p321_p2 = scmp.lt.s32.totalorder %s941_s23, 3 }
   0x5   : > { %s1064_s24 = smov (%p44_p1, %s42_s24), 0  ;;  %p322_p3 = pnand %p816_p0, %p321_p2 }
   0x6   : > { %v911_v0 = vld [vmem:[%s1055_s1] sm:$0xff] (!%p322_p3)   ;;  %v943_v1 = vmov (!%p322_p3), 0.0   ;;  %v912_v2 = vld [vmem:[%s1055_s1 + $0x8] sm:$0xff] (!%p322_p3)   ;;  %vm944_vm0 = vmmov (!%p322_p3), 0   ;;  %p398_p4 = scmp.lt.s32.totalorder (!%p322_p3), %s933_s21, 1  ;;  %v913_v3 = vld [vmem:[%s1055_s1 + $0x10] sm:$0xff] (!%p322_p3)  }
   0x7   : > { %325 = sbr.rel (%p322_p3) target bundleno = 262 (0x106), region = 44  ;;  %865 = vmatprep.subr.bf16.mxu0 (!%p322_p3), %v943_v1  ;;  %881 = vmatprep.mubr.msk.bf16.mxu0 (!%p322_p3), %vm944_vm0, %v943_v1  ;;  %v914_v4 = vld [vmem:[%s1055_s1 + $0x18] sm:$0xff] (!%p322_p3)   ;;  %v915_v5 = vld [vmem:[%s1055_s1 + $0x20] sm:$0xff] (!%p322_p3)   ;;  %v916_v6 = vld [vmem:[%s1055_s1 + $0x28] sm:$0xff] (!%p322_p3)  }
   0x8   : > { %866 = vmatpush3.bf16.msra.mxu0 (!%p322_p3), %v911_v0  ;;  %v917_v10 = vld [vmem:[%s1055_s1 + $0x30] sm:$0xff] (!%p322_p3)   ;;  %v918_v14 = vld [vmem:[%s1055_s1 + $0x38] sm:$0xff] (!%p322_p3)   ;;  %v832_v16 = vld [vmem:[%s1056_s2] ss:$0 sm:$0xff] (!%p322_p3) }
   0x9   : > { %867 = vmatprep.subr.bf16.mxu0 (!%p322_p3), %v943_v1  ;;  %v833_v18 = vld [vmem:[%s1057_s3] ss:$0 sm:$0xff] (!%p322_p3) }
   0xc   : > { %868 = vmatpush3.bf16.msra.mxu0 (!%p322_p3), %v912_v2 }
   0xd   : > { %869 = vmatprep.subr.bf16.mxu0 (!%p322_p3), %v943_v1 }
   0xe   : > { %s1066_s21 = smov (!%p398_p4, %s933_s21), 1 }
   0xf   : > { %s1010_s9 = sshll.u32 %s1066_s21, 3  ;;  %s430_s19 = scalar_lea.vmem %s1058_s4, %s1066_s21 }
  0x10   : > { %870 = vmatpush3.bf16.msra.mxu0 %v913_v3  ;;  %s408_s14 = scalar_lea.vmem %s1054_s0, %s1010_s9  ;;  %v823_v11 = vld [vmem:[%s430_s19] ss:$0 sm:$0xff]  ;;  %s442_s29 = scalar_lea.vmem %s1059_s5, %s1010_s9 }
  0x11   : > { %871 = vmatprep.subr.bf16.mxu0 %v943_v1  ;;  %v844_v7 = vld [vmem:[%s408_s14] sm:$0xff]   ;;  %s455_s13 = scalar_lea.vmem %s1060_s6, %s1010_s9 }
  0x12   : > { %v845_v8 = vunpack.c.l.bf16 %v844_v7  ;;  %v846_v9 = vunpack.c.h.bf16 %v844_v7  ;;  %v848_v19 = vld [vmem:[%s442_s29] sm:$0xff]  }
  0x13   : > { %v849_v24 = vunpack.c.l.bf16 %v848_v19  ;;  %v850_v26 = vunpack.c.h.bf16 %v848_v19 }
  0x14   : > { %872 = vmatpush3.bf16.msra.mxu0 %v914_v4  ;;  %v475_v12 = vmul.f32 %v845_v8, %v823_v11  ;;  %v476_v13 = vmul.f32 %v846_v9, %v823_v11 }
  0x15   : > { %873 = vmatprep.subr.bf16.mxu0 %v943_v1 }
  0x16   : > { %v479_v15 = vpack.c.bf16 %v476_v13, %v475_v12 }
  0x18   : > { %874 = vmatpush3.bf16.msra.mxu0 %v915_v5 }
  0x19   : > { %875 = vmatprep.subr.bf16.mxu0 %v943_v1 }
  0x1c   : > { %876 = vmatpush3.bf16.msra.mxu0 %v916_v6 }
  0x1d   : > { %877 = vmatprep.subr.bf16.mxu0 %v943_v1 }
  0x20   : > { %878 = vmatpush3.bf16.msra.mxu0 %v917_v10 }
  0x21   : > { %879 = vmatprep.subr.bf16.mxu0 %v943_v1 }
  0x24   : > { %880 = vmatpush3.bf16.msra.mxu0 %v918_v14 }
  0x27   : > { %882 = vmatmul.mubr.bf16.vlgmr.msra.gmra.mrb[0].mxu0 %v479_v15 }
  0xfa   : > { %v578_v17 = vpop.f32.mrb[0].mxu0 }
  0xfb   : > { %v601_v20 = vmul.f32 %v832_v16, %v578_v17  ;;  %v883_v21 = vpop.f32.mrb[1].mxu0 }
  0xfc   : > { %v581_v22 = vpop.f32.mrb[2].mxu0 }
  0xfd   : > { %v610_v23 = vadd.f32 %v833_v18, %v601_v20  ;;  %v602_v25 = vmul.f32 %v832_v16, %v581_v22  ;;  %v884_v27 = vpop.f32.mrb[3].mxu0 }
  0xff   : > { %v611_v28 = vadd.f32 %v833_v18, %v602_v25  ;;  %v616_v29 = vadd.f32 %v849_v24, %v610_v23 }
 0x101   : > { %v617_v30 = vadd.f32 %v850_v26, %v611_v28 }
 0x103   : > { %v854_v31 = vpack.c.bf16 %v617_v30, %v616_v29 }
 0x105   : > { %855 = vst [vmem:[%s455_s13] sm:$0xff] %v854_v31  }
 0x106 PF: > { %s16_s23 = sadd.s32 1, %s941_s23   ;;  %s1061_s21 = smov %s937_s22 }
 0x107   : > { %p13_p5 = scmp.ge.s32.totalorder %s16_s23, 4   ;;  %s1062_s22 = smov %s1064_s24 }
 0x109   :  { %15 = sbr.rel (!%p13_p5) target bundleno = 2 (0x2), region = 97 }

</bundles_post_ra>
